<compile_context>
chip_gen: v7x
topology: tpu7x:2x2x1
jax: 0.10.0
libtpu: 0.0.40
codegen_flags: <defaults>
</compile_context>

<pallas_src>
import jax
import jax.numpy as jnp
from jax import lax
from jax.experimental import pallas as pl
from jax.experimental.pallas import tpu as pltpu

# ----- scaled-down GPT-2 config (real gpt2: vocab=50257, d=768, 12 layers) -----
VOCAB = 128
N_POS = 64
D_MODEL = 32
N_LAYER = 2
N_HEAD = 4
HEAD_DIM = D_MODEL // N_HEAD
PREFIX_LEN = 10          # prefix_length = 10  -> MLP branch of clip_project
PREFIX_SIZE = 64         # stand-in for prefix_size=512
LN_EPS = 1e-5


# ------------------------------ in-kernel helpers ------------------------------

def _layer_norm(x, g, b):
    mu = jnp.mean(x, axis=-1, keepdims=True)
    var = jnp.mean(jnp.square(x - mu), axis=-1, keepdims=True)
    return (x - mu) * lax.rsqrt(var + LN_EPS) * g + b


def _gelu_new(x):
    # GPT-2 "gelu_new" tanh approximation (kept in f32; tanh goes to the EUP)
    c = jnp.sqrt(2.0 / jnp.pi).astype(jnp.float32)
    return 0.5 * x * (1.0 + jnp.tanh(c * (x + 0.044715 * x * x * x)))


# ------------------------------ Pallas kernels ---------------------------------

def clip_project_kernel(prefix_ref, w1_ref, b1_ref, w2_ref, b2_ref, out_ref):
    """MLP((prefix_size, D*L//2, D*L)): Linear -> Tanh -> Linear, whole batch."""
    h = jnp.dot(prefix_ref[...].astype(jnp.bfloat16), w1_ref[...],
                preferred_element_type=jnp.float32) + b1_ref[...]
    h = jnp.tanh(h)
    out_ref[...] = jnp.dot(h.astype(jnp.bfloat16), w2_ref[...],
                           preferred_element_type=jnp.float32) + b2_ref[...]


def gpt2_fused_kernel(x_ref, bias_ref,
                      ln1g_ref, ln1b_ref, wqkv_ref, bqkv_ref, wo_ref, bo_ref,
                      ln2g_ref, ln2b_ref, wfc_ref, bfc_ref, wpr_ref, bpr_ref,
                      lnfg_ref, lnfb_ref, wtet_ref, out_ref):
    """All GPT-2 blocks + final LN + tied lm_head, fully resident in VMEM.

    x_ref:    (B*T, D) f32 activations (prefix+text embeddings + positions)
    bias_ref: (B*T, B*T) additive attention bias: 0 where (same batch & causal),
              -1e30 elsewhere (precomputed once in the wrapper).
    Per-layer weights are stacked on a leading layer axis; matmul weights bf16.
    """
    x = x_ref[...]                                   # (BT, D) f32
    bias = bias_ref[...]                             # (BT, BT) f32
    scale = jnp.float32(1.0 / (HEAD_DIM ** 0.5))

    for l in range(N_LAYER):                         # static unroll (N_LAYER = 2)
        # ---- causal multi-head self-attention (pre-LN) ----
        h = _layer_norm(x, ln1g_ref[l], ln1b_ref[l])
        qkv = jnp.dot(h.astype(jnp.bfloat16), wqkv_ref[l],
                      preferred_element_type=jnp.float32) + bqkv_ref[l]
        q = (qkv[:, :D_MODEL] * scale).astype(jnp.bfloat16)      # scale folded into q
        k = qkv[:, D_MODEL:2 * D_MODEL].astype(jnp.bfloat16)
        v = qkv[:, 2 * D_MODEL:].astype(jnp.bfloat16)

        heads = []
        for hh in range(N_HEAD):                     # static unroll over heads
            s0, s1 = hh * HEAD_DIM, (hh + 1) * HEAD_DIM
            # scores over ALL B*T rows at once; cross-batch / future positions
            # are killed by the additive bias (-1e30) before the softmax.
            scores = lax.dot_general(q[:, s0:s1], k[:, s0:s1],
                                     (((1,), (1,)), ((), ())),
                                     preferred_element_type=jnp.float32) + bias
            m = jnp.max(scores, axis=-1, keepdims=True)
            p = jnp.exp(scores - m)
            denom = jnp.sum(p, axis=-1, keepdims=True)
            p = p * pl.reciprocal(denom, approx=True)            # EUP divide
            heads.append(jnp.dot(p.astype(jnp.bfloat16), v[:, s0:s1],
                                 preferred_element_type=jnp.float32))
        attn = jnp.concatenate(heads, axis=-1)                   # (BT, D)
        attn = jnp.dot(attn.astype(jnp.bfloat16), wo_ref[l],
                       preferred_element_type=jnp.float32) + bo_ref[l]
        x = x + attn

        # ---- MLP (fc -> gelu_new -> proj) ----
        h2 = _layer_norm(x, ln2g_ref[l], ln2b_ref[l])
        f = jnp.dot(h2.astype(jnp.bfloat16), wfc_ref[l],
                    preferred_element_type=jnp.float32) + bfc_ref[l]
        f = _gelu_new(f)
        f = jnp.dot(f.astype(jnp.bfloat16), wpr_ref[l],
                    preferred_element_type=jnp.float32) + bpr_ref[l]
        x = x + f

    # ---- final LayerNorm + tied lm_head (wte pre-transposed to (D, V)) ----
    hf = _layer_norm(x, lnfg_ref[...], lnfb_ref[...])
    out_ref[...] = jnp.dot(hf.astype(jnp.bfloat16), wtet_ref[...],
                           preferred_element_type=jnp.float32)   # (BT, V), V=128 lane-dense


# ------------------------------ pallas_call wrappers ---------------------------

def _vmem_spec():
    return pl.BlockSpec(memory_space=pltpu.MemorySpace.VMEM)


def clip_project(prefix, p):
    B = prefix.shape[0]
    out_dim = p["w2"].shape[1]
    return pl.pallas_call(
        clip_project_kernel,
        out_shape=jax.ShapeDtypeStruct((B, out_dim), jnp.float32),
        in_specs=[_vmem_spec() for _ in range(5)],
        out_specs=_vmem_spec(),
    )(prefix, p["w1"], p["b1"], p["w2"], p["b2"])


def gpt2_fused(x2, attn_bias, params):
    """Single fused pallas_call over the whole batch; no grid, no tiling
    (total working set << VMEM on v5e/v6e/v7x)."""
    # TODO(synk): on v7x (2 TensorCores/chip) a core-parallel split of the
    #             batch/head work could use the second core; kept single-core
    #             since v5e/v6e are single-TC and the workload is tiny.
    BT = x2.shape[0]
    blk = params["blocks"]
    args = [x2, attn_bias,
            blk["ln1_g"], blk["ln1_b"], blk["w_qkv"], blk["b_qkv"],
            blk["w_o"], blk["b_o"], blk["ln2_g"], blk["ln2_b"],
            blk["w_fc"], blk["b_fc"], blk["w_pr"], blk["b_pr"],
            params["lnf_g"], params["lnf_b"], params["wte_t"]]
    return pl.pallas_call(
        gpt2_fused_kernel,
        out_shape=jax.ShapeDtypeStruct((BT, VOCAB), jnp.float32),
        in_specs=[_vmem_spec() for _ in args],
        out_specs=_vmem_spec(),
    )(*args)


# ------------------------------ parameters -------------------------------------

def init_params(key):
    std = 0.02
    ks = jax.random.split(key, 8)

    def nrm(k, shape, dtype=jnp.float32):
        return (std * jax.random.normal(k, shape)).astype(dtype)

    mid = D_MODEL * PREFIX_LEN // 2
    out = D_MODEL * PREFIX_LEN
    wte = nrm(ks[0], (VOCAB, D_MODEL))                      # f32 (embedding gather)
    return {
        "wte": wte,
        "wte_t": wte.T.astype(jnp.bfloat16),                # pre-transposed tied lm_head
        "wpe": nrm(ks[1], (N_POS, D_MODEL)),
        "lnf_g": jnp.ones((1, D_MODEL), jnp.float32),
        "lnf_b": jnp.zeros((1, D_MODEL), jnp.float32),
        "clip_project": {
            "w1": nrm(ks[2], (PREFIX_SIZE, mid), jnp.bfloat16),
            "b1": jnp.zeros((1, mid), jnp.float32),
            "w2": nrm(ks[3], (mid, out), jnp.bfloat16),
            "b2": jnp.zeros((1, out), jnp.float32),
        },
        # per-layer weights stacked on a leading layer axis (indexed ref[l] in-kernel)
        "blocks": {
            "ln1_g": jnp.ones((N_LAYER, 1, D_MODEL), jnp.float32),
            "ln1_b": jnp.zeros((N_LAYER, 1, D_MODEL), jnp.float32),
            "w_qkv": nrm(ks[4], (N_LAYER, D_MODEL, 3 * D_MODEL), jnp.bfloat16),
            "b_qkv": jnp.zeros((N_LAYER, 1, 3 * D_MODEL), jnp.float32),
            "w_o": nrm(ks[5], (N_LAYER, D_MODEL, D_MODEL), jnp.bfloat16),
            "b_o": jnp.zeros((N_LAYER, 1, D_MODEL), jnp.float32),
            "ln2_g": jnp.ones((N_LAYER, 1, D_MODEL), jnp.float32),
            "ln2_b": jnp.zeros((N_LAYER, 1, D_MODEL), jnp.float32),
            "w_fc": nrm(ks[6], (N_LAYER, D_MODEL, 4 * D_MODEL), jnp.bfloat16),
            "b_fc": jnp.zeros((N_LAYER, 1, 4 * D_MODEL), jnp.float32),
            "w_pr": nrm(ks[7], (N_LAYER, 4 * D_MODEL, D_MODEL), jnp.bfloat16),
            "b_pr": jnp.zeros((N_LAYER, 1, D_MODEL), jnp.float32),
        },
    }


# ------------------------------ model forward ----------------------------------

def _build_attn_bias(B, T):
    """(B*T, B*T) additive bias: 0 where same-batch & causal, -1e30 elsewhere.
    Rows are ordered batch-major (row = b*T + t), matching the flattened x."""
    pos = jnp.tile(jnp.arange(T, dtype=jnp.int32), B)        # (B*T,)
    bid = jnp.repeat(jnp.arange(B, dtype=jnp.int32), T)      # (B*T,)
    allowed = (bid[:, None] == bid[None, :]) & (pos[:, None] >= pos[None, :])
    return jnp.where(allowed, 0.0, -1e30).astype(jnp.float32)


def clip_caption_forward(tokens, prefix, params, mask=None, labels=None):
    B, Ttok = tokens.shape
    T = PREFIX_LEN + Ttok
    # embedding_text = self.gpt.transformer.wte(tokens)   (gather -> plain-JAX glue)
    embedding_text = jnp.take(params["wte"], tokens, axis=0)           # (B, Ttok, D)
    # prefix_projections = self.clip_project(prefix).view(-1, L, D)
    proj = clip_project(prefix, params["clip_project"])                # (B, L*D)
    prefix_proj = proj.reshape(B, PREFIX_LEN, D_MODEL)
    # embedding_cat = cat((prefix_projections, embedding_text), dim=1) + wpe
    embedding_cat = jnp.concatenate([prefix_proj, embedding_text], axis=1)
    x = embedding_cat + params["wpe"][:T][None, :, :]
    x2 = x.reshape(B * T, D_MODEL)                                     # lane/sublane-friendly 2-D
    attn_bias = _build_attn_bias(B, T)                                 # hoisted causal mask
    # TODO(synk): attention_mask handling and labels -> shifted cross-entropy loss
    #             (forward is exercised with mask=None, labels=None).
    logits2 = gpt2_fused(x2, attn_bias, params)                        # (B*T, VOCAB)
    return logits2.reshape(B, T, VOCAB)


# ------------------------------ main --------------------------------------------

if __name__ == "__main__":
    key = jax.random.PRNGKey(0)
    k_par, k_tok, k_pre = jax.random.split(key, 3)

    params = init_params(k_par)

    batch, seq = 2, 8
    tokens = jax.random.randint(k_tok, (batch, seq), 0, VOCAB, dtype=jnp.int32)
    prefix = jax.random.normal(k_pre, (batch, PREFIX_SIZE), dtype=jnp.float32)

    forward = jax.jit(clip_caption_forward)
    logits = jax.block_until_ready(forward(tokens, prefix, params))

    assert logits.shape == (batch, PREFIX_LEN + seq, VOCAB), logits.shape
    assert bool(jnp.all(jnp.isfinite(logits)))
    print("KERNEL_OK")
</pallas_src>

<mosaic_0001>
module attributes {stable_mosaic.version = 11 : i64} {
  func.func @clip_project_kernel(%arg0: memref<2x64xf32, #tpu.memory_space<vmem>>, %arg1: memref<64x160xbf16, #tpu.memory_space<vmem>>, %arg2: memref<1x160xf32, #tpu.memory_space<vmem>>, %arg3: memref<160x320xbf16, #tpu.memory_space<vmem>>, %arg4: memref<1x320xf32, #tpu.memory_space<vmem>>, %arg5: memref<2x320xf32, #tpu.memory_space<vmem>>) attributes {dimension_semantics = [], scalar_prefetch = 0 : i64, scratch_operands = 0 : i64, tpu.core_type = #tpu.core_type<tc>} {
    %c0 = arith.constant 0 : index
    %c0_0 = arith.constant 0 : index
    %0 = vector.load %arg0[%c0, %c0_0] : memref<2x64xf32, #tpu.memory_space<vmem>>, vector<2x64xf32>
    %1 = arith.truncf %0 : vector<2x64xf32> to vector<2x64xbf16>
    %c0_1 = arith.constant 0 : index
    %c0_2 = arith.constant 0 : index
    %2 = vector.load %arg1[%c0_1, %c0_2] : memref<64x160xbf16, #tpu.memory_space<vmem>>, vector<64x160xbf16>
    %cst = arith.constant dense<0.000000e+00> : vector<2x160xf32>
    %3 = tpu.matmul %1, %2, %cst {dimension_numbers = #tpu.dot_dimension_numbers<[1], [0], [0], [1], [0, 0, 1, 1], [], []>} : vector<2x64xbf16>, vector<64x160xbf16>, vector<2x160xf32> -> vector<2x160xf32>
    %c0_3 = arith.constant 0 : index
    %c0_4 = arith.constant 0 : index
    %4 = vector.load %arg2[%c0_3, %c0_4] : memref<1x160xf32, #tpu.memory_space<vmem>>, vector<1x160xf32>
    %5 = vector.broadcast %4 : vector<1x160xf32> to vector<2x160xf32>
    %6 = arith.addf %3, %5 : vector<2x160xf32>
    %7 = math.tanh %6 : vector<2x160xf32>
    %8 = arith.truncf %7 : vector<2x160xf32> to vector<2x160xbf16>
    %c0_5 = arith.constant 0 : index
    %c0_6 = arith.constant 0 : index
    %9 = vector.load %arg3[%c0_5, %c0_6] : memref<160x320xbf16, #tpu.memory_space<vmem>>, vector<160x320xbf16>
    %cst_7 = arith.constant dense<0.000000e+00> : vector<2x320xf32>
    %10 = tpu.matmul %8, %9, %cst_7 {dimension_numbers = #tpu.dot_dimension_numbers<[1], [0], [0], [1], [0, 0, 1, 1], [], []>} : vector<2x160xbf16>, vector<160x320xbf16>, vector<2x320xf32> -> vector<2x320xf32>
    %c0_8 = arith.constant 0 : index
    %c0_9 = arith.constant 0 : index
    %11 = vector.load %arg4[%c0_8, %c0_9] : memref<1x320xf32, #tpu.memory_space<vmem>>, vector<1x320xf32>
    %12 = vector.broadcast %11 : vector<1x320xf32> to vector<2x320xf32>
    %13 = arith.addf %10, %12 : vector<2x320xf32>
    %c0_10 = arith.constant 0 : index
    %c0_11 = arith.constant 0 : index
    %14 = vector.load %arg5[%c0_10, %c0_11] : memref<2x320xf32, #tpu.memory_space<vmem>>, vector<2x320xf32>
    tpu.vector_store %arg5[%c0_10, %c0_11], %13 {strides = array<i32>} : memref<2x320xf32, #tpu.memory_space<vmem>>, vector<2x320xf32>,
    return
  }
}

module attributes {stable_mosaic.version = 11 : i64} {
  func.func @gpt2_fused_kernel(%arg0: memref<36x32xf32, #tpu.memory_space<vmem>>, %arg1: memref<36x36xf32, #tpu.memory_space<vmem>>, %arg2: memref<2x1x32xf32, #tpu.memory_space<vmem>>, %arg3: memref<2x1x32xf32, #tpu.memory_space<vmem>>, %arg4: memref<2x32x96xbf16, #tpu.memory_space<vmem>>, %arg5: memref<2x1x96xf32, #tpu.memory_space<vmem>>, %arg6: memref<2x32x32xbf16, #tpu.memory_space<vmem>>, %arg7: memref<2x1x32xf32, #tpu.memory_space<vmem>>, %arg8: memref<2x1x32xf32, #tpu.memory_space<vmem>>, %arg9: memref<2x1x32xf32, #tpu.memory_space<vmem>>, %arg10: memref<2x32x128xbf16, #tpu.memory_space<vmem>>, %arg11: memref<2x1x128xf32, #tpu.memory_space<vmem>>, %arg12: memref<2x128x32xbf16, #tpu.memory_space<vmem>>, %arg13: memref<2x1x32xf32, #tpu.memory_space<vmem>>, %arg14: memref<1x32xf32, #tpu.memory_space<vmem>>, %arg15: memref<1x32xf32, #tpu.memory_space<vmem>>, %arg16: memref<32x128xbf16, #tpu.memory_space<vmem>>, %arg17: memref<36x128xf32, #tpu.memory_space<vmem>>) attributes {dimension_semantics = [], scalar_prefetch = 0 : i64, scratch_operands = 0 : i64, tpu.core_type = #tpu.core_type<tc>} {
    %c0 = arith.constant 0 : index
    %c0_0 = arith.constant 0 : index
    %0 = vector.load %arg0[%c0, %c0_0] : memref<36x32xf32, #tpu.memory_space<vmem>>, vector<36x32xf32>
    %c0_1 = arith.constant 0 : index
    %c0_2 = arith.constant 0 : index
    %1 = vector.load %arg1[%c0_1, %c0_2] : memref<36x36xf32, #tpu.memory_space<vmem>>, vector<36x36xf32>
    %c0_3 = arith.constant 0 : index
    %c0_4 = arith.constant 0 : index
    %c0_5 = arith.constant 0 : index
    %2 = vector.load %arg2[%c0_3, %c0_4, %c0_5] : memref<2x1x32xf32, #tpu.memory_space<vmem>>, vector<1x1x32xf32>
    %3 = vector.shape_cast %2 : vector<1x1x32xf32> to vector<1x32xf32>
    %c0_6 = arith.constant 0 : index
    %c0_7 = arith.constant 0 : index
    %c0_8 = arith.constant 0 : index
    %4 = vector.load %arg3[%c0_6, %c0_7, %c0_8] : memref<2x1x32xf32, #tpu.memory_space<vmem>>, vector<1x1x32xf32>
    %5 = vector.shape_cast %4 : vector<1x1x32xf32> to vector<1x32xf32>
    %cst = arith.constant dense<0.000000e+00> : vector<36xf32>
    %6 = vector.multi_reduction <add>, %0, %cst [1] : vector<36x32xf32> to vector<36xf32>
    %7 = vector.shape_cast %6 : vector<36xf32> to vector<36x1xf32>
    %cst_9 = arith.constant 3.200000e+01 : f32
    %8 = vector.broadcast %cst_9 : f32 to vector<36x1xf32>
    %9 = arith.divf %7, %8 : vector<36x1xf32>
    %10 = vector.broadcast %9 : vector<36x1xf32> to vector<36x32xf32>
    %11 = arith.subf %0, %10 : vector<36x32xf32>
    %12 = arith.mulf %11, %11 : vector<36x32xf32>
    %cst_10 = arith.constant dense<0.000000e+00> : vector<36xf32>
    %13 = vector.multi_reduction <add>, %12, %cst_10 [1] : vector<36x32xf32> to vector<36xf32>
    %14 = vector.shape_cast %13 : vector<36xf32> to vector<36x1xf32>
    %cst_11 = arith.constant 3.200000e+01 : f32
    %15 = vector.broadcast %cst_11 : f32 to vector<36x1xf32>
    %16 = arith.divf %14, %15 : vector<36x1xf32>
    %17 = vector.broadcast %9 : vector<36x1xf32> to vector<36x32xf32>
    %18 = arith.subf %0, %17 : vector<36x32xf32>
    %cst_12 = arith.constant 9.99999974E-6 : f32
    %19 = vector.broadcast %cst_12 : f32 to vector<36x1xf32>
    %20 = arith.addf %16, %19 : vector<36x1xf32>
    %21 = math.rsqrt %20 : vector<36x1xf32>
    %22 = vector.broadcast %21 : vector<36x1xf32> to vector<36x32xf32>
    %23 = arith.mulf %18, %22 : vector<36x32xf32>
    %24 = vector.broadcast %3 : vector<1x32xf32> to vector<36x32xf32>
    %25 = arith.mulf %23, %24 : vector<36x32xf32>
    %26 = vector.broadcast %5 : vector<1x32xf32> to vector<36x32xf32>
    %27 = arith.addf %25, %26 : vector<36x32xf32>
    %28 = arith.truncf %27 : vector<36x32xf32> to vector<36x32xbf16>
    %c0_13 = arith.constant 0 : index
    %c0_14 = arith.constant 0 : index
    %c0_15 = arith.constant 0 : index
    %29 = vector.load %arg4[%c0_13, %c0_14, %c0_15] : memref<2x32x96xbf16, #tpu.memory_space<vmem>>, vector<1x32x96xbf16>
    %30 = vector.shape_cast %29 : vector<1x32x96xbf16> to vector<32x96xbf16>
    %cst_16 = arith.constant dense<0.000000e+00> : vector<36x96xf32>
    %31 = tpu.matmul %28, %30, %cst_16 {dimension_numbers = #tpu.dot_dimension_numbers<[1], [0], [0], [1], [0, 0, 1, 1], [], []>} : vector<36x32xbf16>, vector<32x96xbf16>, vector<36x96xf32> -> vector<36x96xf32>
    %c0_17 = arith.constant 0 : index
    %c0_18 = arith.constant 0 : index
    %c0_19 = arith.constant 0 : index
    %32 = vector.load %arg5[%c0_17, %c0_18, %c0_19] : memref<2x1x96xf32, #tpu.memory_space<vmem>>, vector<1x1x96xf32>
    %33 = vector.shape_cast %32 : vector<1x1x96xf32> to vector<1x96xf32>
    %34 = vector.broadcast %33 : vector<1x96xf32> to vector<36x96xf32>
    %35 = arith.addf %31, %34 : vector<36x96xf32>
    %36 = vector.extract_strided_slice %35 {offsets = [0, 0], sizes = [36, 32], strides = [1, 1]} : vector<36x96xf32> to vector<36x32xf32>
    %cst_20 = arith.constant 0.353553385 : f32
    %37 = vector.broadcast %cst_20 : f32 to vector<36x32xf32>
    %38 = arith.mulf %36, %37 : vector<36x32xf32>
    %39 = arith.truncf %38 : vector<36x32xf32> to vector<36x32xbf16>
    %40 = vector.extract_strided_slice %35 {offsets = [0, 32], sizes = [36, 32], strides = [1, 1]} : vector<36x96xf32> to vector<36x32xf32>
    %41 = arith.truncf %40 : vector<36x32xf32> to vector<36x32xbf16>
    %42 = vector.extract_strided_slice %35 {offsets = [0, 64], sizes = [36, 32], strides = [1, 1]} : vector<36x96xf32> to vector<36x32xf32>
    %43 = arith.truncf %42 : vector<36x32xf32> to vector<36x32xbf16>
    %44 = vector.extract_strided_slice %39 {offsets = [0, 0], sizes = [36, 8], strides = [1, 1]} : vector<36x32xbf16> to vector<36x8xbf16>
    %45 = vector.extract_strided_slice %41 {offsets = [0, 0], sizes = [36, 8], strides = [1, 1]} : vector<36x32xbf16> to vector<36x8xbf16>
    %cst_21 = arith.constant dense<0.000000e+00> : vector<36x36xf32>
    %46 = tpu.matmul %44, %45, %cst_21 {dimension_numbers = #tpu.dot_dimension_numbers<[1], [1], [0], [0], [0, 0, 1, 0], [], []>} : vector<36x8xbf16>, vector<36x8xbf16>, vector<36x36xf32> -> vector<36x36xf32>
    %47 = arith.addf %46, %1 : vector<36x36xf32>
    %cst_22 = arith.constant dense<0xFF800000> : vector<36xf32>
    %48 = vector.multi_reduction <maximumf>, %47, %cst_22 [1] : vector<36x36xf32> to vector<36xf32>
    %49 = vector.shape_cast %48 : vector<36xf32> to vector<36x1xf32>
    %50 = vector.broadcast %49 : vector<36x1xf32> to vector<36x36xf32>
    %51 = arith.subf %47, %50 : vector<36x36xf32>
    %52 = math.exp %51 : vector<36x36xf32>
    %cst_23 = arith.constant dense<0.000000e+00> : vector<36xf32>
    %53 = vector.multi_reduction <add>, %52, %cst_23 [1] : vector<36x36xf32> to vector<36xf32>
    %54 = vector.shape_cast %53 : vector<36xf32> to vector<36x1xf32>
    %55 = tpu.reciprocal %54 {approx = true} : vector<36x1xf32> -> vector<36x1xf32>
    %56 = vector.broadcast %55 : vector<36x1xf32> to vector<36x36xf32>
    %57 = arith.mulf %52, %56 : vector<36x36xf32>
    %58 = arith.truncf %57 : vector<36x36xf32> to vector<36x36xbf16>
    %59 = vector.extract_strided_slice %43 {offsets = [0, 0], sizes = [36, 8], strides = [1, 1]} : vector<36x32xbf16> to vector<36x8xbf16>
    %cst_24 = arith.constant dense<0.000000e+00> : vector<36x8xf32>
    %60 = tpu.matmul %58, %59, %cst_24 {dimension_numbers = #tpu.dot_dimension_numbers<[1], [0], [0], [1], [0, 0, 1, 1], [], []>} : vector<36x36xbf16>, vector<36x8xbf16>, vector<36x8xf32> -> vector<36x8xf32>
    %61 = vector.extract_strided_slice %39 {offsets = [0, 8], sizes = [36, 8], strides = [1, 1]} : vector<36x32xbf16> to vector<36x8xbf16>
    %62 = vector.extract_strided_slice %41 {offsets = [0, 8], sizes = [36, 8], strides = [1, 1]} : vector<36x32xbf16> to vector<36x8xbf16>
    %cst_25 = arith.constant dense<0.000000e+00> : vector<36x36xf32>
    %63 = tpu.matmul %61, %62, %cst_25 {dimension_numbers = #tpu.dot_dimension_numbers<[1], [1], [0], [0], [0, 0, 1, 0], [], []>} : vector<36x8xbf16>, vector<36x8xbf16>, vector<36x36xf32> -> vector<36x36xf32>
    %64 = arith.addf %63, %1 : vector<36x36xf32>
    %cst_26 = arith.constant dense<0xFF800000> : vector<36xf32>
    %65 = vector.multi_reduction <maximumf>, %64, %cst_26 [1] : vector<36x36xf32> to vector<36xf32>
    %66 = vector.shape_cast %65 : vector<36xf32> to vector<36x1xf32>
    %67 = vector.broadcast %66 : vector<36x1xf32> to vector<36x36xf32>
    %68 = arith.subf %64, %67 : vector<36x36xf32>
    %69 = math.exp %68 : vector<36x36xf32>
    %cst_27 = arith.constant dense<0.000000e+00> : vector<36xf32>
    %70 = vector.multi_reduction <add>, %69, %cst_27 [1] : vector<36x36xf32> to vector<36xf32>
    %71 = vector.shape_cast %70 : vector<36xf32> to vector<36x1xf32>
    %72 = tpu.reciprocal %71 {approx = true} : vector<36x1xf32> -> vector<36x1xf32>
    %73 = vector.broadcast %72 : vector<36x1xf32> to vector<36x36xf32>
    %74 = arith.mulf %69, %73 : vector<36x36xf32>
    %75 = arith.truncf %74 : vector<36x36xf32> to vector<36x36xbf16>
    %76 = vector.extract_strided_slice %43 {offsets = [0, 8], sizes = [36, 8], strides = [1, 1]} : vector<36x32xbf16> to vector<36x8xbf16>
    %cst_28 = arith.constant dense<0.000000e+00> : vector<36x8xf32>
    %77 = tpu.matmul %75, %76, %cst_28 {dimension_numbers = #tpu.dot_dimension_numbers<[1], [0], [0], [1], [0, 0, 1, 1], [], []>} : vector<36x36xbf16>, vector<36x8xbf16>, vector<36x8xf32> -> vector<36x8xf32>
    %78 = vector.extract_strided_slice %39 {offsets = [0, 16], sizes = [36, 8], strides = [1, 1]} : vector<36x32xbf16> to vector<36x8xbf16>
    %79 = vector.extract_strided_slice %41 {offsets = [0, 16], sizes = [36, 8], strides = [1, 1]} : vector<36x32xbf16> to vector<36x8xbf16>
    %cst_29 = arith.constant dense<0.000000e+00> : vector<36x36xf32>
    %80 = tpu.matmul %78, %79, %cst_29 {dimension_numbers = #tpu.dot_dimension_numbers<[1], [1], [0], [0], [0, 0, 1, 0], [], []>} : vector<36x8xbf16>, vector<36x8xbf16>, vector<36x36xf32> -> vector<36x36xf32>
    %81 = arith.addf %80, %1 : vector<36x36xf32>
    %cst_30 = arith.constant dense<0xFF800000> : vector<36xf32>
    %82 = vector.multi_reduction <maximumf>, %81, %cst_30 [1] : vector<36x36xf32> to vector<36xf32>
    %83 = vector.shape_cast %82 : vector<36xf32> to vector<36x1xf32>
    %84 = vector.broadcast %83 : vector<36x1xf32> to vector<36x36xf32>
    %85 = arith.subf %81, %84 : vector<36x36xf32>
    %86 = math.exp %85 : vector<36x36xf32>
    %cst_31 = arith.constant dense<0.000000e+00> : vector<36xf32>
    %87 = vector.multi_reduction <add>, %86, %cst_31 [1] : vector<36x36xf32> to vector<36xf32>
    %88 = vector.shape_cast %87 : vector<36xf32> to vector<36x1xf32>
    %89 = tpu.reciprocal %88 {approx = true} : vector<36x1xf32> -> vector<36x1xf32>
    %90 = vector.broadcast %89 : vector<36x1xf32> to vector<36x36xf32>
    %91 = arith.mulf %86, %90 : vector<36x36xf32>
    %92 = arith.truncf %91 : vector<36x36xf32> to vector<36x36xbf16>
    %93 = vector.extract_strided_slice %43 {offsets = [0, 16], sizes = [36, 8], strides = [1, 1]} : vector<36x32xbf16> to vector<36x8xbf16>
    %cst_32 = arith.constant dense<0.000000e+00> : vector<36x8xf32>
    %94 = tpu.matmul %92, %93, %cst_32 {dimension_numbers = #tpu.dot_dimension_numbers<[1], [0], [0], [1], [0, 0, 1, 1], [], []>} : vector<36x36xbf16>, vector<36x8xbf16>, vector<36x8xf32> -> vector<36x8xf32>
    %95 = vector.extract_strided_slice %39 {offsets = [0, 24], sizes = [36, 8], strides = [1, 1]} : vector<36x32xbf16> to vector<36x8xbf16>
    %96 = vector.extract_strided_slice %41 {offsets = [0, 24], sizes = [36, 8], strides = [1, 1]} : vector<36x32xbf16> to vector<36x8xbf16>
    %cst_33 = arith.constant dense<0.000000e+00> : vector<36x36xf32>
    %97 = tpu.matmul %95, %96, %cst_33 {dimension_numbers = #tpu.dot_dimension_numbers<[1], [1], [0], [0], [0, 0, 1, 0], [], []>} : vector<36x8xbf16>, vector<36x8xbf16>, vector<36x36xf32> -> vector<36x36xf32>
    %98 = arith.addf %97, %1 : vector<36x36xf32>
    %cst_34 = arith.constant dense<0xFF800000> : vector<36xf32>
    %99 = vector.multi_reduction <maximumf>, %98, %cst_34 [1] : vector<36x36xf32> to vector<36xf32>
    %100 = vector.shape_cast %99 : vector<36xf32> to vector<36x1xf32>
    %101 = vector.broadcast %100 : vector<36x1xf32> to vector<36x36xf32>
    %102 = arith.subf %98, %101 : vector<36x36xf32>
    %103 = math.exp %102 : vector<36x36xf32>
    %cst_35 = arith.constant dense<0.000000e+00> : vector<36xf32>
    %104 = vector.multi_reduction <add>, %103, %cst_35 [1] : vector<36x36xf32> to vector<36xf32>
    %105 = vector.shape_cast %104 : vector<36xf32> to vector<36x1xf32>
    %106 = tpu.reciprocal %105 {approx = true} : vector<36x1xf32> -> vector<36x1xf32>
    %107 = vector.broadcast %106 : vector<36x1xf32> to vector<36x36xf32>
    %108 = arith.mulf %103, %107 : vector<36x36xf32>
    %109 = arith.truncf %108 : vector<36x36xf32> to vector<36x36xbf16>
    %110 = vector.extract_strided_slice %43 {offsets = [0, 24], sizes = [36, 8], strides = [1, 1]} : vector<36x32xbf16> to vector<36x8xbf16>
    %cst_36 = arith.constant dense<0.000000e+00> : vector<36x8xf32>
    %111 = tpu.matmul %109, %110, %cst_36 {dimension_numbers = #tpu.dot_dimension_numbers<[1], [0], [0], [1], [0, 0, 1, 1], [], []>} : vector<36x36xbf16>, vector<36x8xbf16>, vector<36x8xf32> -> vector<36x8xf32>
    %112 = tpu.concatenate %60, %77, %94, %111 in 1 : vector<36x8xf32>, vector<36x8xf32>, vector<36x8xf32>, vector<36x8xf32> -> vector<36x32xf32>
    %113 = arith.truncf %112 : vector<36x32xf32> to vector<36x32xbf16>
    %c0_37 = arith.constant 0 : index
    %c0_38 = arith.constant 0 : index
    %c0_39 = arith.constant 0 : index
    %114 = vector.load %arg6[%c0_37, %c0_38, %c0_39] : memref<2x32x32xbf16, #tpu.memory_space<vmem>>, vector<1x32x32xbf16>
    %115 = vector.shape_cast %114 : vector<1x32x32xbf16> to vector<32x32xbf16>
    %cst_40 = arith.constant dense<0.000000e+00> : vector<36x32xf32>
    %116 = tpu.matmul %113, %115, %cst_40 {dimension_numbers = #tpu.dot_dimension_numbers<[1], [0], [0], [1], [0, 0, 1, 1], [], []>} : vector<36x32xbf16>, vector<32x32xbf16>, vector<36x32xf32> -> vector<36x32xf32>
    %c0_41 = arith.constant 0 : index
    %c0_42 = arith.constant 0 : index
    %c0_43 = arith.constant 0 : index
    %117 = vector.load %arg7[%c0_41, %c0_42, %c0_43] : memref<2x1x32xf32, #tpu.memory_space<vmem>>, vector<1x1x32xf32>
    %118 = vector.shape_cast %117 : vector<1x1x32xf32> to vector<1x32xf32>
    %119 = vector.broadcast %118 : vector<1x32xf32> to vector<36x32xf32>
    %120 = arith.addf %116, %119 : vector<36x32xf32>
    %121 = arith.addf %0, %120 : vector<36x32xf32>
    %c0_44 = arith.constant 0 : index
    %c0_45 = arith.constant 0 : index
    %c0_46 = arith.constant 0 : index
    %122 = vector.load %arg8[%c0_44, %c0_45, %c0_46] : memref<2x1x32xf32, #tpu.memory_space<vmem>>, vector<1x1x32xf32>
    %123 = vector.shape_cast %122 : vector<1x1x32xf32> to vector<1x32xf32>
    %c0_47 = arith.constant 0 : index
    %c0_48 = arith.constant 0 : index
    %c0_49 = arith.constant 0 : index
    %124 = vector.load %arg9[%c0_47, %c0_48, %c0_49] : memref<2x1x32xf32, #tpu.memory_space<vmem>>, vector<1x1x32xf32>
    %125 = vector.shape_cast %124 : vector<1x1x32xf32> to vector<1x32xf32>
    %cst_50 = arith.constant dense<0.000000e+00> : vector<36xf32>
    %126 = vector.multi_reduction <add>, %121, %cst_50 [1] : vector<36x32xf32> to vector<36xf32>
    %127 = vector.shape_cast %126 : vector<36xf32> to vector<36x1xf32>
    %cst_51 = arith.constant 3.200000e+01 : f32
    %128 = vector.broadcast %cst_51 : f32 to vector<36x1xf32>
    %129 = arith.divf %127, %128 : vector<36x1xf32>
    %130 = vector.broadcast %129 : vector<36x1xf32> to vector<36x32xf32>
    %131 = arith.subf %121, %130 : vector<36x32xf32>
    %132 = arith.mulf %131, %131 : vector<36x32xf32>
    %cst_52 = arith.constant dense<0.000000e+00> : vector<36xf32>
    %133 = vector.multi_reduction <add>, %132, %cst_52 [1] : vector<36x32xf32> to vector<36xf32>
    %134 = vector.shape_cast %133 : vector<36xf32> to vector<36x1xf32>
    %cst_53 = arith.constant 3.200000e+01 : f32
    %135 = vector.broadcast %cst_53 : f32 to vector<36x1xf32>
    %136 = arith.divf %134, %135 : vector<36x1xf32>
    %137 = vector.broadcast %129 : vector<36x1xf32> to vector<36x32xf32>
    %138 = arith.subf %121, %137 : vector<36x32xf32>
    %cst_54 = arith.constant 9.99999974E-6 : f32
    %139 = vector.broadcast %cst_54 : f32 to vector<36x1xf32>
    %140 = arith.addf %136, %139 : vector<36x1xf32>
    %141 = math.rsqrt %140 : vector<36x1xf32>
    %142 = vector.broadcast %141 : vector<36x1xf32> to vector<36x32xf32>
    %143 = arith.mulf %138, %142 : vector<36x32xf32>
    %144 = vector.broadcast %123 : vector<1x32xf32> to vector<36x32xf32>
    %145 = arith.mulf %143, %144 : vector<36x32xf32>
    %146 = vector.broadcast %125 : vector<1x32xf32> to vector<36x32xf32>
    %147 = arith.addf %145, %146 : vector<36x32xf32>
    %148 = arith.truncf %147 : vector<36x32xf32> to vector<36x32xbf16>
    %c0_55 = arith.constant 0 : index
    %c0_56 = arith.constant 0 : index
    %c0_57 = arith.constant 0 : index
    %149 = vector.load %arg10[%c0_55, %c0_56, %c0_57] : memref<2x32x128xbf16, #tpu.memory_space<vmem>>, vector<1x32x128xbf16>
    %150 = vector.shape_cast %149 : vector<1x32x128xbf16> to vector<32x128xbf16>
    %cst_58 = arith.constant dense<0.000000e+00> : vector<36x128xf32>
    %151 = tpu.matmul %148, %150, %cst_58 {dimension_numbers = #tpu.dot_dimension_numbers<[1], [0], [0], [1], [0, 0, 1, 1], [], []>} : vector<36x32xbf16>, vector<32x128xbf16>, vector<36x128xf32> -> vector<36x128xf32>
    %c0_59 = arith.constant 0 : index
    %c0_60 = arith.constant 0 : index
    %c0_61 = arith.constant 0 : index
    %152 = vector.load %arg11[%c0_59, %c0_60, %c0_61] : memref<2x1x128xf32, #tpu.memory_space<vmem>>, vector<1x1x128xf32>
    %153 = vector.shape_cast %152 : vector<1x1x128xf32> to vector<1x128xf32>
    %154 = vector.broadcast %153 : vector<1x128xf32> to vector<36x128xf32>
    %155 = arith.addf %151, %154 : vector<36x128xf32>
    %cst_62 = arith.constant 0.636619746 : f32
    %156 = math.sqrt %cst_62 : f32
    %cst_63 = arith.constant 5.000000e-01 : f32
    %157 = vector.broadcast %cst_63 : f32 to vector<36x128xf32>
    %158 = arith.mulf %157, %155 : vector<36x128xf32>
    %cst_64 = arith.constant 4.471500e-02 : f32
    %159 = vector.broadcast %cst_64 : f32 to vector<36x128xf32>
    %160 = arith.mulf %159, %155 : vector<36x128xf32>
    %161 = arith.mulf %160, %155 : vector<36x128xf32>
    %162 = arith.mulf %161, %155 : vector<36x128xf32>
    %163 = arith.addf %155, %162 : vector<36x128xf32>
    %164 = vector.broadcast %156 : f32 to vector<36x128xf32>
    %165 = arith.mulf %164, %163 : vector<36x128xf32>
    %166 = math.tanh %165 : vector<36x128xf32>
    %cst_65 = arith.constant 1.000000e+00 : f32
    %167 = vector.broadcast %cst_65 : f32 to vector<36x128xf32>
    %168 = arith.addf %167, %166 : vector<36x128xf32>
    %169 = arith.mulf %158, %168 : vector<36x128xf32>
    %170 = arith.truncf %169 : vector<36x128xf32> to vector<36x128xbf16>
    %c0_66 = arith.constant 0 : index
    %c0_67 = arith.constant 0 : index
    %c0_68 = arith.constant 0 : index
    %171 = vector.load %arg12[%c0_66, %c0_67, %c0_68] : memref<2x128x32xbf16, #tpu.memory_space<vmem>>, vector<1x128x32xbf16>
    %172 = vector.shape_cast %171 : vector<1x128x32xbf16> to vector<128x32xbf16>
    %cst_69 = arith.constant dense<0.000000e+00> : vector<36x32xf32>
    %173 = tpu.matmul %170, %172, %cst_69 {dimension_numbers = #tpu.dot_dimension_numbers<[1], [0], [0], [1], [0, 0, 1, 1], [], []>} : vector<36x128xbf16>, vector<128x32xbf16>, vector<36x32xf32> -> vector<36x32xf32>
    %c0_70 = arith.constant 0 : index
    %c0_71 = arith.constant 0 : index
    %c0_72 = arith.constant 0 : index
    %174 = vector.load %arg13[%c0_70, %c0_71, %c0_72] : memref<2x1x32xf32, #tpu.memory_space<vmem>>, vector<1x1x32xf32>
    %175 = vector.shape_cast %174 : vector<1x1x32xf32> to vector<1x32xf32>
    %176 = vector.broadcast %175 : vector<1x32xf32> to vector<36x32xf32>
    %177 = arith.addf %173, %176 : vector<36x32xf32>
    %178 = arith.addf %121, %177 : vector<36x32xf32>
    %c1 = arith.constant 1 : index
    %c0_73 = arith.constant 0 : index
    %c0_74 = arith.constant 0 : index
    %179 = vector.load %arg2[%c1, %c0_73, %c0_74] : memref<2x1x32xf32, #tpu.memory_space<vmem>>, vector<1x1x32xf32>
    %180 = vector.shape_cast %179 : vector<1x1x32xf32> to vector<1x32xf32>
    %c1_75 = arith.constant 1 : index
    %c0_76 = arith.constant 0 : index
    %c0_77 = arith.constant 0 : index
    %181 = vector.load %arg3[%c1_75, %c0_76, %c0_77] : memref<2x1x32xf32, #tpu.memory_space<vmem>>, vector<1x1x32xf32>
    %182 = vector.shape_cast %181 : vector<1x1x32xf32> to vector<1x32xf32>
    %cst_78 = arith.constant dense<0.000000e+00> : vector<36xf32>
    %183 = vector.multi_reduction <add>, %178, %cst_78 [1] : vector<36x32xf32> to vector<36xf32>
    %184 = vector.shape_cast %183 : vector<36xf32> to vector<36x1xf32>
    %cst_79 = arith.constant 3.200000e+01 : f32
    %185 = vector.broadcast %cst_79 : f32 to vector<36x1xf32>
    %186 = arith.divf %184, %185 : vector<36x1xf32>
    %187 = vector.broadcast %186 : vector<36x1xf32> to vector<36x32xf32>
    %188 = arith.subf %178, %187 : vector<36x32xf32>
    %189 = arith.mulf %188, %188 : vector<36x32xf32>
    %cst_80 = arith.constant dense<0.000000e+00> : vector<36xf32>
    %190 = vector.multi_reduction <add>, %189, %cst_80 [1] : vector<36x32xf32> to vector<36xf32>
    %191 = vector.shape_cast %190 : vector<36xf32> to vector<36x1xf32>
    %cst_81 = arith.constant 3.200000e+01 : f32
    %192 = vector.broadcast %cst_81 : f32 to vector<36x1xf32>
    %193 = arith.divf %191, %192 : vector<36x1xf32>
    %194 = vector.broadcast %186 : vector<36x1xf32> to vector<36x32xf32>
    %195 = arith.subf %178, %194 : vector<36x32xf32>
    %cst_82 = arith.constant 9.99999974E-6 : f32
    %196 = vector.broadcast %cst_82 : f32 to vector<36x1xf32>
    %197 = arith.addf %193, %196 : vector<36x1xf32>
    %198 = math.rsqrt %197 : vector<36x1xf32>
    %199 = vector.broadcast %198 : vector<36x1xf32> to vector<36x32xf32>
    %200 = arith.mulf %195, %199 : vector<36x32xf32>
    %201 = vector.broadcast %180 : vector<1x32xf32> to vector<36x32xf32>
    %202 = arith.mulf %200, %201 : vector<36x32xf32>
    %203 = vector.broadcast %182 : vector<1x32xf32> to vector<36x32xf32>
    %204 = arith.addf %202, %203 : vector<36x32xf32>
    %205 = arith.truncf %204 : vector<36x32xf32> to vector<36x32xbf16>
    %c1_83 = arith.constant 1 : index
    %c0_84 = arith.constant 0 : index
    %c0_85 = arith.constant 0 : index
    %206 = vector.load %arg4[%c1_83, %c0_84, %c0_85] : memref<2x32x96xbf16, #tpu.memory_space<vmem>>, vector<1x32x96xbf16>
    %207 = vector.shape_cast %206 : vector<1x32x96xbf16> to vector<32x96xbf16>
    %cst_86 = arith.constant dense<0.000000e+00> : vector<36x96xf32>
    %208 = tpu.matmul %205, %207, %cst_86 {dimension_numbers = #tpu.dot_dimension_numbers<[1], [0], [0], [1], [0, 0, 1, 1], [], []>} : vector<36x32xbf16>, vector<32x96xbf16>, vector<36x96xf32> -> vector<36x96xf32>
    %c1_87 = arith.constant 1 : index
    %c0_88 = arith.constant 0 : index
    %c0_89 = arith.constant 0 : index
    %209 = vector.load %arg5[%c1_87, %c0_88, %c0_89] : memref<2x1x96xf32, #tpu.memory_space<vmem>>, vector<1x1x96xf32>
    %210 = vector.shape_cast %209 : vector<1x1x96xf32> to vector<1x96xf32>
    %211 = vector.broadcast %210 : vector<1x96xf32> to vector<36x96xf32>
    %212 = arith.addf %208, %211 : vector<36x96xf32>
    %213 = vector.extract_strided_slice %212 {offsets = [0, 0], sizes = [36, 32], strides = [1, 1]} : vector<36x96xf32> to vector<36x32xf32>
    %cst_90 = arith.constant 0.353553385 : f32
    %214 = vector.broadcast %cst_90 : f32 to vector<36x32xf32>
    %215 = arith.mulf %213, %214 : vector<36x32xf32>
    %216 = arith.truncf %215 : vector<36x32xf32> to vector<36x32xbf16>
    %217 = vector.extract_strided_slice %212 {offsets = [0, 32], sizes = [36, 32], strides = [1, 1]} : vector<36x96xf32> to vector<36x32xf32>
    %218 = arith.truncf %217 : vector<36x32xf32> to vector<36x32xbf16>
    %219 = vector.extract_strided_slice %212 {offsets = [0, 64], sizes = [36, 32], strides = [1, 1]} : vector<36x96xf32> to vector<36x32xf32>
    %220 = arith.truncf %219 : vector<36x32xf32> to vector<36x32xbf16>
    %221 = vector.extract_strided_slice %216 {offsets = [0, 0], sizes = [36, 8], strides = [1, 1]} : vector<36x32xbf16> to vector<36x8xbf16>
    %222 = vector.extract_strided_slice %218 {offsets = [0, 0], sizes = [36, 8], strides = [1, 1]} : vector<36x32xbf16> to vector<36x8xbf16>
    %cst_91 = arith.constant dense<0.000000e+00> : vector<36x36xf32>
    %223 = tpu.matmul %221, %222, %cst_91 {dimension_numbers = #tpu.dot_dimension_numbers<[1], [1], [0], [0], [0, 0, 1, 0], [], []>} : vector<36x8xbf16>, vector<36x8xbf16>, vector<36x36xf32> -> vector<36x36xf32>
    %224 = arith.addf %223, %1 : vector<36x36xf32>
    %cst_92 = arith.constant dense<0xFF800000> : vector<36xf32>
    %225 = vector.multi_reduction <maximumf>, %224, %cst_92 [1] : vector<36x36xf32> to vector<36xf32>
    %226 = vector.shape_cast %225 : vector<36xf32> to vector<36x1xf32>
    %227 = vector.broadcast %226 : vector<36x1xf32> to vector<36x36xf32>
    %228 = arith.subf %224, %227 : vector<36x36xf32>
    %229 = math.exp %228 : vector<36x36xf32>
    %cst_93 = arith.constant dense<0.000000e+00> : vector<36xf32>
    %230 = vector.multi_reduction <add>, %229, %cst_93 [1] : vector<36x36xf32> to vector<36xf32>
    %231 = vector.shape_cast %230 : vector<36xf32> to vector<36x1xf32>
    %232 = tpu.reciprocal %231 {approx = true} : vector<36x1xf32> -> vector<36x1xf32>
    %233 = vector.broadcast %232 : vector<36x1xf32> to vector<36x36xf32>
    %234 = arith.mulf %229, %233 : vector<36x36xf32>
    %235 = arith.truncf %234 : vector<36x36xf32> to vector<36x36xbf16>
    %236 = vector.extract_strided_slice %220 {offsets = [0, 0], sizes = [36, 8], strides = [1, 1]} : vector<36x32xbf16> to vector<36x8xbf16>
    %cst_94 = arith.constant dense<0.000000e+00> : vector<36x8xf32>
    %237 = tpu.matmul %235, %236, %cst_94 {dimension_numbers = #tpu.dot_dimension_numbers<[1], [0], [0], [1], [0, 0, 1, 1], [], []>} : vector<36x36xbf16>, vector<36x8xbf16>, vector<36x8xf32> -> vector<36x8xf32>
    %238 = vector.extract_strided_slice %216 {offsets = [0, 8], sizes = [36, 8], strides = [1, 1]} : vector<36x32xbf16> to vector<36x8xbf16>
    %239 = vector.extract_strided_slice %218 {offsets = [0, 8], sizes = [36, 8], strides = [1, 1]} : vector<36x32xbf16> to vector<36x8xbf16>
    %cst_95 = arith.constant dense<0.000000e+00> : vector<36x36xf32>
    %240 = tpu.matmul %238, %239, %cst_95 {dimension_numbers = #tpu.dot_dimension_numbers<[1], [1], [0], [0], [0, 0, 1, 0], [], []>} : vector<36x8xbf16>, vector<36x8xbf16>, vector<36x36xf32> -> vector<36x36xf32>
    %241 = arith.addf %240, %1 : vector<36x36xf32>
    %cst_96 = arith.constant dense<0xFF800000> : vector<36xf32>
    %242 = vector.multi_reduction <maximumf>, %241, %cst_96 [1] : vector<36x36xf32> to vector<36xf32>
    %243 = vector.shape_cast %242 : vector<36xf32> to vector<36x1xf32>
    %244 = vector.broadcast %243 : vector<36x1xf32> to vector<36x36xf32>
    %245 = arith.subf %241, %244 : vector<36x36xf32>
    %246 = math.exp %245 : vector<36x36xf32>
    %cst_97 = arith.constant dense<0.000000e+00> : vector<36xf32>
    %247 = vector.multi_reduction <add>, %246, %cst_97 [1] : vector<36x36xf32> to vector<36xf32>
    %248 = vector.shape_cast %247 : vector<36xf32> to vector<36x1xf32>
    %249 = tpu.reciprocal %248 {approx = true} : vector<36x1xf32> -> vector<36x1xf32>
    %250 = vector.broadcast %249 : vector<36x1xf32> to vector<36x36xf32>
    %251 = arith.mulf %246, %250 : vector<36x36xf32>
    %252 = arith.truncf %251 : vector<36x36xf32> to vector<36x36xbf16>
    %253 = vector.extract_strided_slice %220 {offsets = [0, 8], sizes = [36, 8], strides = [1, 1]} : vector<36x32xbf16> to vector<36x8xbf16>
    %cst_98 = arith.constant dense<0.000000e+00> : vector<36x8xf32>
    %254 = tpu.matmul %252, %253, %cst_98 {dimension_numbers = #tpu.dot_dimension_numbers<[1], [0], [0], [1], [0, 0, 1, 1], [], []>} : vector<36x36xbf16>, vector<36x8xbf16>, vector<36x8xf32> -> vector<36x8xf32>
    %255 = vector.extract_strided_slice %216 {offsets = [0, 16], sizes = [36, 8], strides = [1, 1]} : vector<36x32xbf16> to vector<36x8xbf16>
    %256 = vector.extract_strided_slice %218 {offsets = [0, 16], sizes = [36, 8], strides = [1, 1]} : vector<36x32xbf16> to vector<36x8xbf16>
    %cst_99 = arith.constant dense<0.000000e+00> : vector<36x36xf32>
    %257 = tpu.matmul %255, %256, %cst_99 {dimension_numbers = #tpu.dot_dimension_numbers<[1], [1], [0], [0], [0, 0, 1, 0], [], []>} : vector<36x8xbf16>, vector<36x8xbf16>, vector<36x36xf32> -> vector<36x36xf32>
    %258 = arith.addf %257, %1 : vector<36x36xf32>
    %cst_100 = arith.constant dense<0xFF800000> : vector<36xf32>
    %259 = vector.multi_reduction <maximumf>, %258, %cst_100 [1] : vector<36x36xf32> to vector<36xf32>
    %260 = vector.shape_cast %259 : vector<36xf32> to vector<36x1xf32>
    %261 = vector.broadcast %260 : vector<36x1xf32> to vector<36x36xf32>
    %262 = arith.subf %258, %261 : vector<36x36xf32>
    %263 = math.exp %262 : vector<36x36xf32>
    %cst_101 = arith.constant dense<0.000000e+00> : vector<36xf32>
    %264 = vector.multi_reduction <add>, %263, %cst_101 [1] : vector<36x36xf32> to vector<36xf32>
    %265 = vector.shape_cast %264 : vector<36xf32> to vector<36x1xf32>
    %266 = tpu.reciprocal %265 {approx = true} : vector<36x1xf32> -> vector<36x1xf32>
    %267 = vector.broadcast %266 : vector<36x1xf32> to vector<36x36xf32>
    %268 = arith.mulf %263, %267 : vector<36x36xf32>
    %269 = arith.truncf %268 : vector<36x36xf32> to vector<36x36xbf16>
    %270 = vector.extract_strided_slice %220 {offsets = [0, 16], sizes = [36, 8], strides = [1, 1]} : vector<36x32xbf16> to vector<36x8xbf16>
    %cst_102 = arith.constant dense<0.000000e+00> : vector<36x8xf32>
    %271 = tpu.matmul %269, %270, %cst_102 {dimension_numbers = #tpu.dot_dimension_numbers<[1], [0], [0], [1], [0, 0, 1, 1], [], []>} : vector<36x36xbf16>, vector<36x8xbf16>, vector<36x8xf32> -> vector<36x8xf32>
    %272 = vector.extract_strided_slice %216 {offsets = [0, 24], sizes = [36, 8], strides = [1, 1]} : vector<36x32xbf16> to vector<36x8xbf16>
    %273 = vector.extract_strided_slice %218 {offsets = [0, 24], sizes = [36, 8], strides = [1, 1]} : vector<36x32xbf16> to vector<36x8xbf16>
    %cst_103 = arith.constant dense<0.000000e+00> : vector<36x36xf32>
    %274 = tpu.matmul %272, %273, %cst_103 {dimension_numbers = #tpu.dot_dimension_numbers<[1], [1], [0], [0], [0, 0, 1, 0], [], []>} : vector<36x8xbf16>, vector<36x8xbf16>, vector<36x36xf32> -> vector<36x36xf32>
    %275 = arith.addf %274, %1 : vector<36x36xf32>
    %cst_104 = arith.constant dense<0xFF800000> : vector<36xf32>
    %276 = vector.multi_reduction <maximumf>, %275, %cst_104 [1] : vector<36x36xf32> to vector<36xf32>
    %277 = vector.shape_cast %276 : vector<36xf32> to vector<36x1xf32>
    %278 = vector.broadcast %277 : vector<36x1xf32> to vector<36x36xf32>
    %279 = arith.subf %275, %278 : vector<36x36xf32>
    %280 = math.exp %279 : vector<36x36xf32>
    %cst_105 = arith.constant dense<0.000000e+00> : vector<36xf32>
    %281 = vector.multi_reduction <add>, %280, %cst_105 [1] : vector<36x36xf32> to vector<36xf32>
    %282 = vector.shape_cast %281 : vector<36xf32> to vector<36x1xf32>
    %283 = tpu.reciprocal %282 {approx = true} : vector<36x1xf32> -> vector<36x1xf32>
    %284 = vector.broadcast %283 : vector<36x1xf32> to vector<36x36xf32>
    %285 = arith.mulf %280, %284 : vector<36x36xf32>
    %286 = arith.truncf %285 : vector<36x36xf32> to vector<36x36xbf16>
    %287 = vector.extract_strided_slice %220 {offsets = [0, 24], sizes = [36, 8], strides = [1, 1]} : vector<36x32xbf16> to vector<36x8xbf16>
    %cst_106 = arith.constant dense<0.000000e+00> : vector<36x8xf32>
    %288 = tpu.matmul %286, %287, %cst_106 {dimension_numbers = #tpu.dot_dimension_numbers<[1], [0], [0], [1], [0, 0, 1, 1], [], []>} : vector<36x36xbf16>, vector<36x8xbf16>, vector<36x8xf32> -> vector<36x8xf32>
    %289 = tpu.concatenate %237, %254, %271, %288 in 1 : vector<36x8xf32>, vector<36x8xf32>, vector<36x8xf32>, vector<36x8xf32> -> vector<36x32xf32>
    %290 = arith.truncf %289 : vector<36x32xf32> to vector<36x32xbf16>
    %c1_107 = arith.constant 1 : index
    %c0_108 = arith.constant 0 : index
    %c0_109 = arith.constant 0 : index
    %291 = vector.load %arg6[%c1_107, %c0_108, %c0_109] : memref<2x32x32xbf16, #tpu.memory_space<vmem>>, vector<1x32x32xbf16>
    %292 = vector.shape_cast %291 : vector<1x32x32xbf16> to vector<32x32xbf16>
    %cst_110 = arith.constant dense<0.000000e+00> : vector<36x32xf32>
    %293 = tpu.matmul %290, %292, %cst_110 {dimension_numbers = #tpu.dot_dimension_numbers<[1], [0], [0], [1], [0, 0, 1, 1], [], []>} : vector<36x32xbf16>, vector<32x32xbf16>, vector<36x32xf32> -> vector<36x32xf32>
    %c1_111 = arith.constant 1 : index
    %c0_112 = arith.constant 0 : index
    %c0_113 = arith.constant 0 : index
    %294 = vector.load %arg7[%c1_111, %c0_112, %c0_113] : memref<2x1x32xf32, #tpu.memory_space<vmem>>, vector<1x1x32xf32>
    %295 = vector.shape_cast %294 : vector<1x1x32xf32> to vector<1x32xf32>
    %296 = vector.broadcast %295 : vector<1x32xf32> to vector<36x32xf32>
    %297 = arith.addf %293, %296 : vector<36x32xf32>
    %298 = arith.addf %178, %297 : vector<36x32xf32>
    %c1_114 = arith.constant 1 : index
    %c0_115 = arith.constant 0 : index
    %c0_116 = arith.constant 0 : index
    %299 = vector.load %arg8[%c1_114, %c0_115, %c0_116] : memref<2x1x32xf32, #tpu.memory_space<vmem>>, vector<1x1x32xf32>
    %300 = vector.shape_cast %299 : vector<1x1x32xf32> to vector<1x32xf32>
    %c1_117 = arith.constant 1 : index
    %c0_118 = arith.constant 0 : index
    %c0_119 = arith.constant 0 : index
    %301 = vector.load %arg9[%c1_117, %c0_118, %c0_119] : memref<2x1x32xf32, #tpu.memory_space<vmem>>, vector<1x1x32xf32>
    %302 = vector.shape_cast %301 : vector<1x1x32xf32> to vector<1x32xf32>
    %cst_120 = arith.constant dense<0.000000e+00> : vector<36xf32>
    %303 = vector.multi_reduction <add>, %298, %cst_120 [1] : vector<36x32xf32> to vector<36xf32>
    %304 = vector.shape_cast %303 : vector<36xf32> to vector<36x1xf32>
    %cst_121 = arith.constant 3.200000e+01 : f32
    %305 = vector.broadcast %cst_121 : f32 to vector<36x1xf32>
    %306 = arith.divf %304, %305 : vector<36x1xf32>
    %307 = vector.broadcast %306 : vector<36x1xf32> to vector<36x32xf32>
    %308 = arith.subf %298, %307 : vector<36x32xf32>
    %309 = arith.mulf %308, %308 : vector<36x32xf32>
    %cst_122 = arith.constant dense<0.000000e+00> : vector<36xf32>
    %310 = vector.multi_reduction <add>, %309, %cst_122 [1] : vector<36x32xf32> to vector<36xf32>
    %311 = vector.shape_cast %310 : vector<36xf32> to vector<36x1xf32>
    %cst_123 = arith.constant 3.200000e+01 : f32
    %312 = vector.broadcast %cst_123 : f32 to vector<36x1xf32>
    %313 = arith.divf %311, %312 : vector<36x1xf32>
    %314 = vector.broadcast %306 : vector<36x1xf32> to vector<36x32xf32>
    %315 = arith.subf %298, %314 : vector<36x32xf32>
    %cst_124 = arith.constant 9.99999974E-6 : f32
    %316 = vector.broadcast %cst_124 : f32 to vector<36x1xf32>
    %317 = arith.addf %313, %316 : vector<36x1xf32>
    %318 = math.rsqrt %317 : vector<36x1xf32>
    %319 = vector.broadcast %318 : vector<36x1xf32> to vector<36x32xf32>
    %320 = arith.mulf %315, %319 : vector<36x32xf32>
    %321 = vector.broadcast %300 : vector<1x32xf32> to vector<36x32xf32>
    %322 = arith.mulf %320, %321 : vector<36x32xf32>
    %323 = vector.broadcast %302 : vector<1x32xf32> to vector<36x32xf32>
    %324 = arith.addf %322, %323 : vector<36x32xf32>
    %325 = arith.truncf %324 : vector<36x32xf32> to vector<36x32xbf16>
    %c1_125 = arith.constant 1 : index
    %c0_126 = arith.constant 0 : index
    %c0_127 = arith.constant 0 : index
    %326 = vector.load %arg10[%c1_125, %c0_126, %c0_127] : memref<2x32x128xbf16, #tpu.memory_space<vmem>>, vector<1x32x128xbf16>
    %327 = vector.shape_cast %326 : vector<1x32x128xbf16> to vector<32x128xbf16>
    %cst_128 = arith.constant dense<0.000000e+00> : vector<36x128xf32>
    %328 = tpu.matmul %325, %327, %cst_128 {dimension_numbers = #tpu.dot_dimension_numbers<[1], [0], [0], [1], [0, 0, 1, 1], [], []>} : vector<36x32xbf16>, vector<32x128xbf16>, vector<36x128xf32> -> vector<36x128xf32>
    %c1_129 = arith.constant 1 : index
    %c0_130 = arith.constant 0 : index
    %c0_131 = arith.constant 0 : index
    %329 = vector.load %arg11[%c1_129, %c0_130, %c0_131] : memref<2x1x128xf32, #tpu.memory_space<vmem>>, vector<1x1x128xf32>
    %330 = vector.shape_cast %329 : vector<1x1x128xf32> to vector<1x128xf32>
    %331 = vector.broadcast %330 : vector<1x128xf32> to vector<36x128xf32>
    %332 = arith.addf %328, %331 : vector<36x128xf32>
    %cst_132 = arith.constant 0.636619746 : f32
    %333 = math.sqrt %cst_132 : f32
    %cst_133 = arith.constant 5.000000e-01 : f32
    %334 = vector.broadcast %cst_133 : f32 to vector<36x128xf32>
    %335 = arith.mulf %334, %332 : vector<36x128xf32>
    %cst_134 = arith.constant 4.471500e-02 : f32
    %336 = vector.broadcast %cst_134 : f32 to vector<36x128xf32>
    %337 = arith.mulf %336, %332 : vector<36x128xf32>
    %338 = arith.mulf %337, %332 : vector<36x128xf32>
    %339 = arith.mulf %338, %332 : vector<36x128xf32>
    %340 = arith.addf %332, %339 : vector<36x128xf32>
    %341 = vector.broadcast %333 : f32 to vector<36x128xf32>
    %342 = arith.mulf %341, %340 : vector<36x128xf32>
    %343 = math.tanh %342 : vector<36x128xf32>
    %cst_135 = arith.constant 1.000000e+00 : f32
    %344 = vector.broadcast %cst_135 : f32 to vector<36x128xf32>
    %345 = arith.addf %344, %343 : vector<36x128xf32>
    %346 = arith.mulf %335, %345 : vector<36x128xf32>
    %347 = arith.truncf %346 : vector<36x128xf32> to vector<36x128xbf16>
    %c1_136 = arith.constant 1 : index
    %c0_137 = arith.constant 0 : index
    %c0_138 = arith.constant 0 : index
    %348 = vector.load %arg12[%c1_136, %c0_137, %c0_138] : memref<2x128x32xbf16, #tpu.memory_space<vmem>>, vector<1x128x32xbf16>
    %349 = vector.shape_cast %348 : vector<1x128x32xbf16> to vector<128x32xbf16>
    %cst_139 = arith.constant dense<0.000000e+00> : vector<36x32xf32>
    %350 = tpu.matmul %347, %349, %cst_139 {dimension_numbers = #tpu.dot_dimension_numbers<[1], [0], [0], [1], [0, 0, 1, 1], [], []>} : vector<36x128xbf16>, vector<128x32xbf16>, vector<36x32xf32> -> vector<36x32xf32>
    %c1_140 = arith.constant 1 : index
    %c0_141 = arith.constant 0 : index
    %c0_142 = arith.constant 0 : index
    %351 = vector.load %arg13[%c1_140, %c0_141, %c0_142] : memref<2x1x32xf32, #tpu.memory_space<vmem>>, vector<1x1x32xf32>
    %352 = vector.shape_cast %351 : vector<1x1x32xf32> to vector<1x32xf32>
    %353 = vector.broadcast %352 : vector<1x32xf32> to vector<36x32xf32>
    %354 = arith.addf %350, %353 : vector<36x32xf32>
    %355 = arith.addf %298, %354 : vector<36x32xf32>
    %c0_143 = arith.constant 0 : index
    %c0_144 = arith.constant 0 : index
    %356 = vector.load %arg14[%c0_143, %c0_144] : memref<1x32xf32, #tpu.memory_space<vmem>>, vector<1x32xf32>
    %c0_145 = arith.constant 0 : index
    %c0_146 = arith.constant 0 : index
    %357 = vector.load %arg15[%c0_145, %c0_146] : memref<1x32xf32, #tpu.memory_space<vmem>>, vector<1x32xf32>
    %cst_147 = arith.constant dense<0.000000e+00> : vector<36xf32>
    %358 = vector.multi_reduction <add>, %355, %cst_147 [1] : vector<36x32xf32> to vector<36xf32>
    %359 = vector.shape_cast %358 : vector<36xf32> to vector<36x1xf32>
    %cst_148 = arith.constant 3.200000e+01 : f32
    %360 = vector.broadcast %cst_148 : f32 to vector<36x1xf32>
    %361 = arith.divf %359, %360 : vector<36x1xf32>
    %362 = vector.broadcast %361 : vector<36x1xf32> to vector<36x32xf32>
    %363 = arith.subf %355, %362 : vector<36x32xf32>
    %364 = arith.mulf %363, %363 : vector<36x32xf32>
    %cst_149 = arith.constant dense<0.000000e+00> : vector<36xf32>
    %365 = vector.multi_reduction <add>, %364, %cst_149 [1] : vector<36x32xf32> to vector<36xf32>
    %366 = vector.shape_cast %365 : vector<36xf32> to vector<36x1xf32>
    %cst_150 = arith.constant 3.200000e+01 : f32
    %367 = vector.broadcast %cst_150 : f32 to vector<36x1xf32>
    %368 = arith.divf %366, %367 : vector<36x1xf32>
    %369 = vector.broadcast %361 : vector<36x1xf32> to vector<36x32xf32>
    %370 = arith.subf %355, %369 : vector<36x32xf32>
    %cst_151 = arith.constant 9.99999974E-6 : f32
    %371 = vector.broadcast %cst_151 : f32 to vector<36x1xf32>
    %372 = arith.addf %368, %371 : vector<36x1xf32>
    %373 = math.rsqrt %372 : vector<36x1xf32>
    %374 = vector.broadcast %373 : vector<36x1xf32> to vector<36x32xf32>
    %375 = arith.mulf %370, %374 : vector<36x32xf32>
    %376 = vector.broadcast %356 : vector<1x32xf32> to vector<36x32xf32>
    %377 = arith.mulf %375, %376 : vector<36x32xf32>
    %378 = vector.broadcast %357 : vector<1x32xf32> to vector<36x32xf32>
    %379 = arith.addf %377, %378 : vector<36x32xf32>
    %380 = arith.truncf %379 : vector<36x32xf32> to vector<36x32xbf16>
    %c0_152 = arith.constant 0 : index
    %c0_153 = arith.constant 0 : index
    %381 = vector.load %arg16[%c0_152, %c0_153] : memref<32x128xbf16, #tpu.memory_space<vmem>>, vector<32x128xbf16>
    %cst_154 = arith.constant dense<0.000000e+00> : vector<36x128xf32>
    %382 = tpu.matmul %380, %381, %cst_154 {dimension_numbers = #tpu.dot_dimension_numbers<[1], [0], [0], [1], [0, 0, 1, 1], [], []>} : vector<36x32xbf16>, vector<32x128xbf16>, vector<36x128xf32> -> vector<36x128xf32>
    %c0_155 = arith.constant 0 : index
    %c0_156 = arith.constant 0 : index
    %383 = vector.load %arg17[%c0_155, %c0_156] : memref<36x128xf32, #tpu.memory_space<vmem>>, vector<36x128xf32>
    tpu.vector_store %arg17[%c0_155, %c0_156], %382 {strides = array<i32>} : memref<36x128xf32, #tpu.memory_space<vmem>>, vector<36x128xf32>,
    return
  }
}

</mosaic_0001>

<bundles_post_ra>
// kernel: eq.8
= control target key start
LH: loop header
LB: loop body
LE: loop exit
PB: predicated region body
PF: predicated region fallthrough
CT: control target
= control target key end

     0   :  { %vm7_vm0 = vcmask 146432   ;;  %vm13_vm1 = vcmask 294032   ;;  %s39_s0 = inlined_call_operand.vmem [shape: s32[2,18], index: 0, kind: input, shape index: {}]   ;;  %s40_s1 = inlined_call_operand.vmem [shape: s32[36], index: 1, kind: output, shape index: {}]  }
   0x1   :  { %v4_v0 = vld [vmem:[%s39_s0] sm:$0x3]  ;;  %s22_s0 = smov 18  }
   0x2   :  { %5 = vst [vmem:[#allocation1] sm:$0x3] %v4_v0 }
   0x9   :  { %v10_v1 = vld [vmem:[#allocation1 + $0x1] sm:$0x1]   ;;  %v6_v2 = vld [vmem:[#allocation1] sm:$0x1]  }
   0xa   :  { %11 = vrot.lane.b32.xlu0 %v10_v1, %s22_s0  ;;  %8 = vst.msk [vmem:[#allocation0] sm:$0x1] %vm7_vm0, %v6_v2  }
  0x7c   :  { %v12_v3 = vpop.permute.xlu0 %11  }
  0x7d   :  { %14 = vst.msk [vmem:[#allocation0] sm:$0x1] %vm13_vm1, %v12_v3  }
  0x84   :  { %v18_v4 = vld [vmem:[#allocation0] sm:$0x1] }
  0x85   :  { %20 = vst [vmem:[%s40_s1] sm:$0x1] %v18_v4 }

// kernel: clip_caption_forward.2
= control target key start
LH: loop header
LB: loop body
LE: loop exit
PB: predicated region body
PF: predicated region fallthrough
CT: control target
= control target key end

     0   :  { %v563_v1 = vmov 0   ;;  %vm83_vm0 = vcmask 523264   ;;  %v33_v41 = vlaneseq  ;;  %vm349_vm1 = vcmask 261120   ;;  %s732_s1 = inlined_call_operand.vmem [shape: bf16[64,160], index: 1, kind: input, shape index: {}]   ;;  %s733_s3 = inlined_call_operand.vmem [shape: bf16[160,320], index: 3, kind: input, shape index: {}]   ;;  %s734_s0 = inlined_call_operand.vmem [shape: f32[2,64], index: 0, kind: input, shape index: {}]   ;;  %s735_s2 = inlined_call_operand.vmem [shape: f32[1,160], index: 2, kind: input, shape index: {}]   ;;  %s736_s4 = inlined_call_operand.vmem [shape: f32[1,320], index: 4, kind: input, shape index: {}]   ;;  %s737_s5 = inlined_call_operand.vmem [shape: f32[2,320], index: 5, kind: output, shape index: {}]  }
   0x1   :  { %v507_v0 = vld [vmem:[%s732_s1 + $0x4] ss:$8 sps:$4 sm:$0xff]   ;;  %119 = vmatprep.mubr.bf16.mxu0 %v563_v1  ;;  %v509_v2 = vld [vmem:[%s732_s1] ss:$8 sps:$4 sm:$0xff]   ;;  %v510_v3 = vld [vmem:[%s732_s1 + $0x14] ss:$8 sps:$4 sm:$0xff]  }
   0x2   :  { %87 = vmatprep.subr.bf16.mxu0 %v507_v0  ;;  %v512_v4 = vld [vmem:[%s732_s1 + $0x10] ss:$8 sps:$4 sm:$0xff]   ;;  %v513_v5 = vld [vmem:[%s732_s1 + $0x24] ss:$8 sps:$4 sm:$0xff]   ;;  %v515_v6 = vld [vmem:[%s732_s1 + $0x20] ss:$8 sps:$4 sm:$0xff]  }
   0x3   :  { %88 = vmatpush1.bf16.msra.mxu0 %v509_v2  ;;  %v519_v7 = vld [vmem:[%s733_s3 + $0x4] ss:$12 sps:$4 sm:$0xff]   ;;  %v521_v8 = vld [vmem:[%s733_s3] ss:$12 sps:$4 sm:$0xff]   ;;  %v516_v9 = vld [vmem:[%s732_s1 + $0x34] ss:$8 sps:$4 sm:$0xff]  }
   0x4   :  { %89 = vmatprep.subr.bf16.mxu0 %v510_v3  ;;  %353 = vmatprep.subr.bf16.mxu1 %v519_v7  ;;  %v523_v10 = vld [vmem:[%s733_s3 + $0x1c] ss:$12 sps:$4 sm:$0xff]   ;;  %v525_v11 = vld [vmem:[%s733_s3 + $0x18] ss:$12 sps:$4 sm:$0xff]   ;;  %v21_v13 = vld [vmem:[%s734_s0] sm:$0x3] }
   0x5   :  { %354 = vmatpush1.bf16.msra.mxu1 %v521_v8  ;;  %v518_v12 = vld [vmem:[%s732_s1 + $0x30] ss:$8 sps:$4 sm:$0xff]   ;;  %v527_v14 = vld [vmem:[%s733_s3 + $0x34] ss:$12 sps:$4 sm:$0xff]   ;;  %v22_v16 = vpack.c.bf16 %v21_v13, %v21_v13  ;;  %v539_v23 = vld [vmem:[%s733_s3 + $0x7c] ss:$12 sps:$4 sm:$0xff]  }
   0x6   :  { %355 = vmatprep.subr.bf16.mxu1 %v523_v10  ;;  %v529_v15 = vld [vmem:[%s733_s3 + $0x30] ss:$12 sps:$4 sm:$0xff]   ;;  %v531_v17 = vld [vmem:[%s733_s3 + $0x4c] ss:$12 sps:$4 sm:$0xff]   ;;  %v522_v18 = vld [vmem:[%s733_s3 + $0x8] ss:$12 sps:$4 sm:$0xff]  }
   0x7   :  { %90 = vmatpush1.bf16.msra.mxu0 %v512_v4  ;;  %v533_v19 = vld [vmem:[%s733_s3 + $0x48] ss:$12 sps:$4 sm:$0xff]   ;;  %v535_v20 = vld [vmem:[%s733_s3 + $0x64] ss:$12 sps:$4 sm:$0xff]   ;;  %v526_v21 = vld [vmem:[%s733_s3 + $0x20] ss:$12 sps:$4 sm:$0xff]  }
   0x8   :  { %91 = vmatprep.subr.bf16.mxu0 %v513_v5  ;;  %v537_v22 = vld [vmem:[%s733_s3 + $0x60] ss:$12 sps:$4 sm:$0xff]   ;;  %v530_v24 = vld [vmem:[%s733_s3 + $0x38] ss:$12 sps:$4 sm:$0xff]   ;;  %v534_v26 = vld [vmem:[%s733_s3 + $0x50] ss:$12 sps:$4 sm:$0xff]  }
   0x9   :  { %356 = vmatpush1.bf16.msra.mxu1 %v525_v11  ;;  %v541_v25 = vld [vmem:[%s733_s3 + $0x78] ss:$12 sps:$4 sm:$0xff]   ;;  %v538_v27 = vld [vmem:[%s733_s3 + $0x68] ss:$12 sps:$4 sm:$0xff]   ;;  %v542_v28 = vld [vmem:[%s733_s3 + $0x80] ss:$12 sps:$4 sm:$0xff]  }
   0xa   :  { %357 = vmatprep.subr.bf16.mxu1 %v527_v14  ;;  %v543_v29 = vld [vmem:[%s733_s3 + $0x94] ss:$12 sps:$4 sm:$0xff]   ;;  %v545_v30 = vld [vmem:[%s733_s3 + $0x90] ss:$12 sps:$4 sm:$0xff]   ;;  %v546_v31 = vld [vmem:[%s733_s3 + $0x98] ss:$12 sps:$4 sm:$0xff]  }
   0xb   :  { %92 = vmatpush1.bf16.msra.mxu0 %v515_v6  ;;  %v547_v32 = vld [vmem:[%s733_s3 + $0xac] ss:$12 sps:$4 sm:$0xff]   ;;  %v549_v33 = vld [vmem:[%s733_s3 + $0xa8] ss:$12 sps:$4 sm:$0xff]   ;;  %v550_v34 = vld [vmem:[%s733_s3 + $0xb0] ss:$12 sps:$4 sm:$0xff]  }
   0xc   :  { %93 = vmatprep.subr.bf16.mxu0 %v516_v9  ;;  %v551_v35 = vld [vmem:[%s733_s3 + $0xc4] ss:$12 sps:$4 sm:$0xff]   ;;  %v553_v36 = vld [vmem:[%s733_s3 + $0xc0] ss:$12 sps:$4 sm:$0xff]   ;;  %v554_v37 = vld [vmem:[%s733_s3 + $0xc8] ss:$12 sps:$4 sm:$0xff]  }
   0xd   :  { %358 = vmatpush1.bf16.msra.mxu1 %v529_v15  ;;  %v555_v38 = vld [vmem:[%s733_s3 + $0xdc] ss:$12 sps:$4 sm:$0xff]   ;;  %v557_v39 = vld [vmem:[%s733_s3 + $0xd8] ss:$12 sps:$4 sm:$0xff]   ;;  %v558_v40 = vld [vmem:[%s733_s3 + $0xe0] ss:$12 sps:$4 sm:$0xff]  }
   0xe   :  { %359 = vmatprep.subr.bf16.mxu1 %v531_v17  ;;  %v34_v42 = vshrl.u32 %v33_v41, 7  ;;  %v31_v44 = vld [vmem:[%s735_s2] sm:$0x3]  ;;  %v564_v60 = vmov 1983009808   ;;  %vm454_vm2 = vcmask 1041408  }
   0xf   :  { %94 = vmatpush1.bf16.msra.mxu0 %v518_v12  ;;  %v172_v58 = vld [vmem:[%s736_s4] sm:$0x7]  ;;  %v439_v61 = vunpack.c.l.s4 %v564_v60  ;;  %vm455_vm3 = vcmask 1043458   ;;  %vm457_vm5 = vcmask 521220  }
  0x10   :  { %394 = vmatprep.subr.bf16.mxu0 %v563_v1  ;;  %v35_v43 = vsub.s32 0, %v34_v42  ;;  %v39_v45 = vsub.s32 1, %v34_v42  ;;  %v184_v59 = vsub.s32 2, %v34_v42  ;;  %vm456_vm4 = vmor %vm455_vm3, %vm454_vm2 }
  0x11   :  { %360 = vmatpush1.bf16.msra.mxu1 %v533_v19  ;;  %v440_v0 = vunpack.c.0.s8 %v439_v61  ;;  %vm458_vm6 = vmor %vm457_vm5, %vm456_vm4 }
  0x12   :  { %472 = vmatmul.mubr.msk.bf16.vlgmr.msra.gmra.mrb[0].mxu0 %vm83_vm0, %v22_v16  ;;  %361 = vmatprep.subr.bf16.mxu1 %v535_v20  ;;  %v36_v46 = vrot.slane %v31_v44, %v35_v43  ;;  %v40_v47 = vrot.slane %v31_v44, %v39_v45  ;;  %v177_v62 = vrot.slane %v172_v58, %v35_v43 }
  0x13   :  { %395 = vmatpush1.bf16.msra.mxu0 %v522_v18  ;;  %v185_v63 = vrot.slane %v172_v58, %v184_v59  ;;  %v443_v8 = vsub.s32 %v440_v0, %v34_v42 }
  0x14   :  { %396 = vmatprep.subr.bf16.mxu0 %v563_v1 }
  0x15   :  { %362 = vmatpush1.bf16.msra.mxu1 %v537_v22 }
  0x16   :  { %363 = vmatprep.subr.bf16.mxu1 %v539_v23 }
  0x17   :  { %397 = vmatpush1.bf16.msra.mxu0 %v526_v21 }
  0x18   :  { %398 = vmatprep.subr.bf16.mxu0 %v563_v1 }
  0x19   :  { %364 = vmatpush1.bf16.msra.mxu1 %v541_v25 }
  0x1a   :  { %365 = vmatprep.subr.bf16.mxu1 %v543_v29 }
  0x1b   :  { %399 = vmatpush1.bf16.msra.mxu0 %v530_v24 }
  0x1c   :  { %400 = vmatprep.subr.bf16.mxu0 %v563_v1 }
  0x1d   :  { %366 = vmatpush1.bf16.msra.mxu1 %v545_v30 }
  0x1e   :  { %367 = vmatprep.subr.bf16.mxu1 %v547_v32 }
  0x1f   :  { %401 = vmatpush1.bf16.msra.mxu0 %v534_v26 }
  0x20   :  { %402 = vmatprep.subr.bf16.mxu0 %v563_v1 }
  0x21   :  { %368 = vmatpush1.bf16.msra.mxu1 %v549_v33 }
  0x22   :  { %369 = vmatprep.subr.bf16.mxu1 %v551_v35 }
  0x23   :  { %403 = vmatpush1.bf16.msra.mxu0 %v538_v27 }
  0x24   :  { %404 = vmatprep.subr.bf16.mxu0 %v563_v1 }
  0x25   :  { %370 = vmatpush1.bf16.msra.mxu1 %v553_v36 }
  0x26   :  { %371 = vmatprep.subr.bf16.mxu1 %v555_v38 }
  0x27   :  { %405 = vmatpush1.bf16.msra.mxu0 %v542_v28 }
  0x28   :  { %406 = vmatprep.subr.bf16.mxu0 %v563_v1 }
  0x29   :  { %372 = vmatpush1.bf16.msra.mxu1 %v557_v39 }
  0x2b   :  { %407 = vmatpush1.bf16.msra.mxu0 %v546_v31 }
  0x2c   :  { %408 = vmatprep.subr.bf16.mxu0 %v563_v1 }
  0x2f   :  { %409 = vmatpush1.bf16.msra.mxu0 %v550_v34 }
  0x30   :  { %410 = vmatprep.subr.bf16.mxu0 %v563_v1 }
  0x33   :  { %411 = vmatpush1.bf16.msra.mxu0 %v554_v37 }
  0x34   :  { %412 = vmatprep.subr.bf16.mxu0 %v563_v1  ;;  %v181_v1 = vrot.slane %v172_v58, %v39_v45 }
  0x37   :  { %413 = vmatpush1.bf16.msra.mxu0 %v558_v40 }
  0xe5   :  { %v121_v48 = vpop.f32.mrb[0].mxu0 }
  0xe6   :  { %v122_v49 = vadd.f32 %v121_v48, %v36_v46  ;;  %v123_v50 = vpop.f32.mrb[1].mxu0 }
  0xe7   :  { %v124_v51 = vadd.f32 %v123_v50, %v40_v47  ;;  %v125_v52 = vpop.f32.mrb[2].mxu0 }
  0xe8   :  { %559 = vtanh.f32 %v122_v49  ;;  %v126_v53 = vpop.f32.mrb[3].mxu0 }
  0xe9   :  { %561 = vtanh.f32 %v124_v51 }
  0xf2   :  { %v560_v54 = vpop.eup %559 }
  0xf3   :  { %v562_v55 = vpop.eup %561  ;;  %v130_v57 = vpack.c.bf16 %v560_v54, %v560_v54 }
  0xf4   :  { %v131_v56 = vpack.c.bf16 %v562_v55, %v562_v55 }
  0xf6   :  { %503 = vmatprep.mubr.msk.bf16.mxu1 %vm349_vm1, %v131_v56  ;;  %504 = vmatprep.mubr.msk.bf16.mxu0 %vm349_vm1, %v131_v56 }
  0xf7   :  { %386 = vmatmul.mubr.bf16.vlgmr.msra.gmra.mrb[0].mxu1 %v130_v57  ;;  %427 = vmatmul.mubr.bf16.vlgmr.msra.gmra.mrb[4].mxu0 %v130_v57 }
 0x1ca   :  { %v387_v2 = vpop.f32.mrb[0].mxu1  ;;  %v428_v3 = vpop.f32.mrb[4].mxu0 }
 0x1cb   :  { %v388_v4 = vadd.f32 %v387_v2, %v177_v62  ;;  %v389_v5 = vpop.f32.mrb[1].mxu1  ;;  %v430_v6 = vpop.f32.mrb[5].mxu0  ;;  %v429_v7 = vadd.f32 %v428_v3, %v185_v63 }
 0x1cc   :  { %v390_v9 = vadd.f32 %v389_v5, %v181_v1  ;;  %v391_v10 = vpop.f32.mrb[2].mxu1  ;;  %v431_v11 = vpop.f32.mrb[6].mxu0 }
 0x1cd   :  { %v392_v12 = vpop.f32.mrb[3].mxu1  ;;  %v432_v13 = vpop.f32.mrb[7].mxu0  ;;  %v451_v15 = vrot.slane %v429_v7, %v443_v8 }
 0x1ce   :  { %v437_v14 = vcombine.low %v388_v4, %v390_v9 }
 0x1d0   :  { %v444_v16 = vrot.slane %v437_v14, %v443_v8 }
 0x1d2   :  { %v452_v17 = vcombine.low %v444_v16, %v451_v15 }
 0x1d4   :  { %459 = vst.msk [vmem:[%s737_s5] sm:$0x3f] %vm458_vm6, %v452_v17 }

// kernel: clip_caption_forward.3
= control target key start
LH: loop header
LB: loop body
LE: loop exit
PB: predicated region body
PF: predicated region fallthrough
CT: control target
= control target key end

     0   :  { %vm69_vm0 = vcmask 261120   ;;  %vm82_vm1 = vcmask 257024   ;;  %v4582_v35 = vmov 0.0   ;;  %vm4583_vm2 = vmmov 0   ;;  %s4584_s18 = smov 96   ;;  %s4585_s19 = smov 88   ;;  %s6091_s0 = inlined_call_operand.vmem [shape: f32[36,32], index: 0, kind: input, shape index: {}]   ;;  %s6092_s4 = inlined_call_operand.vmem [shape: bf16[2,32,96], index: 4, kind: input, shape index: {}]   ;;  %s6093_s2 = inlined_call_operand.vmem [shape: f32[2,1,32], index: 2, kind: input, shape index: {}]   ;;  %s6094_s3 = inlined_call_operand.vmem [shape: f32[2,1,32], index: 3, kind: input, shape index: {}]   ;;  %s6095_s5 = inlined_call_operand.vmem [shape: f32[2,1,96], index: 5, kind: input, shape index: {}]   ;;  %s6096_s1 = inlined_call_operand.vmem [shape: f32[36,36], index: 1, kind: input, shape index: {}]   ;;  %s6097_s6 = inlined_call_operand.vmem [shape: bf16[2,32,32], index: 6, kind: input, shape index: {}]   ;;  %s6098_s7 = inlined_call_operand.vmem [shape: f32[2,1,32], index: 7, kind: input, shape index: {}]   ;;  %s6099_s10 = inlined_call_operand.vmem [shape: bf16[2,32,128], index: 10, kind: input, shape index: {}]   ;;  %s6100_s8 = inlined_call_operand.vmem [shape: f32[2,1,32], index: 8, kind: input, shape index: {}]   ;;  %s6101_s9 = inlined_call_operand.vmem [shape: f32[2,1,32], index: 9, kind: input, shape index: {}]   ;;  %s6102_s12 = inlined_call_operand.vmem [shape: bf16[2,128,32], index: 12, kind: input, shape index: {}]   ;;  %s6103_s11 = inlined_call_operand.vmem [shape: f32[2,1,128], index: 11, kind: input, shape index: {}]   ;;  %s6104_s13 = inlined_call_operand.vmem [shape: f32[2,1,32], index: 13, kind: input, shape index: {}]   ;;  %s6105_s16 = inlined_call_operand.vmem [shape: bf16[32,128], index: 16, kind: input, shape index: {}]   ;;  %s6106_s14 = inlined_call_operand.vmem [shape: f32[1,32], index: 14, kind: input, shape index: {}]   ;;  %s6107_s15 = inlined_call_operand.vmem [shape: f32[1,32], index: 15, kind: input, shape index: {}]   ;;  %s6108_s17 = inlined_call_operand.vmem [shape: f32[36,128], index: 17, kind: output, shape index: {}]  }
   0x1   :  { %6125 = sst [smem:[#allocation2_spill]] %s6091_s0  ;;  %3780 = vmatprep.subr.bf16.mxu0 %v4582_v35  ;;  %3784 = vmatprep.mubr.msk.bf16.mxu0 %vm4583_vm2, %v4582_v35  ;;  %v3474_v55 = vld [vmem:[%s6093_s2] ss:$0 sm:$0xff]  ;;  %s4587_s20 = smov 112   ;;  %vm270_vm3 = vcmask 64512   ;;  %vm422_vm4 = vcmask 1041408  }
   0x2   :  { %6126 = sst [smem:[#allocation3_spill]] %s6092_s4  ;;  %s6127_s26 = sld [smem:[#allocation2_spill]]  ;;  %3796 = vmatprep.subr.bf16.mxu1 %v4582_v35  ;;  %3802 = vmatprep.mubr.msk.bf16.mxu1 %vm4583_vm2, %v4582_v35  ;;  %v3475_v60 = vld [vmem:[%s6094_s3] ss:$0 sm:$0xff]  ;;  %vm345_vm5 = vcmask 293888   ;;  %vm358_vm6 = vcmask 289792  }
   0x3   :  { %s6128_s22 = sld [smem:[#allocation3_spill]]  ;;  %s4586_s4 = smov 120   ;;  %vm1210_vm7 = vcmask 130048   ;;  %vm1216_vm8 = vcmask 195584  }
   0x4   :  { %s4588_s21 = smov 80   ;;  %s4589_s23 = smov 104  }
   0x5   :  { %s4590_s24 = smov 72   ;;  %s6117_s25 = smov 64  }
   0x6   :  { %s6115_s27 = smov 56   ;;  %s6113_s0 = smov 48  }
   0x7   :  { %s6111_s30 = smov 40   ;;  %s6123_s28 = smov 8  }
   0x8   :  { %v57_v0 = vld [vmem:[%s6127_s26] sm:$0xff]  ;;  %v59_v1 = vld [vmem:[%s6127_s26 + $0x10] sm:$0xff]  ;;  %v58_v2 = vld [vmem:[%s6127_s26 + $0x8] sm:$0xff] }
   0x9   :  { %v70_v3 = vsel %vm69_vm0, %v57_v0, 0.0  ;;  %v76_v4 = vsel %vm69_vm0, %v59_v1, 0.0  ;;  %v60_v5 = vld [vmem:[%s6127_s26 + $0x18] sm:$0xff]  ;;  %v73_v6 = vsel %vm69_vm0, %v58_v2, 0.0  ;;  %v61_v8 = vld [vmem:[%s6127_s26 + $0x20] sm:$0xf] }
   0xa   :  { %71 = vadd.xlane.f32.xlu0 %v70_v3  ;;  %77 = vadd.xlane.f32.xlu1 %v76_v4  ;;  %v79_v7 = vsel %vm69_vm0, %v60_v5, 0.0  ;;  %v83_v9 = vsel %vm82_vm1, %v61_v8, 0.0  ;;  %v4312_v36 = vld [vmem:[%s6128_s22] sm:$0xff]   ;;  %v4313_v37 = vld [vmem:[%s6128_s22 + $0x8] sm:$0xff]  }
   0xb   :  { %3781 = vmatpush3.bf16.msra.mxu0 %v4312_v36 }
   0xc   :  { %3782 = vmatprep.subr.bf16.mxu0 %v4582_v35 }
   0xe   :  { %74 = vadd.xlane.f32.xlu0 %v73_v6  ;;  %80 = vadd.xlane.f32.xlu1 %v79_v7 }
   0xf   :  { %3783 = vmatpush3.bf16.msra.mxu0 %v4313_v37 }
  0x10   :  { %3814 = vmatprep.subr.bf16.mxu0 %v4582_v35 }
  0x12   :  { %84 = vadd.xlane.f32.xlu0 %v83_v9 }
  0x97   :  { %v72_v10 = vpop.xlane.xlu0 %71  ;;  %v78_v11 = vpop.xlane.xlu1 %77 }
  0x98   :  { %v87_v12 = vmul.f32 0.03125, %v72_v10  ;;  %v89_v13 = vmul.f32 0.03125, %v78_v11 }
  0x9a   :  { %v92_v14 = vsub.f32 %v57_v0, %v87_v12  ;;  %v4708_v15 = vsub.f32 %v59_v1, %v89_v13 }
  0x9b   :  { %v75_v16 = vpop.xlane.xlu0 %74  ;;  %v81_v17 = vpop.xlane.xlu1 %80 }
  0x9c   :  { %v88_v18 = vmul.f32 0.03125, %v75_v16  ;;  %v90_v19 = vmul.f32 0.03125, %v81_v17  ;;  %v97_v20 = vmul.f32 %v92_v14, %v92_v14  ;;  %v99_v21 = vmul.f32 %v4708_v15, %v4708_v15 }
  0x9e   :  { %v93_v22 = vsub.f32 %v58_v2, %v88_v18  ;;  %v4712_v23 = vsub.f32 %v60_v5, %v90_v19  ;;  %v102_v24 = vsel %vm69_vm0, %v97_v20, 0.0  ;;  %v108_v27 = vsel %vm69_vm0, %v99_v21, 0.0 }
  0x9f   :  { %103 = vadd.xlane.f32.xlu1 %v102_v24  ;;  %v85_v25 = vpop.xlane.xlu0 %84 }
  0xa0   :  { %v91_v26 = vmul.f32 0.03125, %v85_v25  ;;  %v98_v28 = vmul.f32 %v93_v22, %v93_v22  ;;  %v100_v29 = vmul.f32 %v4712_v23, %v4712_v23 }
  0xa2   :  { %v4718_v30 = vsub.f32 %v61_v8, %v91_v26  ;;  %v105_v31 = vsel %vm69_vm0, %v98_v28, 0.0  ;;  %v111_v32 = vsel %vm69_vm0, %v100_v29, 0.0 }
  0xa3   :  { %109 = vadd.xlane.f32.xlu1 %v108_v27  ;;  %106 = vadd.xlane.f32.xlu0 %v105_v31 }
  0xa4   :  { %v101_v33 = vmul.f32 %v4718_v30, %v4718_v30 }
  0xa6   :  { %v114_v34 = vsel %vm82_vm1, %v101_v33, 0.0 }
  0xa7   :  { %112 = vadd.xlane.f32.xlu0 %v111_v32  ;;  %115 = vadd.xlane.f32.xlu1 %v114_v34 }
 0x12c   :  { %v104_v38 = vpop.xlane.xlu1 %103 }
 0x12d   :  { %v117_v39 = vmul.f32 0.03125, %v104_v38 }
 0x12f   :  { %v122_v40 = vadd.f32 1e-05, %v117_v39 }
 0x130   :  { %v110_v41 = vpop.xlane.xlu1 %109  ;;  %v107_v42 = vpop.xlane.xlu0 %106 }
 0x131   :  { %4342 = vrsqrt.f32 %v122_v40  ;;  %v119_v43 = vmul.f32 0.03125, %v110_v41  ;;  %v118_v44 = vmul.f32 0.03125, %v107_v42 }
 0x133   :  { %v123_v45 = vadd.f32 1e-05, %v118_v44  ;;  %v124_v46 = vadd.f32 1e-05, %v119_v43 }
 0x134   :  { %v116_v47 = vpop.xlane.xlu1 %115  ;;  %v113_v48 = vpop.xlane.xlu0 %112 }
 0x135   :  { %v120_v49 = vmul.f32 0.03125, %v113_v48  ;;  %4344 = vrsqrt.f32 %v123_v45  ;;  %v121_v50 = vmul.f32 0.03125, %v116_v47 }
 0x136   :  { %4346 = vrsqrt.f32 %v124_v46 }
 0x137   :  { %v125_v51 = vadd.f32 1e-05, %v120_v49  ;;  %v126_v52 = vadd.f32 1e-05, %v121_v50 }
 0x139   :  { %4348 = vrsqrt.f32 %v125_v51 }
 0x13a   :  { %4350 = vrsqrt.f32 %v126_v52 }
 0x13b   :  { %v4343_v53 = vpop.eup %4342 }
 0x13c   :  { %v132_v54 = vmul.f32 %v4343_v53, %v92_v14  ;;  %v3476_v14 = vld [vmem:[%s6095_s5] ss:$0 sm:$0xff] }
 0x13e   :  { %v143_v58 = vmul.f32 %v3474_v55, %v132_v54 }
 0x13f   :  { %v4345_v56 = vpop.eup %4344 }
 0x140   :  { %v133_v57 = vmul.f32 %v4345_v56, %v93_v22  ;;  %v4347_v59 = vpop.eup %4346  ;;  %v154_v63 = vadd.f32 %v3475_v60, %v143_v58 }
 0x141   :  { %v134_v1 = vmul.f32 %v4347_v59, %v4708_v15 }
 0x142   :  { %v144_v61 = vmul.f32 %v3474_v55, %v133_v57 }
 0x143   :  { %v4349_v62 = vpop.eup %4348  ;;  %v145_v6 = vmul.f32 %v3474_v55, %v134_v1 }
 0x144   :  { %v155_v0 = vadd.f32 %v3475_v60, %v144_v61  ;;  %v135_v2 = vmul.f32 %v4349_v62, %v4712_v23  ;;  %v4351_v5 = vpop.eup %4350 }
 0x145   :  { %v136_v8 = vmul.f32 %v4351_v5, %v4718_v30  ;;  %v156_v9 = vadd.f32 %v3475_v60, %v145_v6 }
 0x146   :  { %v159_v3 = vpack.c.bf16 %v155_v0, %v154_v63  ;;  %v146_v4 = vmul.f32 %v3474_v55, %v135_v2 }
 0x147   :  { %v147_v11 = vmul.f32 %v3474_v55, %v136_v8 }
 0x148   :  { %3785 = vmatmul.mubr.msk.bf16.vlgmr.msra.gmra.mrb[0].mxu0 %vm69_vm0, %v159_v3  ;;  %v157_v7 = vadd.f32 %v3475_v60, %v146_v4 }
 0x149   :  { %3788 = vmatprep.mubr.msk.bf16.mxu0 %vm4583_vm2, %v4582_v35  ;;  %v158_v12 = vadd.f32 %v3475_v60, %v147_v11 }
 0x14a   :  { %v160_v10 = vpack.c.bf16 %v157_v7, %v156_v9 }
 0x14b   :  { %v161_v13 = vpack.c.bf16 %v158_v12, %v158_v12 }
 0x150   :  { %3789 = vmatmul.mubr.msk.bf16.gmra.mrb[4].mxu0 %vm69_vm0, %v160_v10 }
 0x151   :  { %3792 = vmatprep.mubr.msk.bf16.mxu0 %vm4583_vm2, %v4582_v35 }
 0x158   :  { %3793 = vmatmul.mubr.msk.bf16.gmra.mrb[8].mxu0 %vm69_vm0, %v161_v13 }
 0x159   :  { %3820 = vmatprep.mubr.msk.bf16.mxu0 %vm4583_vm2, %v4582_v35 }
 0x21b   :  { %v228_v15 = vpop.f32.mrb[0].mxu0 }
 0x21c   :  { %v229_v16 = vadd.f32 %v3476_v14, %v228_v15  ;;  %v3786_v17 = vpop.f32.mrb[1].mxu0 }
 0x21d   :  { %v231_v18 = vpop.f32.mrb[2].mxu0  ;;  %v4894_v17 = vld [vmem:[%s6096_s1] sm:$0xff] }
 0x21e   :  { %v232_v19 = vadd.f32 %v3476_v14, %v231_v18  ;;  %v3787_v20 = vpop.f32.mrb[3].mxu0  ;;  %v250_v21 = vmul.f32 0.35355338, %v229_v16 }
 0x220   :  { %v251_v22 = vmul.f32 0.35355338, %v232_v19  ;;  %v4760_v23 = vpack.c.bf16 %v232_v19, %v229_v16  ;;  %v4899_v19 = vld [vmem:[%s6096_s1 + $0x8] sm:$0xff] }
 0x222   :  { %v4762_v24 = vpack.c.bf16 %v251_v22, %v250_v21  ;;  %264 = vrot.lane.b32.xlu0 %v4760_v23, %s4584_s18 }
 0x223   :  { %v236_v25 = vpop.f32.mrb[4].mxu0 }
 0x224   :  { %v237_v26 = vadd.f32 %v3476_v14, %v236_v25  ;;  %v3790_v27 = vpop.f32.mrb[5].mxu0 }
 0x225   :  { %v239_v28 = vpop.f32.mrb[6].mxu0 }
 0x226   :  { %v240_v29 = vadd.f32 %v3476_v14, %v239_v28  ;;  %v3791_v30 = vpop.f32.mrb[7].mxu0  ;;  %v252_v31 = vmul.f32 0.35355338, %v237_v26  ;;  %v4914_v28 = vld [vmem:[%s6096_s1 + $0x10] sm:$0xff] }
 0x227   :  { %v4919_v30 = vld [vmem:[%s6096_s1 + $0x18] sm:$0xff] }
 0x228   :  { %v253_v32 = vmul.f32 0.35355338, %v240_v29  ;;  %v4766_v33 = vpack.c.bf16 %v240_v29, %v237_v26 }
 0x22a   :  { %v4768_v34 = vpack.c.bf16 %v253_v32, %v252_v31  ;;  %493 = vrot.lane.b32.xlu0 %v4766_v33, %s4585_s19  ;;  %266 = vrot.lane.b32.xlu1 %v4766_v33, %s4584_s18 }
 0x22b   :  { %v244_v36 = vpop.f32.mrb[8].mxu0 }
 0x22c   :  { %v245_v37 = vadd.f32 %v3476_v14, %v244_v36  ;;  %v3794_v38 = vpop.f32.mrb[9].mxu0 }
 0x22d   :  { %v247_v39 = vpop.f32.mrb[10].mxu0 }
 0x22e   :  { %v4774_v40 = vpack.c.bf16 %v245_v37, %v245_v37  ;;  %485 = vrot.lane.b32.xlu0 %v4762_v24, %s4586_s4  ;;  %v3795_v41 = vpop.f32.mrb[11].mxu0  ;;  %v254_v42 = vmul.f32 0.35355338, %v245_v37 }
 0x230   :  { %268 = vrot.lane.b32.xlu1 %v4774_v40, %s4584_s18  ;;  %v4782_v43 = vpack.c.bf16 %v254_v42, %v254_v42 }
 0x232   :  { %487 = vrot.lane.b32.xlu0 %v4768_v34, %s4586_s4 }
 0x234   :  { %491 = vrot.lane.b32.xlu1 %v4760_v23, %s4585_s19 }
 0x236   :  { %489 = vrot.lane.b32.xlu0 %v4782_v43, %s4586_s4 }
 0x238   :  { %495 = vrot.lane.b32.xlu1 %v4774_v40, %s4585_s19 }
 0x23a   :  { %705 = vrot.lane.b32.xlu0 %v4762_v24, %s4587_s20 }
 0x23c   :  { %711 = vrot.lane.b32.xlu1 %v4760_v23, %s4588_s21 }
 0x23e   :  { %707 = vrot.lane.b32.xlu0 %v4768_v34, %s4587_s20 }
 0x240   :  { %713 = vrot.lane.b32.xlu1 %v4766_v33, %s4588_s21 }
 0x242   :  { %709 = vrot.lane.b32.xlu0 %v4782_v43, %s4587_s20 }
 0x244   :  { %715 = vrot.lane.b32.xlu1 %v4774_v40, %s4588_s21 }
 0x246   :  { %925 = vrot.lane.b32.xlu0 %v4762_v24, %s4589_s23 }
 0x248   :  { %931 = vrot.lane.b32.xlu1 %v4760_v23, %s4590_s24 }
 0x24a   :  { %929 = vrot.lane.b32.xlu0 %v4782_v43, %s4589_s23 }
 0x24c   :  { %933 = vrot.lane.b32.xlu1 %v4766_v33, %s4590_s24 }
 0x24e   :  { %405 = vrot.lane.b32.xlu0 %v4760_v23, %s6117_s25 }
 0x250   :  { %935 = vrot.lane.b32.xlu1 %v4774_v40, %s4590_s24 }
 0x252   :  { %409 = vrot.lane.b32.xlu0 %v4774_v40, %s6117_s25 }
 0x254   :  { %927 = vrot.lane.b32.xlu1 %v4768_v34, %s4589_s23 }
 0x256   :  { %631 = vrot.lane.b32.xlu0 %v4766_v33, %s6115_s27 }
 0x258   :  { %407 = vrot.lane.b32.xlu1 %v4766_v33, %s6117_s25  ;;  %s6121_s25 = smov 16  }
 0x25a   :  { %633 = vrot.lane.b32.xlu0 %v4774_v40, %s6115_s27 }
 0x294   :  { %v265_v44 = vpop.permute.xlu0 %264 }
 0x295   :  { %v281_v45 = vsel %vm270_vm3, %v265_v44, 0 }
 0x296   :  { %3797 = vmatpush3.bf16.xpose.msra.mxu1 %v281_v45 }
 0x297   :  { %3798 = vmatprep.subr.bf16.mxu1 %v4582_v35 }
 0x29c   :  { %v267_v46 = vpop.permute.xlu1 %266  ;;  %v494_v47 = vpop.permute.xlu0 %493 }
 0x29d   :  { %v284_v48 = vsel %vm270_vm3, %v267_v46, 0  ;;  %v510_v62 = vsel %vm270_vm3, %v494_v47, 0 }
 0x29e   :  { %3799 = vmatpush3.bf16.xpose.msra.mxu1 %v284_v48 }
 0x29f   :  { %3800 = vmatprep.subr.bf16.mxu1 %v4582_v35 }
 0x2a0   :  { %v486_v49 = vpop.permute.xlu0 %485 }
 0x2a2   :  { %v269_v50 = vpop.permute.xlu1 %268 }
 0x2a3   :  { %v287_v52 = vsel %vm270_vm3, %v269_v50, 0 }
 0x2a4   :  { %v488_v51 = vpop.permute.xlu0 %487 }
 0x2a6   :  { %v492_v53 = vpop.permute.xlu1 %491  ;;  %3801 = vmatpush3.bf16.xpose.msra.mxu1 %v287_v52 }
 0x2a7   :  { %3832 = vmatprep.subr.bf16.mxu1 %v4582_v35  ;;  %v507_v57 = vsel %vm270_vm3, %v492_v53, 0 }
 0x2a8   :  { %v490_v54 = vpop.permute.xlu0 %489 }
 0x2aa   :  { %v496_v55 = vpop.permute.xlu1 %495 }
 0x2ab   :  { %v513_v3 = vsel %vm270_vm3, %v496_v55, 0 }
 0x2ac   :  { %v706_v56 = vpop.permute.xlu0 %705 }
 0x2ad   :  { %3803 = vmatmul.mubr.msk.bf16.vlgmr.msra.gmra.mrb[0].mxu1 %vm270_vm3, %v4762_v24 }
 0x2ae   :  { %v712_v58 = vpop.permute.xlu1 %711  ;;  %3833 = vmatpush3.bf16.xpose.msra.mxu1 %v507_v57  ;;  %3806 = vmatprep.mubr.msk.bf16.mxu1 %vm4583_vm2, %v4582_v35  ;;  %v4946_v57 = vld [vmem:[%s6096_s1 + $0x20] sm:$0xf] }
 0x2af   :  { %3834 = vmatprep.subr.bf16.mxu1 %v4582_v35  ;;  %v727_v7 = vsel %vm270_vm3, %v712_v58, 0 }
 0x2b0   :  { %v708_v59 = vpop.permute.xlu0 %707 }
 0x2b2   :  { %v714_v60 = vpop.permute.xlu1 %713 }
 0x2b3   :  { %v730_v11 = vsel %vm270_vm3, %v714_v60, 0 }
 0x2b4   :  { %v710_v61 = vpop.permute.xlu0 %709 }
 0x2b5   :  { %3807 = vmatmul.mubr.msk.bf16.gmra.mrb[4].mxu1 %vm270_vm3, %v4768_v34 }
 0x2b6   :  { %v716_v63 = vpop.permute.xlu1 %715  ;;  %3835 = vmatpush3.bf16.xpose.msra.mxu1 %v510_v62  ;;  %3810 = vmatprep.mubr.msk.bf16.mxu1 %vm4583_vm2, %v4582_v35 }
 0x2b7   :  { %3836 = vmatprep.subr.bf16.mxu1 %v4582_v35  ;;  %v733_v13 = vsel %vm270_vm3, %v716_v63, 0 }
 0x2b8   :  { %v926_v0 = vpop.permute.xlu0 %925 }
 0x2ba   :  { %v932_v1 = vpop.permute.xlu1 %931 }
 0x2bb   :  { %v947_v14 = vsel %vm270_vm3, %v932_v1, 0 }
 0x2bc   :  { %v930_v2 = vpop.permute.xlu0 %929 }
 0x2bd   :  { %3811 = vmatmul.mubr.msk.bf16.gmra.mrb[8].mxu1 %vm270_vm3, %v4782_v43 }
 0x2be   :  { %v934_v4 = vpop.permute.xlu1 %933  ;;  %3837 = vmatpush3.bf16.xpose.msra.mxu1 %v513_v3  ;;  %3838 = vmatprep.mubr.msk.bf16.mxu1 %vm4583_vm2, %v4582_v35 }
 0x2bf   :  { %3868 = vmatprep.subr.bf16.mxu1 %v4582_v35  ;;  %v950_v15 = vsel %vm270_vm3, %v934_v4, 0 }
 0x2c0   :  { %v406_v5 = vpop.permute.xlu0 %405 }
 0x2c1   :  { %3815 = vmatpush3.bf16.msra.mxu0 %v406_v5 }
 0x2c2   :  { %v936_v6 = vpop.permute.xlu1 %935  ;;  %3816 = vmatprep.subr.bf16.mxu0 %v4582_v35 }
 0x2c3   :  { %v953_v16 = vsel %vm270_vm3, %v936_v6, 0 }
 0x2c4   :  { %v410_v10 = vpop.permute.xlu0 %409 }
 0x2c5   :  { %3839 = vmatmul.mubr.msk.bf16.vlgmr.msra.gmra.mrb[12].mxu1 %vm270_vm3, %v486_v49  ;;  %v424_v12 = vsel %vm422_vm4, %v410_v10, 0 }
 0x2c6   :  { %v928_v8 = vpop.permute.xlu1 %927  ;;  %3869 = vmatpush3.bf16.xpose.msra.mxu1 %v727_v7  ;;  %3842 = vmatprep.mubr.msk.bf16.mxu1 %vm4583_vm2, %v4582_v35 }
 0x2c7   :  { %3870 = vmatprep.subr.bf16.mxu1 %v4582_v35 }
 0x2ca   :  { %v408_v9 = vpop.permute.xlu1 %407 }
 0x2cb   :  { %3817 = vmatpush3.bf16.msra.mxu0 %v408_v9 }
 0x2cc   :  { %3818 = vmatprep.subr.bf16.mxu0 %v4582_v35 }
 0x2cd   :  { %3843 = vmatmul.mubr.msk.bf16.gmra.mrb[16].mxu1 %vm270_vm3, %v488_v51 }
 0x2ce   :  { %3871 = vmatpush3.bf16.xpose.msra.mxu1 %v730_v11  ;;  %3846 = vmatprep.mubr.msk.bf16.mxu1 %vm4583_vm2, %v4582_v35 }
 0x2cf   :  { %3819 = vmatpush3.bf16.msra.mxu0 %v424_v12  ;;  %3872 = vmatprep.subr.bf16.mxu1 %v4582_v35 }
 0x2d0   :  { %3850 = vmatprep.subr.bf16.mxu0 %v4582_v35 }
 0x2d5   :  { %3847 = vmatmul.mubr.msk.bf16.gmra.mrb[20].mxu1 %vm270_vm3, %v490_v54 }
 0x2d6   :  { %3873 = vmatpush3.bf16.xpose.msra.mxu1 %v733_v13  ;;  %3874 = vmatprep.mubr.msk.bf16.mxu1 %vm4583_vm2, %v4582_v35 }
 0x2d7   :  { %3904 = vmatprep.subr.bf16.mxu1 %v4582_v35 }
 0x2dd   :  { %3875 = vmatmul.mubr.msk.bf16.vlgmr.msra.gmra.mrb[24].mxu1 %vm270_vm3, %v706_v56 }
 0x2de   :  { %3905 = vmatpush3.bf16.xpose.msra.mxu1 %v947_v14  ;;  %3878 = vmatprep.mubr.msk.bf16.mxu1 %vm4583_vm2, %v4582_v35 }
 0x2df   :  { %3906 = vmatprep.subr.bf16.mxu1 %v4582_v35 }
 0x2e5   :  { %3879 = vmatmul.mubr.msk.bf16.gmra.mrb[28].mxu1 %vm270_vm3, %v708_v59 }
 0x2e6   :  { %3907 = vmatpush3.bf16.xpose.msra.mxu1 %v950_v15  ;;  %3882 = vmatprep.mubr.msk.bf16.mxu1 %vm4583_vm2, %v4582_v35 }
 0x2e7   :  { %3908 = vmatprep.subr.bf16.mxu1 %v4582_v35 }
 0x2ed   :  { %3883 = vmatmul.mubr.msk.bf16.gmra.mrb[32].mxu1 %vm270_vm3, %v710_v61 }
 0x2ee   :  { %3909 = vmatpush3.bf16.xpose.msra.mxu1 %v953_v16  ;;  %3910 = vmatprep.mubr.msk.bf16.mxu1 %vm4583_vm2, %v4582_v35 }
 0x2ef   :  { %3940 = vmatprep.subr.bf16.mxu1 %v4582_v35 }
 0x2f5   :  { %3911 = vmatmul.mubr.msk.bf16.vlgmr.msra.gmra.mrb[36].mxu1 %vm270_vm3, %v926_v0 }
 0x2f6   :  { %3914 = vmatprep.mubr.msk.bf16.mxu1 %vm4583_vm2, %v4582_v35 }
 0x2fd   :  { %3915 = vmatmul.mubr.msk.bf16.gmra.mrb[40].mxu1 %vm270_vm3, %v928_v8 }
 0x2fe   :  { %3918 = vmatprep.mubr.msk.bf16.mxu1 %vm4583_vm2, %v4582_v35 }
 0x305   :  { %3919 = vmatmul.mubr.msk.bf16.gmra.mrb[44].mxu1 %vm270_vm3, %v930_v2 }
 0x306   :  { %3944 = vmatprep.mubr.msk.bf16.mxu1 %vm4583_vm2, %v4582_v35 }
 0x380   :  { %v323_v18 = vpop.f32.mrb[0].mxu1 }
 0x381   :  { %v4902_v20 = vadd.f32 %v323_v18, %v4894_v17  ;;  %v3804_v21 = vpop.f32.mrb[1].mxu1 }
 0x382   :  { %v326_v22 = vpop.f32.mrb[2].mxu1 }
 0x383   :  { %v4905_v24 = vadd.f32 %v326_v22, %v4899_v19  ;;  %v3805_v25 = vpop.f32.mrb[3].mxu1  ;;  %v346_v26 = vsel %vm345_vm5, %v4902_v20, -inf }
 0x384   :  { %347 = vmax.xlane.f32.xlu1 %v346_v26 }
 0x385   :  { %v349_v27 = vsel %vm345_vm5, %v4905_v24, -inf }
 0x386   :  { %350 = vmax.xlane.f32.xlu0 %v349_v27 }
 0x388   :  { %v331_v29 = vpop.f32.mrb[4].mxu1 }
 0x389   :  { %v4922_v31 = vadd.f32 %v331_v29, %v4914_v28  ;;  %v3808_v32 = vpop.f32.mrb[5].mxu1 }
 0x38a   :  { %v334_v34 = vpop.f32.mrb[6].mxu1 }
 0x38b   :  { %v4925_v36 = vadd.f32 %v334_v34, %v4919_v30  ;;  %v3809_v37 = vpop.f32.mrb[7].mxu1  ;;  %v352_v38 = vsel %vm345_vm5, %v4922_v31, -inf }
 0x38c   :  { %353 = vmax.xlane.f32.xlu0 %v352_v38 }
 0x38d   :  { %v355_v39 = vsel %vm345_vm5, %v4925_v36, -inf }
 0x390   :  { %356 = vmax.xlane.f32.xlu0 %v355_v39  ;;  %v339_v41 = vpop.f32.mrb[8].mxu1 }
 0x391   :  { %v3812_v42 = vpop.f32.mrb[9].mxu1  ;;  %v4957_v5 = vadd.f32 %v339_v41, %v4946_v57 }
 0x392   :  { %v342_v43 = vpop.f32.mrb[10].mxu1 }
 0x393   :  { %v3813_v44 = vpop.f32.mrb[11].mxu1  ;;  %v359_v9 = vsel %vm358_vm6, %v4957_v5, -inf }
 0x395   :  { %629 = vrot.lane.b32.xlu1 %v4760_v23, %s6115_s27  ;;  %s6119_s27 = smov 24  }
 0x398   :  { %v549_v45 = vpop.f32.mrb[12].mxu1 }
 0x399   :  { %v4934_v46 = vadd.f32 %v549_v45, %v4894_v17  ;;  %v3840_v47 = vpop.f32.mrb[13].mxu1 }
 0x39a   :  { %v552_v48 = vpop.f32.mrb[14].mxu1 }
 0x39b   :  { %v3841_v49 = vpop.f32.mrb[15].mxu1  ;;  %v571_v50 = vsel %vm345_vm5, %v4934_v46, -inf  ;;  %v4962_v7 = vadd.f32 %v552_v48, %v4899_v19 }
 0x39c   :  { %572 = vmax.xlane.f32.xlu0 %v571_v50 }
 0x39d   :  { %v574_v15 = vsel %vm345_vm5, %v4962_v7, -inf }
 0x3a0   :  { %v557_v51 = vpop.f32.mrb[16].mxu1 }
 0x3a1   :  { %v4939_v52 = vadd.f32 %v557_v51, %v4914_v28  ;;  %v3844_v53 = vpop.f32.mrb[17].mxu1 }
 0x3a2   :  { %v560_v54 = vpop.f32.mrb[18].mxu1 }
 0x3a3   :  { %v3845_v55 = vpop.f32.mrb[19].mxu1  ;;  %v577_v56 = vsel %vm345_vm5, %v4939_v52, -inf  ;;  %v4970_v14 = vadd.f32 %v560_v54, %v4919_v30 }
 0x3a4   :  { %578 = vmax.xlane.f32.xlu0 %v577_v56 }
 0x3a5   :  { %v580_v22 = vsel %vm345_vm5, %v4970_v14, -inf }
 0x3a8   :  { %v565_v58 = vpop.f32.mrb[20].mxu1 }
 0x3a9   :  { %v4949_v59 = vadd.f32 %v565_v58, %v4946_v57  ;;  %v3848_v60 = vpop.f32.mrb[21].mxu1 }
 0x3aa   :  { %v568_v61 = vpop.f32.mrb[22].mxu1 }
 0x3ab   :  { %v3849_v62 = vpop.f32.mrb[23].mxu1  ;;  %v583_v63 = vsel %vm358_vm6, %v4949_v59, -inf }
 0x3ac   :  { %584 = vmax.xlane.f32.xlu0 %v583_v63  ;;  %v5018_v62 = vpop.permute.xlu0 %631 }
 0x3b0   :  { %v769_v0 = vpop.f32.mrb[24].mxu1  ;;  %v5020_v63 = vpop.permute.xlu0 %633 }
 0x3b1   :  { %v3876_v1 = vpop.f32.mrb[25].mxu1  ;;  %v4977_v18 = vadd.f32 %v769_v0, %v4894_v17 }
 0x3b2   :  { %v772_v2 = vpop.f32.mrb[26].mxu1 }
 0x3b3   :  { %v4954_v3 = vadd.f32 %v772_v2, %v4899_v19  ;;  %v3877_v4 = vpop.f32.mrb[27].mxu1  ;;  %v791_v32 = vsel %vm345_vm5, %v4977_v18, -inf }
 0x3b5   :  { %v794_v6 = vsel %vm345_vm5, %v4954_v3, -inf }
 0x3b6   :  { %795 = vmax.xlane.f32.xlu0 %v794_v6 }
 0x3b8   :  { %v777_v8 = vpop.f32.mrb[28].mxu1 }
 0x3b9   :  { %360 = vmax.xlane.f32.xlu1 %v359_v9  ;;  %v3880_v10 = vpop.f32.mrb[29].mxu1  ;;  %v4982_v29 = vadd.f32 %v777_v8, %v4914_v28 }
 0x3ba   :  { %v780_v11 = vpop.f32.mrb[30].mxu1 }
 0x3bb   :  { %v4967_v12 = vadd.f32 %v780_v11, %v4919_v30  ;;  %v3881_v13 = vpop.f32.mrb[31].mxu1  ;;  %v797_v38 = vsel %vm345_vm5, %v4982_v29, -inf }
 0x3bd   :  { %575 = vmax.xlane.f32.xlu1 %v574_v15  ;;  %v800_v16 = vsel %vm345_vm5, %v4967_v12, -inf }
 0x3be   :  { %801 = vmax.xlane.f32.xlu0 %v800_v16 }
 0x3c0   :  { %v785_v21 = vpop.f32.mrb[32].mxu1 }
 0x3c1   :  { %581 = vmax.xlane.f32.xlu1 %v580_v22  ;;  %v3884_v25 = vpop.f32.mrb[33].mxu1  ;;  %v4987_v34 = vadd.f32 %v785_v21, %v4946_v57 }
 0x3c2   :  { %v788_v26 = vpop.f32.mrb[34].mxu1 }
 0x3c3   :  { %v3885_v27 = vpop.f32.mrb[35].mxu1  ;;  %v803_v47 = vsel %vm358_vm6, %v4987_v34, -inf }
 0x3c5   :  { %792 = vmax.xlane.f32.xlu1 %v791_v32 }
 0x3c8   :  { %v989_v37 = vpop.f32.mrb[36].mxu1 }
 0x3c9   :  { %v4992_v39 = vadd.f32 %v989_v37, %v4894_v17  ;;  %798 = vmax.xlane.f32.xlu1 %v797_v38  ;;  %v3912_v41 = vpop.f32.mrb[37].mxu1 }
 0x3ca   :  { %v992_v42 = vpop.f32.mrb[38].mxu1 }
 0x3cb   :  { %v3913_v43 = vpop.f32.mrb[39].mxu1  ;;  %v1011_v44 = vsel %vm345_vm5, %v4992_v39, -inf  ;;  %v4997_v45 = vadd.f32 %v992_v42, %v4899_v19 }
 0x3cc   :  { %1012 = vmax.xlane.f32.xlu0 %v1011_v44 }
 0x3cd   :  { %804 = vmax.xlane.f32.xlu1 %v803_v47  ;;  %v1014_v17 = vsel %vm345_vm5, %v4997_v45, -inf }
 0x3d0   :  { %v997_v48 = vpop.f32.mrb[40].mxu1 }
 0x3d1   :  { %v5004_v49 = vadd.f32 %v997_v48, %v4914_v28  ;;  %1015 = vmax.xlane.f32.xlu1 %v1014_v17  ;;  %v3916_v50 = vpop.f32.mrb[41].mxu1 }
 0x3d2   :  { %v1000_v51 = vpop.f32.mrb[42].mxu1 }
 0x3d3   :  { %v5007_v53 = vadd.f32 %v1000_v51, %v4919_v30  ;;  %v3917_v19 = vpop.f32.mrb[43].mxu1  ;;  %v1017_v54 = vsel %vm345_vm5, %v5004_v49, -inf }
 0x3d4   :  { %1018 = vmax.xlane.f32.xlu0 %v1017_v54 }
 0x3d5   :  { %v1020_v55 = vsel %vm345_vm5, %v5007_v53, -inf }
 0x3d6   :  { %1021 = vmax.xlane.f32.xlu1 %v1020_v55 }
 0x3d8   :  { %v1005_v56 = vpop.f32.mrb[44].mxu1 }
 0x3d9   :  { %v5014_v58 = vadd.f32 %v1005_v56, %v4946_v57  ;;  %v3920_v28 = vpop.f32.mrb[45].mxu1 }
 0x3da   :  { %v1008_v60 = vpop.f32.mrb[46].mxu1 }
 0x3db   :  { %v3921_v61 = vpop.f32.mrb[47].mxu1  ;;  %v1023_v30 = vsel %vm358_vm6, %v5014_v58, -inf }
 0x3dc   :  { %1024 = vmax.xlane.f32.xlu0 %v1023_v30 }
 0x411   :  { %v348_v0 = vpop.xlane.xlu1 %347 }
 0x412   :  { %v362_v1 = vsub.f32 %v4902_v20, %v348_v0 }
 0x413   :  { %v351_v2 = vpop.xlane.xlu0 %350 }
 0x414   :  { %v367_v4 = vmul.f32 1.442695, %v362_v1  ;;  %v363_v6 = vsub.f32 %v4905_v24, %v351_v2 }
 0x415   :  { %v5046_v26 = vpop.permute.xlu1 %629 }
 0x416   :  { %4352 = vpow2.f32 %v367_v4  ;;  %v369_v57 = vmul.f32 1.442695, %v363_v6 }
 0x418   :  { %4354 = vpow2.f32 %v369_v57 }
 0x419   :  { %v354_v8 = vpop.xlane.xlu0 %353 }
 0x41a   :  { %v364_v9 = vsub.f32 %v4922_v31, %v354_v8 }
 0x41c   :  { %v371_v10 = vmul.f32 1.442695, %v364_v9 }
 0x41d   :  { %v357_v11 = vpop.xlane.xlu0 %356 }
 0x41e   :  { %4356 = vpow2.f32 %v371_v10  ;;  %v365_v13 = vsub.f32 %v4925_v36, %v357_v11 }
 0x420   :  { %v5026_v15 = vpop.eup %4352  ;;  %v373_v16 = vmul.f32 1.442695, %v365_v13 }
 0x421   :  { %v377_v20 = vsel %vm345_vm5, %v5026_v15, 0.0 }
 0x422   :  { %v5030_v21 = vpop.eup %4354  ;;  %4358 = vpow2.f32 %v373_v16  ;;  %378 = vadd.xlane.f32.xlu0 %v377_v20 }
 0x423   :  { %v380_v24 = vsel %vm345_vm5, %v5030_v21, 0.0 }
 0x424   :  { %381 = vadd.xlane.f32.xlu1 %v380_v24 }
 0x428   :  { %v5034_v31 = vpop.eup %4356 }
 0x429   :  { %v383_v22 = vsel %vm345_vm5, %v5034_v31, 0.0  ;;  %v573_v41 = vpop.xlane.xlu0 %572 }
 0x42a   :  { %384 = vadd.xlane.f32.xlu0 %v383_v22  ;;  %v586_v43 = vsub.f32 %v4934_v46, %v573_v41 }
 0x42c   :  { %v5038_v36 = vpop.eup %4358  ;;  %v591_v48 = vmul.f32 1.442695, %v586_v43 }
 0x42d   :  { %v386_v25 = vsel %vm345_vm5, %v5038_v36, 0.0 }
 0x42e   :  { %387 = vadd.xlane.f32.xlu1 %v386_v25 }
 0x431   :  { %v579_v47 = vpop.xlane.xlu0 %578 }
 0x432   :  { %v588_v17 = vsub.f32 %v4939_v52, %v579_v47 }
 0x434   :  { %v595_v51 = vmul.f32 1.442695, %v588_v17 }
 0x439   :  { %v585_v54 = vpop.xlane.xlu0 %584 }
 0x43f   :  { %849 = vrot.lane.b32.xlu1 %v4760_v23, %s6113_s0 }
 0x440   :  { %851 = vrot.lane.b32.xlu0 %v4766_v33, %s6113_s0 }
 0x443   :  { %v796_v56 = vpop.xlane.xlu0 %795 }
 0x444   :  { %853 = vrot.lane.b32.xlu0 %v4774_v40, %s6113_s0  ;;  %v807_v52 = vsub.f32 %v4954_v3, %v796_v56 }
 0x446   :  { %v361_v27 = vpop.xlane.xlu1 %360 }
 0x447   :  { %v366_v37 = vsub.f32 %v4957_v5, %v361_v27 }
 0x449   :  { %v375_v42 = vmul.f32 1.442695, %v366_v37 }
 0x44a   :  { %v576_v32 = vpop.xlane.xlu1 %575 }
 0x44b   :  { %v587_v38 = vsub.f32 %v4962_v7, %v576_v32  ;;  %4360 = vpow2.f32 %v375_v42  ;;  %v590_v7 = vsub.f32 %v4949_v59, %v585_v54  ;;  %v813_v59 = vmul.f32 1.442695, %v807_v52  ;;  %v802_v2 = vpop.xlane.xlu0 %801 }
 0x44c   :  { %v809_v57 = vsub.f32 %v4967_v12, %v802_v2 }
 0x44d   :  { %v593_v44 = vmul.f32 1.442695, %v587_v38  ;;  %v599_v60 = vmul.f32 1.442695, %v590_v7 }
 0x44e   :  { %v582_v50 = vpop.xlane.xlu1 %581  ;;  %v817_v11 = vmul.f32 1.442695, %v809_v57 }
 0x44f   :  { %4362 = vpow2.f32 %v593_v44  ;;  %v589_v19 = vsub.f32 %v4970_v14, %v582_v50 }
 0x450   :  { %4364 = vpow2.f32 %v591_v48 }
 0x451   :  { %4366 = vpow2.f32 %v595_v51  ;;  %v597_v55 = vmul.f32 1.442695, %v589_v19 }
 0x452   :  { %v5055_v5 = vpop.xlane.xlu1 %792 }
 0x453   :  { %4368 = vpow2.f32 %v597_v55 }
 0x454   :  { %4370 = vpow2.f32 %v599_v60 }
 0x455   :  { %v5058_v46 = vpop.eup %4360  ;;  %4372 = vpow2.f32 %v813_v59 }
 0x456   :  { %v799_v61 = vpop.xlane.xlu1 %798  ;;  %v389_v30 = vsel %vm358_vm6, %v5058_v46, 0.0 }
 0x457   :  { %v808_v1 = vsub.f32 %v4982_v29, %v799_v61 }
 0x459   :  { %v5060_v28 = vpop.eup %4362  ;;  %v815_v8 = vmul.f32 1.442695, %v808_v1  ;;  %v1013_v13 = vpop.xlane.xlu0 %1012 }
 0x45a   :  { %v604_v14 = vsel %vm345_vm5, %v5060_v28, 0.0  ;;  %v5067_v0 = vpop.eup %4364  ;;  %v805_v6 = vpop.xlane.xlu1 %804  ;;  %v1026_v19 = vsub.f32 %v4992_v39, %v1013_v13 }
 0x45b   :  { %v601_v3 = vsel %vm345_vm5, %v5067_v0, 0.0  ;;  %v5072_v4 = vpop.eup %4366  ;;  %4374 = vpow2.f32 %v815_v8  ;;  %v810_v29 = vsub.f32 %v4987_v34, %v805_v6 }
 0x45c   :  { %v607_v9 = vsel %vm345_vm5, %v5072_v4, 0.0  ;;  %4376 = vpow2.f32 %v817_v11  ;;  %v1031_v55 = vmul.f32 1.442695, %v1026_v19 }
 0x45d   :  { %v5077_v10 = vpop.eup %4368  ;;  %v819_v12 = vmul.f32 1.442695, %v810_v29  ;;  %v647_v29 = vsel %vm422_vm4, %v5020_v63, 0 }
 0x45e   :  { %v1016_v16 = vpop.xlane.xlu1 %1015  ;;  %v610_v20 = vsel %vm345_vm5, %v5077_v10, 0.0  ;;  %v5082_v24 = vpop.eup %4370 }
 0x45f   :  { %v1027_v22 = vsub.f32 %v4997_v45, %v1016_v16  ;;  %v613_v27 = vsel %vm358_vm6, %v5082_v24, 0.0  ;;  %v5087_v32 = vpop.eup %4372  ;;  %4378 = vpow2.f32 %v819_v12 }
 0x460   :  { %v824_v41 = vsel %vm345_vm5, %v5087_v32, 0.0 }
 0x461   :  { %v1019_v25 = vpop.xlane.xlu0 %1018  ;;  %v1033_v34 = vmul.f32 1.442695, %v1027_v22 }
 0x462   :  { %v1028_v37 = vsub.f32 %v5004_v49, %v1019_v25 }
 0x463   :  { %605 = vadd.xlane.f32.xlu0 %v604_v14  ;;  %390 = vadd.xlane.f32.xlu1 %v389_v30  ;;  %v1022_v38 = vpop.xlane.xlu1 %1021  ;;  %4380 = vpow2.f32 %v1033_v34 }
 0x464   :  { %v1035_v45 = vmul.f32 1.442695, %v1028_v37  ;;  %v1029_v43 = vsub.f32 %v5007_v53, %v1022_v38  ;;  %v806_v53 = vsub.f32 %v4977_v18, %v5055_v5 }
 0x465   :  { %v5092_v42 = vpop.eup %4374 }
 0x466   :  { %v827_v44 = vsel %vm345_vm5, %v5092_v42, 0.0  ;;  %v5099_v47 = vpop.eup %4376  ;;  %4382 = vpow2.f32 %v1035_v45  ;;  %v1037_v49 = vmul.f32 1.442695, %v1029_v43  ;;  %v811_v51 = vmul.f32 1.442695, %v806_v53 }
 0x467   :  { %602 = vadd.xlane.f32.xlu1 %v601_v3  ;;  %v830_v48 = vsel %vm345_vm5, %v5099_v47, 0.0 }
 0x468   :  { %4384 = vpow2.f32 %v1037_v49 }
 0x469   :  { %v5103_v17 = vpop.eup %4378  ;;  %4386 = vpow2.f32 %v811_v51  ;;  %v1025_v14 = vpop.xlane.xlu0 %1024 }
 0x46a   :  { %4388 = vpow2.f32 %v1031_v55  ;;  %v1030_v3 = vsub.f32 %v5014_v58, %v1025_v14 }
 0x46b   :  { %608 = vadd.xlane.f32.xlu1 %v607_v9 }
 0x46c   :  { %v1039_v9 = vmul.f32 1.442695, %v1030_v3 }
 0x46d   :  { %v5109_v50 = vpop.eup %4380 }
 0x46e   :  { %v1044_v54 = vsel %vm345_vm5, %v5109_v50, 0.0 }
 0x46f   :  { %611 = vadd.xlane.f32.xlu1 %v610_v20 }
 0x470   :  { %v5114_v7 = vpop.eup %4382 }
 0x471   :  { %v1047_v18 = vsel %vm345_vm5, %v5114_v7, 0.0 }
 0x472   :  { %v5118_v5 = vpop.eup %4384 }
 0x473   :  { %614 = vadd.xlane.f32.xlu1 %v613_v27  ;;  %v1050_v56 = vsel %vm345_vm5, %v5118_v5, 0.0  ;;  %v5122_v39 = vpop.eup %4386 }
 0x474   :  { %v821_v60 = vsel %vm345_vm5, %v5122_v39, 0.0  ;;  %v5126_v52 = vpop.eup %4388 }
 0x475   :  { %v1041_v61 = vsel %vm345_vm5, %v5126_v52, 0.0 }
 0x477   :  { %825 = vadd.xlane.f32.xlu1 %v824_v41 }
 0x479   :  { %1069 = vrot.lane.b32.xlu0 %v4760_v23, %s6111_s30  ;;  %v833_v23 = vsel %vm358_vm6, %v5103_v17, 0.0 }
 0x47b   :  { %828 = vadd.xlane.f32.xlu1 %v827_v44 }
 0x47f   :  { %831 = vadd.xlane.f32.xlu1 %v830_v48 }
 0x483   :  { %834 = vadd.xlane.f32.xlu1 %v833_v23 }
 0x487   :  { %1045 = vadd.xlane.f32.xlu1 %v1044_v54 }
 0x48b   :  { %1048 = vadd.xlane.f32.xlu1 %v1047_v18 }
 0x48f   :  { %1051 = vadd.xlane.f32.xlu1 %v1050_v56 }
 0x498   :  { %822 = vadd.xlane.f32.xlu0 %v821_v60 }
 0x49c   :  { %1042 = vadd.xlane.f32.xlu0 %v1041_v61 }
 0x4a0   :  { %1071 = vrot.lane.b32.xlu1 %v4766_v33, %s6111_s30 }
 0x4af   :  { %v379_v30 = vpop.xlane.xlu0 %378 }
 0x4b0   :  { %4390 = vrcp.f32 %v379_v30 }
 0x4b1   :  { %v382_v59 = vpop.xlane.xlu1 %381 }
 0x4b2   :  { %4392 = vrcp.f32 %v382_v59  ;;  %1073 = vrot.lane.b32.xlu0 %v4774_v40, %s6111_s30  ;;  %s6133_s30 = smov 8  }
 0x4b7   :  { %v385_v1 = vpop.xlane.xlu0 %384 }
 0x4b8   :  { %4394 = vrcp.f32 %v385_v1 }
 0x4ba   :  { %v4391_v2 = vpop.eup %4390 }
 0x4bb   :  { %v388_v6 = vpop.xlane.xlu1 %387  ;;  %v397_v8 = vmul.f32 %v4391_v2, %v5026_v15 }
 0x4bc   :  { %v4393_v57 = vpop.eup %4392  ;;  %4396 = vrcp.f32 %v388_v6 }
 0x4bd   :  { %v398_v33 = vmul.f32 %v4393_v57, %v5030_v21  ;;  %4398 = vpow2.f32 %v1039_v9 }
 0x4bf   :  { %v402_v11 = vpack.c.bf16 %v398_v33, %v397_v8 }
 0x4c1   :  { %3821 = vmatmul.mubr.msk.bf16.vlgmr.msra.gmra.mrb[12].mxu0 %vm345_vm5, %v402_v11 }
 0x4c2   :  { %3851 = vmatpush3.bf16.msra.mxu0 %v5046_v26  ;;  %3824 = vmatprep.mubr.msk.bf16.mxu0 %vm4583_vm2, %v4582_v35  ;;  %v4395_v40 = vpop.eup %4394 }
 0x4c3   :  { %3852 = vmatprep.subr.bf16.mxu0 %v4582_v35  ;;  %v399_v15 = vmul.f32 %v4395_v40, %v5034_v31  ;;  %v852_v31 = vpop.permute.xlu0 %851 }
 0x4c6   :  { %v4397_v58 = vpop.eup %4396  ;;  %3853 = vmatpush3.bf16.msra.mxu0 %v5018_v62 }
 0x4c7   :  { %3854 = vmatprep.subr.bf16.mxu0 %v4582_v35  ;;  %v400_v21 = vmul.f32 %v4397_v58, %v5038_v36  ;;  %v5152_v13 = vpop.eup %4398  ;;  %v850_v36 = vpop.permute.xlu1 %849 }
 0x4c8   :  { %v1053_v62 = vsel %vm358_vm6, %v5152_v13, 0.0  ;;  %v854_v16 = vpop.permute.xlu0 %853 }
 0x4c9   :  { %v403_v26 = vpack.c.bf16 %v400_v21, %v399_v15  ;;  %v867_v19 = vsel %vm422_vm4, %v854_v16, 0 }
 0x4ca   :  { %3855 = vmatpush3.bf16.msra.mxu0 %v647_v29 }
 0x4cb   :  { %3825 = vmatmul.mubr.msk.bf16.gmra.mrb[16].mxu0 %vm345_vm5, %v403_v26  ;;  %3886 = vmatprep.subr.bf16.mxu0 %v4582_v35 }
 0x4cc   :  { %3828 = vmatprep.mubr.msk.bf16.mxu0 %vm4583_vm2, %v4582_v35 }
 0x4d1   :  { %1054 = vadd.xlane.f32.xlu0 %v1053_v62 }
 0x4f0   :  { %v391_v20 = vpop.xlane.xlu1 %390  ;;  %v606_v63 = vpop.xlane.xlu0 %605 }
 0x4f1   :  { %4400 = vrcp.f32 %v391_v20 }
 0x4f4   :  { %v603_v12 = vpop.xlane.xlu1 %602  ;;  %v1070_v18 = vpop.permute.xlu0 %1069 }
 0x4f5   :  { %4402 = vrcp.f32 %v603_v12 }
 0x4f6   :  { %4404 = vrcp.f32 %v606_v63 }
 0x4f8   :  { %v609_v22 = vpop.xlane.xlu1 %608 }
 0x4fb   :  { %v4401_v25 = vpop.eup %4400 }
 0x4fc   :  { %v612_v27 = vpop.xlane.xlu1 %611  ;;  %v401_v34 = vmul.f32 %v4401_v25, %v5058_v46 }
 0x4fd   :  { %4406 = vrcp.f32 %v612_v27 }
 0x4fe   :  { %v404_v37 = vpack.c.bf16 %v401_v34, %v401_v34  ;;  %4408 = vrcp.f32 %v609_v22 }
 0x4ff   :  { %v4403_v38 = vpop.eup %4402 }
 0x500   :  { %3829 = vmatmul.mubr.msk.bf16.gmra.mrb[20].mxu0 %vm345_vm5, %v404_v37  ;;  %v4405_v41 = vpop.eup %4404  ;;  %v621_v45 = vmul.f32 %v4403_v38, %v5067_v0  ;;  %v615_v43 = vpop.xlane.xlu1 %614 }
 0x501   :  { %3856 = vmatprep.mubr.msk.bf16.mxu0 %vm4583_vm2, %v4582_v35  ;;  %v622_v44 = vmul.f32 %v4405_v41, %v5060_v28  ;;  %4410 = vrcp.f32 %v615_v43 }
 0x503   :  { %v626_v49 = vpack.c.bf16 %v622_v44, %v621_v45 }
 0x504   :  { %v826_v51 = vpop.xlane.xlu1 %825 }
 0x505   :  { %4412 = vrcp.f32 %v826_v51 }
 0x507   :  { %v4407_v48 = vpop.eup %4406 }
 0x508   :  { %3857 = vmatmul.mubr.msk.bf16.vlgmr.msra.gmra.mrb[24].mxu0 %vm345_vm5, %v626_v49  ;;  %v4409_v46 = vpop.eup %4408  ;;  %v624_v53 = vmul.f32 %v4407_v48, %v5077_v10  ;;  %v829_v10 = vpop.xlane.xlu1 %828 }
 0x509   :  { %3887 = vmatpush3.bf16.msra.mxu0 %v850_v36  ;;  %3860 = vmatprep.mubr.msk.bf16.mxu0 %vm4583_vm2, %v4582_v35  ;;  %v623_v23 = vmul.f32 %v4409_v46, %v5072_v4 }
 0x50a   :  { %3888 = vmatprep.subr.bf16.mxu0 %v4582_v35 }
 0x50b   :  { %v627_v28 = vpack.c.bf16 %v624_v53, %v623_v23  ;;  %v4411_v0 = vpop.eup %4410 }
 0x50c   :  { %v625_v54 = vmul.f32 %v4411_v0, %v5082_v24  ;;  %v832_v55 = vpop.xlane.xlu1 %831 }
 0x50d   :  { %3889 = vmatpush3.bf16.msra.mxu0 %v852_v31 }
 0x50e   :  { %3890 = vmatprep.subr.bf16.mxu0 %v4582_v35  ;;  %v628_v4 = vpack.c.bf16 %v625_v54, %v625_v54 }
 0x50f   :  { %v4413_v24 = vpop.eup %4412 }
 0x510   :  { %3861 = vmatmul.mubr.msk.bf16.gmra.mrb[28].mxu0 %vm345_vm5, %v627_v28  ;;  %v835_v56 = vpop.xlane.xlu1 %834  ;;  %v842_v59 = vmul.f32 %v4413_v24, %v5087_v32 }
 0x511   :  { %3891 = vmatpush3.bf16.msra.mxu0 %v867_v19  ;;  %3864 = vmatprep.mubr.msk.bf16.mxu0 %vm4583_vm2, %v4582_v35 }
 0x512   :  { %3922 = vmatprep.subr.bf16.mxu0 %v4582_v35 }
 0x514   :  { %v1046_v61 = vpop.xlane.xlu1 %1045 }
 0x518   :  { %3865 = vmatmul.mubr.msk.bf16.gmra.mrb[32].mxu0 %vm345_vm5, %v628_v4  ;;  %v1049_v14 = vpop.xlane.xlu1 %1048 }
 0x519   :  { %3892 = vmatprep.mubr.msk.bf16.mxu0 %vm4583_vm2, %v4582_v35 }
 0x51c   :  { %v1052_v2 = vpop.xlane.xlu1 %1051 }
 0x520   :  { %v1072_v9 = vpop.permute.xlu1 %1071 }
 0x525   :  { %v823_v60 = vpop.xlane.xlu0 %822 }
 0x526   :  { %4414 = vrcp.f32 %v823_v60 }
 0x527   :  { %4416 = vrcp.f32 %v832_v55 }
 0x528   :  { %4418 = vrcp.f32 %v829_v10 }
 0x529   :  { %4420 = vrcp.f32 %v835_v56  ;;  %v1043_v57 = vpop.xlane.xlu0 %1042  ;;  %v4315_v56 = vld [vmem:[%s6097_s6 + $0x8] sm:$0xff]  }
 0x52a   :  { %4422 = vrcp.f32 %v1043_v57 }
 0x52b   :  { %4424 = vrcp.f32 %v1046_v61 }
 0x52c   :  { %4426 = vrcp.f32 %v1052_v2 }
 0x52d   :  { %4428 = vrcp.f32 %v1049_v14 }
 0x530   :  { %v4415_v30 = vpop.eup %4414 }
 0x531   :  { %v841_v1 = vmul.f32 %v4415_v30, %v5122_v39  ;;  %v4417_v6 = vpop.eup %4416  ;;  %v1074_v39 = vpop.permute.xlu0 %1073 }
 0x532   :  { %v4419_v8 = vpop.eup %4418  ;;  %v844_v33 = vmul.f32 %v4417_v6, %v5099_v47  ;;  %v1087_v58 = vsel %vm422_vm4, %v1074_v39, 0 }
 0x533   :  { %v846_v3 = vpack.c.bf16 %v842_v59, %v841_v1  ;;  %v843_v32 = vmul.f32 %v4419_v8, %v5092_v42  ;;  %v4421_v40 = vpop.eup %4420 }
 0x534   :  { %v845_v47 = vmul.f32 %v4421_v40, %v5103_v17  ;;  %v4423_v15 = vpop.eup %4422 }
 0x535   :  { %3893 = vmatmul.mubr.msk.bf16.vlgmr.msra.gmra.mrb[36].mxu0 %vm345_vm5, %v846_v3  ;;  %v847_v11 = vpack.c.bf16 %v844_v33, %v843_v32  ;;  %v4425_v21 = vpop.eup %4424  ;;  %v1061_v29 = vmul.f32 %v4423_v15, %v5126_v52 }
 0x536   :  { %3923 = vmatpush3.bf16.msra.mxu0 %v1070_v18  ;;  %3896 = vmatprep.mubr.msk.bf16.mxu0 %vm4583_vm2, %v4582_v35  ;;  %v848_v42 = vpack.c.bf16 %v845_v47, %v845_v47  ;;  %v1062_v26 = vmul.f32 %v4425_v21, %v5109_v50  ;;  %v4427_v31 = vpop.eup %4426  ;;  %v4314_v18 = vld [vmem:[%s6097_s6] sm:$0xff]  }
 0x537   :  { %3924 = vmatprep.subr.bf16.mxu0 %v4582_v35  ;;  %v4429_v17 = vpop.eup %4428  ;;  %v1064_v36 = vmul.f32 %v4427_v31, %v5118_v5  ;;  %3941 = vmatpush3.bf16.msra.mxu1 %v4314_v18 }
 0x538   :  { %v1066_v62 = vpack.c.bf16 %v1062_v26, %v1061_v29  ;;  %v1063_v16 = vmul.f32 %v4429_v17, %v5114_v7  ;;  %3942 = vmatprep.subr.bf16.mxu1 %v4582_v35 }
 0x53a   :  { %3925 = vmatpush3.bf16.msra.mxu0 %v1072_v9  ;;  %v1067_v20 = vpack.c.bf16 %v1064_v36, %v1063_v16 }
 0x53b   :  { %3926 = vmatprep.subr.bf16.mxu0 %v4582_v35  ;;  %3943 = vmatpush3.bf16.msra.mxu1 %v4315_v56 }
 0x53c   :  { %3972 = vmatprep.subr.bf16.mxu1 %v4582_v35 }
 0x53d   :  { %3897 = vmatmul.mubr.msk.bf16.gmra.mrb[40].mxu0 %vm345_vm5, %v847_v11 }
 0x53e   :  { %3927 = vmatpush3.bf16.msra.mxu0 %v1087_v58  ;;  %3900 = vmatprep.mubr.msk.bf16.mxu0 %vm4583_vm2, %v4582_v35 }
 0x53f   :  { %3956 = vmatprep.subr.bf16.mxu0 %v4582_v35 }
 0x545   :  { %3901 = vmatmul.mubr.msk.bf16.gmra.mrb[44].mxu0 %vm345_vm5, %v848_v42 }
 0x546   :  { %3928 = vmatprep.mubr.msk.bf16.mxu0 %vm4583_vm2, %v4582_v35 }
 0x54d   :  { %3929 = vmatmul.mubr.msk.bf16.vlgmr.msra.gmra.mrb[48].mxu0 %vm345_vm5, %v1066_v62 }
 0x54e   :  { %3932 = vmatprep.mubr.msk.bf16.mxu0 %vm4583_vm2, %v4582_v35 }
 0x555   :  { %3933 = vmatmul.mubr.msk.bf16.gmra.mrb[52].mxu0 %vm345_vm5, %v1067_v20 }
 0x556   :  { %3936 = vmatprep.mubr.msk.bf16.mxu0 %vm4583_vm2, %v4582_v35 }
 0x55e   :  { %v1055_v52 = vpop.xlane.xlu0 %1054 }
 0x55f   :  { %4430 = vrcp.f32 %v1055_v52 }
 0x569   :  { %v4431_v50 = vpop.eup %4430 }
 0x56a   :  { %v1065_v63 = vmul.f32 %v4431_v50, %v5152_v13 }
 0x56c   :  { %v1068_v12 = vpack.c.bf16 %v1065_v63, %v1065_v63 }
 0x56e   :  { %3937 = vmatmul.mubr.msk.bf16.gmra.mrb[56].mxu0 %vm345_vm5, %v1068_v12 }
 0x56f   :  { %3960 = vmatprep.mubr.msk.bf16.mxu0 %vm4583_vm2, %v4582_v35 }
 0x594   :  { %v5210_v5 = vpop.f32.mrb[12].mxu0 }
 0x595   :  { %v3822_v7 = vpop.f32.mrb[13].mxu0 }
 0x596   :  { %v5212_v22 = vpop.f32.mrb[14].mxu0 }
 0x597   :  { %v3823_v25 = vpop.f32.mrb[15].mxu0 }
 0x59e   :  { %v5214_v27 = vpop.f32.mrb[16].mxu0 }
 0x59f   :  { %v3826_v34 = vpop.f32.mrb[17].mxu0 }
 0x5a0   :  { %v5216_v37 = vpop.f32.mrb[18].mxu0 }
 0x5a1   :  { %v3827_v38 = vpop.f32.mrb[19].mxu0 }
 0x5d3   :  { %v5218_v41 = vpop.f32.mrb[20].mxu0 }
 0x5d4   :  { %v3830_v13 = vpop.f32.mrb[21].mxu0 }
 0x5d5   :  { %v479_v45 = vpop.f32.mrb[22].mxu0 }
 0x5d6   :  { %v3831_v43 = vpop.f32.mrb[23].mxu0 }
 0x5db   :  { %v683_v44 = vpop.f32.mrb[24].mxu0 }
 0x5dc   :  { %v3858_v49 = vpop.f32.mrb[25].mxu0 }
 0x5dd   :  { %v686_v48 = vpop.f32.mrb[26].mxu0 }
 0x5de   :  { %v4252_v46 = vpack.i.bf16 %v686_v48, %v683_v44  ;;  %v3859_v53 = vpop.f32.mrb[27].mxu0 }
 0x5e0   :  { %4253 = vrot.lane.b32.xlu1 %v4252_v46, %s6123_s28 }
 0x5e3   :  { %v691_v23 = vpop.f32.mrb[28].mxu0 }
 0x5e4   :  { %v3862_v28 = vpop.f32.mrb[29].mxu0 }
 0x5e5   :  { %v694_v0 = vpop.f32.mrb[30].mxu0 }
 0x5e6   :  { %v4267_v51 = vpack.i.bf16 %v694_v0, %v691_v23  ;;  %v3863_v19 = vpop.f32.mrb[31].mxu0 }
 0x5eb   :  { %v699_v54 = vpop.f32.mrb[32].mxu0 }
 0x5ec   :  { %v3866_v10 = vpop.f32.mrb[33].mxu0 }
 0x5ed   :  { %v702_v4 = vpop.f32.mrb[34].mxu0 }
 0x5ee   :  { %v3867_v55 = vpop.f32.mrb[35].mxu0 }
 0x608   :  { %v903_v60 = vpop.f32.mrb[36].mxu0 }
 0x609   :  { %v3894_v61 = vpop.f32.mrb[37].mxu0 }
 0x60a   :  { %v906_v14 = vpop.f32.mrb[38].mxu0 }
 0x60b   :  { %v4257_v24 = vpack.i.bf16 %v906_v14, %v903_v60  ;;  %v3895_v30 = vpop.f32.mrb[39].mxu0 }
 0x60d   :  { %4258 = vrot.lane.b32.xlu1 %v4257_v24, %s6121_s25 }
 0x610   :  { %v911_v59 = vpop.f32.mrb[40].mxu0 }
 0x611   :  { %v3898_v1 = vpop.f32.mrb[41].mxu0 }
 0x612   :  { %v914_v2 = vpop.f32.mrb[42].mxu0 }
 0x613   :  { %v4272_v3 = vpack.i.bf16 %v914_v2, %v911_v59  ;;  %v3899_v6 = vpop.f32.mrb[43].mxu0  ;;  %v3506_v59 = vld [vmem:[%s6098_s7] ss:$0 sm:$0xff] }
 0x618   :  { %v919_v57 = vpop.f32.mrb[44].mxu0 }
 0x619   :  { %v3902_v8 = vpop.f32.mrb[45].mxu0 }
 0x61a   :  { %v922_v33 = vpop.f32.mrb[46].mxu0 }
 0x61b   :  { %v3903_v9 = vpop.f32.mrb[47].mxu0 }
 0x61c   :  { %v4573_v9 = vld [vmem:[%s6127_s26 + $0x8] sm:$0xff] }
 0x620   :  { %v1123_v32 = vpop.f32.mrb[48].mxu0 }
 0x621   :  { %v3930_v39 = vpop.f32.mrb[49].mxu0 }
 0x622   :  { %v1126_v11 = vpop.f32.mrb[50].mxu0 }
 0x623   :  { %v4262_v40 = vpack.i.bf16 %v1126_v11, %v1123_v32  ;;  %v3931_v58 = vpop.f32.mrb[51].mxu0 }
 0x625   :  { %4263 = vrot.lane.b32.xlu1 %v4262_v40, %s6119_s27 }
 0x628   :  { %v1131_v47 = vpop.f32.mrb[52].mxu0 }
 0x629   :  { %4268 = vrot.lane.b32.xlu1 %v4267_v51, %s6123_s28  ;;  %v3934_v42 = vpop.f32.mrb[53].mxu0 }
 0x62a   :  { %v1134_v15 = vpop.f32.mrb[54].mxu0 }
 0x62b   :  { %v4277_v21 = vpack.i.bf16 %v1134_v15, %v1131_v47  ;;  %v3935_v29 = vpop.f32.mrb[55].mxu0  ;;  %v4574_v15 = vld [vmem:[%s6127_s26 + $0x10] sm:$0xff] }
 0x62d   :  { %4273 = vrot.lane.b32.xlu1 %v4272_v3, %s6121_s25  ;;  %4278 = vrot.lane.b32.xlu0 %v4277_v21, %s6119_s27 }
 0x631   :  { %1158 = vrot.lane.b32.xlu1 %v699_v54, %s6123_s28  ;;  %s6132_s28 = smov 40  }
 0x635   :  { %1178 = vrot.lane.b32.xlu1 %v919_v57, %s6121_s25 }
 0x641   :  { %v1139_v26 = vpop.f32.mrb[56].mxu0 }
 0x642   :  { %1198 = vrot.lane.b32.xlu1 %v1139_v26, %s6119_s27  ;;  %v3938_v62 = vpop.f32.mrb[57].mxu0 }
 0x643   :  { %v1142_v31 = vpop.f32.mrb[58].mxu0  ;;  %v4575_v62 = vld [vmem:[%s6127_s26 + $0x18] sm:$0xff] }
 0x644   :  { %v3939_v17 = vpop.f32.mrb[59].mxu0 }
 0x652   :  { %v4254_v36 = vpop.permute.xlu1 %4253 }
 0x653   :  { %v4256_v20 = vunpack.i.h.bf16 %v4254_v36  ;;  %v4255_v52 = vunpack.i.l.bf16 %v4254_v36 }
 0x655   :  { %v1206_v7 = vsel %vm270_vm3, %v5212_v22, %v4256_v20  ;;  %v1205_v25 = vsel %vm270_vm3, %v5210_v5, %v4255_v52 }
 0x67f   :  { %v4259_v16 = vpop.permute.xlu1 %4258 }
 0x680   :  { %v4261_v50 = vunpack.i.h.bf16 %v4259_v16  ;;  %v4260_v63 = vunpack.i.l.bf16 %v4259_v16 }
 0x682   :  { %v1212_v13 = vsel %vm1210_vm7, %v1206_v7, %v4261_v50  ;;  %v1211_v45 = vsel %vm1210_vm7, %v1205_v25, %v4260_v63  ;;  %v4576_v63 = vld [vmem:[%s6127_s26 + $0x20] sm:$0xf] }
 0x697   :  { %v4264_v12 = vpop.permute.xlu1 %4263 }
 0x698   :  { %v4266_v34 = vunpack.i.h.bf16 %v4264_v12  ;;  %v4265_v38 = vunpack.i.l.bf16 %v4264_v12 }
 0x69a   :  { %v1218_v43 = vsel %vm1216_vm8, %v1212_v13, %v4266_v34  ;;  %v1217_v44 = vsel %vm1216_vm8, %v1211_v45, %v4265_v38 }
 0x69b   :  { %v1222_v49 = vpack.c.bf16 %v1218_v43, %v1217_v44  ;;  %v4269_v48 = vpop.permute.xlu1 %4268 }
 0x69c   :  { %v4271_v46 = vunpack.i.h.bf16 %v4269_v48  ;;  %v4270_v53 = vunpack.i.l.bf16 %v4269_v48 }
 0x69d   :  { %3945 = vmatmul.mubr.msk.bf16.vlgmr.msra.gmra.mrb[48].mxu1 %vm69_vm0, %v1222_v49 }
 0x69e   :  { %3948 = vmatprep.mubr.msk.bf16.mxu1 %vm4583_vm2, %v4582_v35  ;;  %v1208_v19 = vsel %vm270_vm3, %v5216_v37, %v4271_v46  ;;  %v1207_v54 = vsel %vm270_vm3, %v5214_v27, %v4270_v53 }
 0x69f   :  { %v4274_v5 = vpop.permute.xlu1 %4273  ;;  %v4279_v22 = vpop.permute.xlu0 %4278 }
 0x6a0   :  { %v4276_v23 = vunpack.i.h.bf16 %v4274_v5  ;;  %v4275_v28 = vunpack.i.l.bf16 %v4274_v5  ;;  %v4281_v0 = vunpack.i.h.bf16 %v4279_v22  ;;  %v4280_v51 = vunpack.i.l.bf16 %v4279_v22 }
 0x6a2   :  { %v1213_v10 = vsel %vm1210_vm7, %v1207_v54, %v4275_v28  ;;  %v1214_v4 = vsel %vm1210_vm7, %v1208_v19, %v4276_v23 }
 0x6a3   :  { %v1220_v55 = vsel %vm1216_vm8, %v1214_v4, %v4281_v0  ;;  %v1219_v18 = vsel %vm1216_vm8, %v1213_v10, %v4280_v51  ;;  %v1159_v60 = vpop.permute.xlu1 %1158 }
 0x6a4   :  { %v1223_v56 = vpack.c.bf16 %v1220_v55, %v1219_v18  ;;  %v1209_v37 = vsel %vm270_vm3, %v5218_v41, %v1159_v60  ;;  %v4572_v41 = vld [vmem:[%s6127_s26] sm:$0xff] }
 0x6a6   :  { %3949 = vmatmul.mubr.msk.bf16.gmra.mrb[52].mxu1 %vm69_vm0, %v1223_v56 }
 0x6a7   :  { %3952 = vmatprep.mubr.msk.bf16.mxu1 %vm4583_vm2, %v4582_v35  ;;  %v1179_v61 = vpop.permute.xlu1 %1178 }
 0x6a8   :  { %v1215_v27 = vsel %vm1210_vm7, %v1209_v37, %v1179_v61  ;;  %v4316_v37 = vld [vmem:[%s6099_s10] sm:$0xff]  }
 0x6a9   :  { %3957 = vmatpush3.bf16.msra.mxu0 %v4316_v37 }
 0x6aa   :  { %3958 = vmatprep.subr.bf16.mxu0 %v4582_v35 }
 0x6b4   :  { %v1199_v14 = vpop.permute.xlu1 %1198 }
 0x6b5   :  { %v1221_v24 = vsel %vm1216_vm8, %v1215_v27, %v1199_v14  ;;  %v4317_v27 = vld [vmem:[%s6099_s10 + $0x8] sm:$0xff]  }
 0x6b6   :  { %v1224_v30 = vpack.c.bf16 %v1221_v24, %v1221_v24  ;;  %3959 = vmatpush3.bf16.msra.mxu0 %v4317_v27 }
 0x6b7   :  { %4000 = vmatprep.subr.bf16.mxu0 %v4582_v35 }
 0x6b8   :  { %3953 = vmatmul.mubr.msk.bf16.gmra.mrb[56].mxu1 %vm69_vm0, %v1224_v30 }
 0x6b9   :  { %3988 = vmatprep.mubr.msk.bf16.mxu1 %vm4583_vm2, %v4582_v35 }
 0x770   :  { %v1291_v1 = vpop.f32.mrb[48].mxu1 }
 0x771   :  { %v1292_v2 = vadd.f32 %v3506_v59, %v1291_v1  ;;  %v3946_v3 = vpop.f32.mrb[49].mxu1 }
 0x772   :  { %v1294_v6 = vpop.f32.mrb[50].mxu1 }
 0x773   :  { %v5272_v57 = vadd.f32 %v4572_v41, %v1292_v2  ;;  %v1295_v8 = vadd.f32 %v3506_v59, %v1294_v6  ;;  %v3947_v33 = vpop.f32.mrb[51].mxu1 }
 0x775   :  { %v5277_v32 = vadd.f32 %v4573_v9, %v1295_v8  ;;  %v1320_v39 = vsel %vm69_vm0, %v5272_v57, 0.0 }
 0x776   :  { %1321 = vadd.xlane.f32.xlu1 %v1320_v39  ;;  %v3512_v39 = vld [vmem:[%s6100_s8] ss:$0 sm:$0xff] }
 0x777   :  { %v1323_v11 = vsel %vm69_vm0, %v5277_v32, 0.0 }
 0x778   :  { %1324 = vadd.xlane.f32.xlu0 %v1323_v11 }
 0x779   :  { %v1299_v40 = vpop.f32.mrb[52].mxu1 }
 0x77a   :  { %v1300_v58 = vadd.f32 %v3506_v59, %v1299_v40  ;;  %v3950_v47 = vpop.f32.mrb[53].mxu1 }
 0x77b   :  { %v1302_v42 = vpop.f32.mrb[54].mxu1 }
 0x77c   :  { %v5286_v21 = vadd.f32 %v4574_v15, %v1300_v58  ;;  %v1303_v29 = vadd.f32 %v3506_v59, %v1302_v42  ;;  %v3951_v26 = vpop.f32.mrb[55].mxu1  ;;  %v3513_v15 = vld [vmem:[%s6101_s9] ss:$0 sm:$0xff] }
 0x77e   :  { %v5291_v31 = vadd.f32 %v4575_v62, %v1303_v29  ;;  %v1326_v17 = vsel %vm69_vm0, %v5286_v21, 0.0 }
 0x77f   :  { %1327 = vadd.xlane.f32.xlu1 %v1326_v17 }
 0x780   :  { %v1329_v36 = vsel %vm69_vm0, %v5291_v31, 0.0 }
 0x783   :  { %1330 = vadd.xlane.f32.xlu1 %v1329_v36 }
 0x78b   :  { %v1307_v16 = vpop.f32.mrb[56].mxu1 }
 0x78c   :  { %v1308_v20 = vadd.f32 %v3506_v59, %v1307_v16  ;;  %v3954_v52 = vpop.f32.mrb[57].mxu1 }
 0x78d   :  { %v1310_v50 = vpop.f32.mrb[58].mxu1 }
 0x78e   :  { %v5300_v12 = vadd.f32 %v4576_v63, %v1308_v20  ;;  %v3955_v7 = vpop.f32.mrb[59].mxu1 }
 0x790   :  { %v1332_v25 = vsel %vm82_vm1, %v5300_v12, 0.0 }
 0x791   :  { %1333 = vadd.xlane.f32.xlu0 %v1332_v25 }
 0x803   :  { %v1322_v34 = vpop.xlane.xlu1 %1321 }
 0x804   :  { %v1335_v38 = vmul.f32 0.03125, %v1322_v34 }
 0x805   :  { %v1325_v13 = vpop.xlane.xlu0 %1324 }
 0x806   :  { %v1340_v45 = vsub.f32 %v5272_v57, %v1335_v38  ;;  %v1336_v43 = vmul.f32 0.03125, %v1325_v13 }
 0x808   :  { %v1341_v44 = vsub.f32 %v5277_v32, %v1336_v43  ;;  %v1345_v49 = vmul.f32 %v1340_v45, %v1340_v45 }
 0x80a   :  { %v1350_v48 = vsel %vm69_vm0, %v1345_v49, 0.0  ;;  %v1346_v46 = vmul.f32 %v1341_v44, %v1341_v44 }
 0x80b   :  { %1351 = vadd.xlane.f32.xlu1 %v1350_v48 }
 0x80c   :  { %v1328_v53 = vpop.xlane.xlu1 %1327  ;;  %v1353_v5 = vsel %vm69_vm0, %v1346_v46, 0.0 }
 0x80d   :  { %v1337_v22 = vmul.f32 0.03125, %v1328_v53  ;;  %1354 = vadd.xlane.f32.xlu0 %v1353_v5  ;;  %v4318_v53 = vld [vmem:[%s6102_s12] sm:$0xff]   ;;  %v4319_v5 = vld [vmem:[%s6102_s12 + $0x8] sm:$0xff]  }
 0x80e   :  { %3973 = vmatpush3.bf16.msra.mxu1 %v4318_v53 }
 0x80f   :  { %v1342_v23 = vsub.f32 %v5286_v21, %v1337_v22  ;;  %3974 = vmatprep.subr.bf16.mxu1 %v4582_v35  ;;  %v4320_v22 = vld [vmem:[%s6102_s12 + $0x10] sm:$0xff]  }
 0x810   :  { %v1331_v28 = vpop.xlane.xlu1 %1330 }
 0x811   :  { %v1338_v0 = vmul.f32 0.03125, %v1331_v28  ;;  %v1347_v51 = vmul.f32 %v1342_v23, %v1342_v23  ;;  %v4322_v28 = vld [vmem:[%s6102_s12 + $0x20] sm:$0xff]  }
 0x812   :  { %3975 = vmatpush3.bf16.msra.mxu1 %v4319_v5 }
 0x813   :  { %v1343_v19 = vsub.f32 %v5291_v31, %v1338_v0  ;;  %v1356_v54 = vsel %vm69_vm0, %v1347_v51, 0.0  ;;  %3976 = vmatprep.subr.bf16.mxu1 %v4582_v35  ;;  %v4323_v0 = vld [vmem:[%s6102_s12 + $0x28] sm:$0xff]   ;;  %v4324_v51 = vld [vmem:[%s6102_s12 + $0x30] sm:$0xff]  }
 0x814   :  { %1357 = vadd.xlane.f32.xlu1 %v1356_v54  ;;  %v3514_v54 = vld [vmem:[%s6103_s11] ss:$0 sm:$0xff] }
 0x815   :  { %v1348_v10 = vmul.f32 %v1343_v19, %v1343_v19 }
 0x816   :  { %3977 = vmatpush3.bf16.msra.mxu1 %v4320_v22 }
 0x817   :  { %v1359_v4 = vsel %vm69_vm0, %v1348_v10, 0.0  ;;  %3978 = vmatprep.subr.bf16.mxu1 %v4582_v35 }
 0x818   :  { %1360 = vadd.xlane.f32.xlu0 %v1359_v4 }
 0x81e   :  { %v1334_v55 = vpop.xlane.xlu0 %1333 }
 0x81f   :  { %v1339_v18 = vmul.f32 0.03125, %v1334_v55 }
 0x821   :  { %v1344_v56 = vsub.f32 %v5300_v12, %v1339_v18 }
 0x823   :  { %v1349_v60 = vmul.f32 %v1344_v56, %v1344_v56 }
 0x825   :  { %v1362_v61 = vsel %vm82_vm1, %v1349_v60, 0.0 }
 0x826   :  { %1363 = vadd.xlane.f32.xlu1 %v1362_v61 }
 0x898   :  { %v1352_v14 = vpop.xlane.xlu1 %1351 }
 0x899   :  { %v1365_v24 = vmul.f32 0.03125, %v1352_v14 }
 0x89a   :  { %v1355_v30 = vpop.xlane.xlu0 %1354 }
 0x89b   :  { %v1370_v59 = vadd.f32 1e-05, %v1365_v24  ;;  %v1366_v1 = vmul.f32 0.03125, %v1355_v30 }
 0x89d   :  { %4432 = vrsqrt.f32 %v1370_v59  ;;  %v1371_v2 = vadd.f32 1e-05, %v1366_v1 }
 0x89f   :  { %4434 = vrsqrt.f32 %v1371_v2 }
 0x8a1   :  { %v1358_v3 = vpop.xlane.xlu1 %1357 }
 0x8a2   :  { %v1367_v6 = vmul.f32 0.03125, %v1358_v3 }
 0x8a4   :  { %v1372_v41 = vadd.f32 1e-05, %v1367_v6 }
 0x8a5   :  { %v1361_v8 = vpop.xlane.xlu0 %1360 }
 0x8a6   :  { %4436 = vrsqrt.f32 %v1372_v41  ;;  %v1368_v33 = vmul.f32 0.03125, %v1361_v8 }
 0x8a7   :  { %v4433_v9 = vpop.eup %4432 }
 0x8a8   :  { %v1380_v11 = vmul.f32 %v4433_v9, %v1340_v45  ;;  %v1373_v40 = vadd.f32 1e-05, %v1368_v33 }
 0x8a9   :  { %v4435_v58 = vpop.eup %4434 }
 0x8aa   :  { %v1391_v47 = vmul.f32 %v3512_v39, %v1380_v11  ;;  %v1381_v42 = vmul.f32 %v4435_v58, %v1341_v44  ;;  %4438 = vrsqrt.f32 %v1373_v40 }
 0x8ac   :  { %v1392_v29 = vmul.f32 %v3512_v39, %v1381_v42  ;;  %v1402_v26 = vadd.f32 %v3513_v15, %v1391_v47 }
 0x8ae   :  { %v1403_v62 = vadd.f32 %v3513_v15, %v1392_v29 }
 0x8b0   :  { %v4437_v17 = vpop.eup %4436  ;;  %v1407_v36 = vpack.c.bf16 %v1403_v62, %v1402_v26 }
 0x8b1   :  { %v1382_v16 = vmul.f32 %v4437_v17, %v1342_v23  ;;  %v4321_v23 = vld [vmem:[%s6102_s12 + $0x18] sm:$0xff]  }
 0x8b2   :  { %3961 = vmatmul.mubr.msk.bf16.vlgmr.msra.gmra.mrb[60].mxu0 %vm69_vm0, %v1407_v36  ;;  %3979 = vmatpush3.bf16.msra.mxu1 %v4321_v23 }
 0x8b3   :  { %v1364_v20 = vpop.xlane.xlu1 %1363  ;;  %3964 = vmatprep.mubr.msk.bf16.mxu0 %vm4583_vm2, %v4582_v35  ;;  %v1393_v7 = vmul.f32 %v3512_v39, %v1382_v16  ;;  %3980 = vmatprep.subr.bf16.mxu1 %v4582_v35 }
 0x8b4   :  { %v4439_v52 = vpop.eup %4438  ;;  %v1369_v50 = vmul.f32 0.03125, %v1364_v20 }
 0x8b5   :  { %v1383_v63 = vmul.f32 %v4439_v52, %v1343_v19  ;;  %v1404_v38 = vadd.f32 %v3513_v15, %v1393_v7  ;;  %v4325_v19 = vld [vmem:[%s6102_s12 + $0x38] sm:$0xff]  }
 0x8b6   :  { %v1374_v25 = vadd.f32 1e-05, %v1369_v50  ;;  %3981 = vmatpush3.bf16.msra.mxu1 %v4322_v28 }
 0x8b7   :  { %v1394_v34 = vmul.f32 %v3512_v39, %v1383_v63  ;;  %3982 = vmatprep.subr.bf16.mxu1 %v4582_v35 }
 0x8b8   :  { %4440 = vrsqrt.f32 %v1374_v25 }
 0x8b9   :  { %v1405_v13 = vadd.f32 %v3513_v15, %v1394_v34 }
 0x8ba   :  { %3983 = vmatpush3.bf16.msra.mxu1 %v4323_v0 }
 0x8bb   :  { %v1408_v45 = vpack.c.bf16 %v1405_v13, %v1404_v38  ;;  %3984 = vmatprep.subr.bf16.mxu1 %v4582_v35 }
 0x8bd   :  { %3965 = vmatmul.mubr.msk.bf16.gmra.mrb[64].mxu0 %vm69_vm0, %v1408_v45 }
 0x8be   :  { %3968 = vmatprep.mubr.msk.bf16.mxu0 %vm4583_vm2, %v4582_v35  ;;  %3985 = vmatpush3.bf16.msra.mxu1 %v4324_v51 }
 0x8bf   :  { %3986 = vmatprep.subr.bf16.mxu1 %v4582_v35 }
 0x8c2   :  { %v4441_v43 = vpop.eup %4440  ;;  %3987 = vmatpush3.bf16.msra.mxu1 %v4325_v19 }
 0x8c3   :  { %v1384_v44 = vmul.f32 %v4441_v43, %v1344_v56  ;;  %4034 = vmatprep.subr.bf16.mxu1 %v4582_v35 }
 0x8c5   :  { %v1395_v49 = vmul.f32 %v3512_v39, %v1384_v44 }
 0x8c7   :  { %v1406_v48 = vadd.f32 %v3513_v15, %v1395_v49 }
 0x8c9   :  { %v1409_v46 = vpack.c.bf16 %v1406_v48, %v1406_v48 }
 0x8cb   :  { %3969 = vmatmul.mubr.msk.bf16.gmra.mrb[68].mxu0 %vm69_vm0, %v1409_v46 }
 0x8cc   :  { %4004 = vmatprep.mubr.msk.bf16.mxu0 %vm4583_vm2, %v4582_v35 }
 0x985   :  { %v1476_v10 = vpop.f32.mrb[60].mxu0 }
 0x986   :  { %v1477_v4 = vadd.f32 %v3514_v54, %v1476_v10  ;;  %v3962_v55 = vpop.f32.mrb[61].mxu0 }
 0x987   :  { %v1479_v18 = vpop.f32.mrb[62].mxu0 }
 0x988   :  { %v1503_v56 = vmul.f32 0.044715, %v1477_v4  ;;  %v1480_v60 = vadd.f32 %v3514_v54, %v1479_v18  ;;  %v3963_v61 = vpop.f32.mrb[63].mxu0  ;;  %v1498_v52 = vmul.f32 0.5, %v1477_v4 }
 0x98a   :  { %v1508_v37 = vmul.f32 %v1503_v56, %v1477_v4  ;;  %v1504_v27 = vmul.f32 0.044715, %v1480_v60  ;;  %v1499_v63 = vmul.f32 0.5, %v1480_v60 }
 0x98c   :  { %v1513_v14 = vmul.f32 %v1508_v37, %v1477_v4  ;;  %v1509_v24 = vmul.f32 %v1504_v27, %v1480_v60  ;;  %v3520_v37 = vld [vmem:[%s6104_s13] ss:$0 sm:$0xff] }
 0x98e   :  { %v1518_v30 = vadd.f32 %v1513_v14, %v1477_v4  ;;  %v1514_v59 = vmul.f32 %v1509_v24, %v1480_v60 }
 0x990   :  { %v1523_v1 = vmul.f32 0.7978845, %v1518_v30  ;;  %v1519_v2 = vadd.f32 %v1514_v59, %v1480_v60  ;;  %v1484_v3 = vpop.f32.mrb[64].mxu0 }
 0x991   :  { %v1485_v6 = vadd.f32 %v3514_v54, %v1484_v3  ;;  %v3966_v41 = vpop.f32.mrb[65].mxu0 }
 0x992   :  { %4442 = vtanh.f32 %v1523_v1  ;;  %v1524_v8 = vmul.f32 0.7978845, %v1519_v2  ;;  %v1487_v33 = vpop.f32.mrb[66].mxu0 }
 0x993   :  { %v1505_v9 = vmul.f32 0.044715, %v1485_v6  ;;  %v1488_v39 = vadd.f32 %v3514_v54, %v1487_v33  ;;  %v3967_v11 = vpop.f32.mrb[67].mxu0  ;;  %v1500_v0 = vmul.f32 0.5, %v1485_v6 }
 0x994   :  { %4444 = vtanh.f32 %v1524_v8 }
 0x995   :  { %v1510_v40 = vmul.f32 %v1505_v9, %v1485_v6  ;;  %v1506_v58 = vmul.f32 0.044715, %v1488_v39  ;;  %v1501_v51 = vmul.f32 0.5, %v1488_v39 }
 0x997   :  { %v1515_v47 = vmul.f32 %v1510_v40, %v1485_v6  ;;  %v1511_v42 = vmul.f32 %v1506_v58, %v1488_v39 }
 0x999   :  { %v1516_v15 = vmul.f32 %v1511_v42, %v1488_v39  ;;  %v1520_v29 = vadd.f32 %v1515_v47, %v1485_v6 }
 0x99b   :  { %v1521_v26 = vadd.f32 %v1516_v15, %v1488_v39  ;;  %v1525_v62 = vmul.f32 0.7978845, %v1520_v29 }
 0x99c   :  { %v4443_v17 = vpop.eup %4442 }
 0x99d   :  { %v1533_v36 = vadd.f32 1.0, %v4443_v17  ;;  %v1526_v16 = vmul.f32 0.7978845, %v1521_v26  ;;  %4446 = vtanh.f32 %v1525_v62 }
 0x99e   :  { %v4445_v20 = vpop.eup %4444  ;;  %v1492_v50 = vpop.f32.mrb[68].mxu0 }
 0x99f   :  { %v1493_v7 = vadd.f32 %v3514_v54, %v1492_v50  ;;  %v3970_v25 = vpop.f32.mrb[69].mxu0  ;;  %v1534_v34 = vadd.f32 1.0, %v4445_v20  ;;  %4448 = vtanh.f32 %v1526_v16  ;;  %v1538_v43 = vmul.f32 %v1533_v36, %v1498_v52 }
 0x9a0   :  { %v1495_v38 = vpop.f32.mrb[70].mxu0 }
 0x9a1   :  { %v1507_v13 = vmul.f32 0.044715, %v1493_v7  ;;  %v3971_v45 = vpop.f32.mrb[71].mxu0  ;;  %v1539_v44 = vmul.f32 %v1534_v34, %v1499_v63  ;;  %v1502_v18 = vmul.f32 0.5, %v1493_v7 }
 0x9a3   :  { %v1512_v49 = vmul.f32 %v1507_v13, %v1493_v7  ;;  %v1543_v48 = vpack.c.bf16 %v1539_v44, %v1538_v43 }
 0x9a5   :  { %3989 = vmatmul.mubr.bf16.vlgmr.msra.gmra.mrb[60].mxu1 %v1543_v48  ;;  %v1517_v46 = vmul.f32 %v1512_v49, %v1493_v7 }
 0x9a6   :  { %3992 = vmatprep.mubr.msk.bf16.mxu1 %vm4583_vm2, %v4582_v35 }
 0x9a7   :  { %v4447_v53 = vpop.eup %4446  ;;  %v1522_v5 = vadd.f32 %v1517_v46, %v1493_v7 }
 0x9a8   :  { %v1535_v22 = vadd.f32 1.0, %v4447_v53 }
 0x9a9   :  { %v4449_v23 = vpop.eup %4448  ;;  %v1527_v28 = vmul.f32 0.7978845, %v1522_v5 }
 0x9aa   :  { %v1536_v19 = vadd.f32 1.0, %v4449_v23  ;;  %v1540_v54 = vmul.f32 %v1535_v22, %v1500_v0 }
 0x9ab   :  { %4450 = vtanh.f32 %v1527_v28 }
 0x9ac   :  { %v1541_v10 = vmul.f32 %v1536_v19, %v1501_v51  ;;  %v4326_v51 = vld [vmem:[%s6128_s22 + $0x10] sm:$0xff]   ;;  %v4327_v19 = vld [vmem:[%s6128_s22 + $0x18] sm:$0xff]  }
 0x9ad   :  { %4001 = vmatpush3.bf16.msra.mxu0 %v4326_v51 }
 0x9ae   :  { %v1544_v4 = vpack.c.bf16 %v1541_v10, %v1540_v54  ;;  %4002 = vmatprep.subr.bf16.mxu0 %v4582_v35 }
 0x9b0   :  { %3993 = vmatmul.mubr.bf16.gmra.mrb[64].mxu1 %v1544_v4 }
 0x9b1   :  { %3996 = vmatprep.mubr.msk.bf16.mxu1 %vm4583_vm2, %v4582_v35  ;;  %4003 = vmatpush3.bf16.msra.mxu0 %v4327_v19 }
 0x9b2   :  { %4016 = vmatprep.subr.bf16.mxu0 %v4582_v35 }
 0x9b5   :  { %v4451_v55 = vpop.eup %4450 }
 0x9b6   :  { %v1537_v56 = vadd.f32 1.0, %v4451_v55 }
 0x9b8   :  { %v1542_v60 = vmul.f32 %v1537_v56, %v1502_v18 }
 0x9ba   :  { %v1545_v61 = vpack.c.bf16 %v1542_v60, %v1542_v60 }
 0x9bc   :  { %3997 = vmatmul.mubr.bf16.gmra.mrb[68].mxu1 %v1545_v61 }
 0x9bd   :  { %4040 = vmatprep.mubr.msk.bf16.mxu1 %vm4583_vm2, %v4582_v35 }
 0xa78   :  { %v1651_v27 = vpop.f32.mrb[60].mxu1 }
 0xa79   :  { %v1652_v14 = vadd.f32 %v3520_v37, %v1651_v27  ;;  %v3990_v24 = vpop.f32.mrb[61].mxu1 }
 0xa7a   :  { %v1654_v30 = vpop.f32.mrb[62].mxu1 }
 0xa7b   :  { %v5382_v59 = vadd.f32 %v1652_v14, %v5272_v57  ;;  %v1655_v1 = vadd.f32 %v3520_v37, %v1654_v30  ;;  %v3991_v2 = vpop.f32.mrb[63].mxu1  ;;  %v3531_v30 = vld [vmem:[%s6093_s2 + $0x1] ss:$0 sm:$0xff]  ;;  %s6134_s2 = smov 16  }
 0xa7d   :  { %v5385_v3 = vadd.f32 %v1655_v1, %v5277_v32  ;;  %v1682_v6 = vsel %vm69_vm0, %v5382_v59, 0.0 }
 0xa7e   :  { %1683 = vadd.xlane.f32.xlu0 %v1682_v6 }
 0xa7f   :  { %v1685_v41 = vsel %vm69_vm0, %v5385_v3, 0.0 }
 0xa80   :  { %1686 = vadd.xlane.f32.xlu1 %v1685_v41  ;;  %v3532_v41 = vld [vmem:[%s6094_s3 + $0x1] ss:$0 sm:$0xff] }
 0xa83   :  { %v1659_v8 = vpop.f32.mrb[64].mxu1 }
 0xa84   :  { %v1660_v33 = vadd.f32 %v3520_v37, %v1659_v8  ;;  %v3994_v9 = vpop.f32.mrb[65].mxu1 }
 0xa85   :  { %v1662_v39 = vpop.f32.mrb[66].mxu1 }
 0xa86   :  { %v5392_v57 = vadd.f32 %v1660_v33, %v5286_v21  ;;  %v1663_v11 = vadd.f32 %v3520_v37, %v1662_v39  ;;  %v3995_v40 = vpop.f32.mrb[67].mxu1 }
 0xa88   :  { %v5395_v32 = vadd.f32 %v1663_v11, %v5291_v31  ;;  %v1688_v58 = vsel %vm69_vm0, %v5392_v57, 0.0 }
 0xa89   :  { %1689 = vadd.xlane.f32.xlu0 %v1688_v58 }
 0xa8a   :  { %v1691_v47 = vsel %vm69_vm0, %v5395_v32, 0.0 }
 0xa8b   :  { %1692 = vadd.xlane.f32.xlu1 %v1691_v47 }
 0xa8f   :  { %v1667_v42 = vpop.f32.mrb[68].mxu1 }
 0xa90   :  { %v1668_v15 = vadd.f32 %v3520_v37, %v1667_v42  ;;  %v3998_v29 = vpop.f32.mrb[69].mxu1 }
 0xa91   :  { %v1670_v26 = vpop.f32.mrb[70].mxu1 }
 0xa92   :  { %v5402_v21 = vadd.f32 %v1668_v15, %v5300_v12  ;;  %v3999_v62 = vpop.f32.mrb[71].mxu1 }
 0xa94   :  { %v1694_v31 = vsel %vm82_vm1, %v5402_v21, 0.0 }
 0xa95   :  { %1695 = vadd.xlane.f32.xlu0 %v1694_v31 }
 0xb0b   :  { %v1684_v17 = vpop.xlane.xlu0 %1683 }
 0xb0c   :  { %v1697_v36 = vmul.f32 0.03125, %v1684_v17 }
 0xb0d   :  { %v1687_v16 = vpop.xlane.xlu1 %1686 }
 0xb0e   :  { %v1702_v20 = vsub.f32 %v5382_v59, %v1697_v36  ;;  %v1698_v52 = vmul.f32 0.03125, %v1687_v16 }
 0xb10   :  { %v1703_v50 = vsub.f32 %v5385_v3, %v1698_v52  ;;  %v1707_v63 = vmul.f32 %v1702_v20, %v1702_v20 }
 0xb12   :  { %v1712_v7 = vsel %vm69_vm0, %v1707_v63, 0.0  ;;  %v1708_v25 = vmul.f32 %v1703_v50, %v1703_v50 }
 0xb13   :  { %1713 = vadd.xlane.f32.xlu1 %v1712_v7 }
 0xb14   :  { %v1715_v12 = vsel %vm69_vm0, %v1708_v25, 0.0 }
 0xb15   :  { %1716 = vadd.xlane.f32.xlu0 %v1715_v12  ;;  %v3538_v12 = vld [vmem:[%s6095_s5 + $0x1] ss:$0 sm:$0xff]  ;;  %s6129_s5 = smov 64  }
 0xb16   :  { %v1690_v34 = vpop.xlane.xlu0 %1689 }
 0xb17   :  { %v1699_v38 = vmul.f32 0.03125, %v1690_v34 }
 0xb18   :  { %v1693_v13 = vpop.xlane.xlu1 %1692 }
 0xb19   :  { %v1704_v45 = vsub.f32 %v5392_v57, %v1699_v38  ;;  %v1700_v43 = vmul.f32 0.03125, %v1693_v13 }
 0xb1b   :  { %v1705_v44 = vsub.f32 %v5395_v32, %v1700_v43  ;;  %v1709_v49 = vmul.f32 %v1704_v45, %v1704_v45 }
 0xb1d   :  { %v1718_v48 = vsel %vm69_vm0, %v1709_v49, 0.0  ;;  %v1710_v46 = vmul.f32 %v1705_v44, %v1705_v44 }
 0xb1e   :  { %1719 = vadd.xlane.f32.xlu1 %v1718_v48 }
 0xb1f   :  { %v1721_v53 = vsel %vm69_vm0, %v1710_v46, 0.0 }
 0xb20   :  { %1722 = vadd.xlane.f32.xlu0 %v1721_v53 }
 0xb22   :  { %v1696_v5 = vpop.xlane.xlu0 %1695 }
 0xb23   :  { %v1701_v22 = vmul.f32 0.03125, %v1696_v5 }
 0xb25   :  { %v1706_v23 = vsub.f32 %v5402_v21, %v1701_v22 }
 0xb27   :  { %v1711_v28 = vmul.f32 %v1706_v23, %v1706_v23 }
 0xb29   :  { %v1724_v0 = vsel %vm82_vm1, %v1711_v28, 0.0 }
 0xb2a   :  { %1725 = vadd.xlane.f32.xlu1 %v1724_v0 }
 0xba0   :  { %v1714_v54 = vpop.xlane.xlu1 %1713 }
 0xba1   :  { %v1727_v10 = vmul.f32 0.03125, %v1714_v54 }
 0xba2   :  { %v1717_v4 = vpop.xlane.xlu0 %1716 }
 0xba3   :  { %v1732_v55 = vadd.f32 1e-05, %v1727_v10  ;;  %v1728_v18 = vmul.f32 0.03125, %v1717_v4 }
 0xba5   :  { %4452 = vrsqrt.f32 %v1732_v55  ;;  %v1733_v56 = vadd.f32 1e-05, %v1728_v18 }
 0xba7   :  { %4454 = vrsqrt.f32 %v1733_v56 }
 0xbab   :  { %v1720_v60 = vpop.xlane.xlu1 %1719 }
 0xbac   :  { %v1729_v61 = vmul.f32 0.03125, %v1720_v60 }
 0xbad   :  { %v1723_v37 = vpop.xlane.xlu0 %1722 }
 0xbae   :  { %v1734_v27 = vadd.f32 1e-05, %v1729_v61  ;;  %v1730_v14 = vmul.f32 0.03125, %v1723_v37 }
 0xbaf   :  { %v4453_v24 = vpop.eup %4452 }
 0xbb0   :  { %v1742_v1 = vmul.f32 %v4453_v24, %v1702_v20  ;;  %4456 = vrsqrt.f32 %v1734_v27  ;;  %v1735_v2 = vadd.f32 1e-05, %v1730_v14 }
 0xbb1   :  { %v4455_v6 = vpop.eup %4454 }
 0xbb2   :  { %v1753_v8 = vmul.f32 %v3531_v30, %v1742_v1  ;;  %v1743_v33 = vmul.f32 %v4455_v6, %v1703_v50  ;;  %4458 = vrsqrt.f32 %v1735_v2 }
 0xbb4   :  { %v1764_v9 = vadd.f32 %v3532_v41, %v1753_v8  ;;  %v1754_v39 = vmul.f32 %v3531_v30, %v1743_v33 }
 0xbb6   :  { %v1765_v11 = vadd.f32 %v3532_v41, %v1754_v39 }
 0xbb7   :  { %v1726_v40 = vpop.xlane.xlu1 %1725 }
 0xbb8   :  { %v1731_v58 = vmul.f32 0.03125, %v1726_v40  ;;  %v1769_v47 = vpack.c.bf16 %v1765_v11, %v1764_v9 }
 0xbba   :  { %v4457_v42 = vpop.eup %4456  ;;  %v1736_v15 = vadd.f32 1e-05, %v1731_v58  ;;  %4005 = vmatmul.mubr.msk.bf16.vlgmr.msra.gmra.mrb[72].mxu0 %vm69_vm0, %v1769_v47 }
 0xbbb   :  { %4008 = vmatprep.mubr.msk.bf16.mxu0 %vm4583_vm2, %v4582_v35  ;;  %v1744_v29 = vmul.f32 %v4457_v42, %v1704_v45 }
 0xbbc   :  { %v4459_v26 = vpop.eup %4458  ;;  %4460 = vrsqrt.f32 %v1736_v15 }
 0xbbd   :  { %v1745_v62 = vmul.f32 %v4459_v26, %v1705_v44  ;;  %v1755_v31 = vmul.f32 %v3531_v30, %v1744_v29 }
 0xbbf   :  { %v1756_v17 = vmul.f32 %v3531_v30, %v1745_v62  ;;  %v1766_v36 = vadd.f32 %v3532_v41, %v1755_v31 }
 0xbc1   :  { %v1767_v16 = vadd.f32 %v3532_v41, %v1756_v17 }
 0xbc3   :  { %v1770_v20 = vpack.c.bf16 %v1767_v16, %v1766_v36 }
 0xbc5   :  { %4009 = vmatmul.mubr.msk.bf16.gmra.mrb[76].mxu0 %vm69_vm0, %v1770_v20 }
 0xbc6   :  { %v4461_v52 = vpop.eup %4460  ;;  %4012 = vmatprep.mubr.msk.bf16.mxu0 %vm4583_vm2, %v4582_v35 }
 0xbc7   :  { %v1746_v50 = vmul.f32 %v4461_v52, %v1706_v23 }
 0xbc9   :  { %v1757_v63 = vmul.f32 %v3531_v30, %v1746_v50 }
 0xbcb   :  { %v1768_v7 = vadd.f32 %v3532_v41, %v1757_v63 }
 0xbcd   :  { %v1771_v25 = vpack.c.bf16 %v1768_v7, %v1768_v7 }
 0xbcf   :  { %4013 = vmatmul.mubr.msk.bf16.gmra.mrb[80].mxu0 %vm69_vm0, %v1771_v25 }
 0xbd0   :  { %4022 = vmatprep.mubr.msk.bf16.mxu0 %vm4583_vm2, %v4582_v35 }
 0xc8d   :  { %v1840_v34 = vpop.f32.mrb[72].mxu0 }
 0xc8e   :  { %v1841_v38 = vadd.f32 %v3538_v12, %v1840_v34  ;;  %v4006_v13 = vpop.f32.mrb[73].mxu0 }
 0xc8f   :  { %v1843_v45 = vpop.f32.mrb[74].mxu0 }
 0xc90   :  { %v1844_v43 = vadd.f32 %v3538_v12, %v1843_v45  ;;  %v4007_v44 = vpop.f32.mrb[75].mxu0  ;;  %v1862_v49 = vmul.f32 0.35355338, %v1841_v38 }
 0xc92   :  { %v1863_v48 = vmul.f32 0.35355338, %v1844_v43  ;;  %v5442_v46 = vpack.c.bf16 %v1844_v43, %v1841_v38 }
 0xc94   :  { %v5444_v53 = vpack.c.bf16 %v1863_v48, %v1862_v49  ;;  %1876 = vrot.lane.b32.xlu0 %v5442_v46, %s4584_s18 }
 0xc98   :  { %2099 = vrot.lane.b32.xlu0 %v5442_v46, %s4585_s19  ;;  %v1848_v5 = vpop.f32.mrb[76].mxu0 }
 0xc99   :  { %v1849_v22 = vadd.f32 %v3538_v12, %v1848_v5  ;;  %v4010_v23 = vpop.f32.mrb[77].mxu0 }
 0xc9a   :  { %v1851_v28 = vpop.f32.mrb[78].mxu0 }
 0xc9b   :  { %v1852_v0 = vadd.f32 %v3538_v12, %v1851_v28  ;;  %v4011_v51 = vpop.f32.mrb[79].mxu0  ;;  %v1864_v19 = vmul.f32 0.35355338, %v1849_v22  ;;  %v5574_v28 = vld [vmem:[%s6096_s1 + $0x8] sm:$0xff] }
 0xc9d   :  { %v1865_v54 = vmul.f32 0.35355338, %v1852_v0  ;;  %v5450_v10 = vpack.c.bf16 %v1852_v0, %v1849_v22 }
 0xc9f   :  { %v1868_v4 = vpack.c.bf16 %v1865_v54, %v1864_v19  ;;  %1878 = vrot.lane.b32.xlu1 %v5450_v10, %s4584_s18 }
 0xca2   :  { %v1856_v55 = vpop.f32.mrb[80].mxu0 }
 0xca3   :  { %v1857_v18 = vadd.f32 %v3538_v12, %v1856_v55  ;;  %v4014_v56 = vpop.f32.mrb[81].mxu0  ;;  %v5586_v55 = vld [vmem:[%s6096_s1 + $0x10] sm:$0xff] }
 0xca4   :  { %v1859_v60 = vpop.f32.mrb[82].mxu0 }
 0xca5   :  { %v5454_v61 = vpack.c.bf16 %v1857_v18, %v1857_v18  ;;  %v4015_v37 = vpop.f32.mrb[83].mxu0  ;;  %v1866_v27 = vmul.f32 0.35355338, %v1857_v18 }
 0xca6   :  { %v5594_v37 = vld [vmem:[%s6096_s1 + $0x18] sm:$0xff] }
 0xca7   :  { %2103 = vrot.lane.b32.xlu0 %v5454_v61, %s4585_s19  ;;  %1880 = vrot.lane.b32.xlu1 %v5454_v61, %s4584_s18  ;;  %v1869_v14 = vpack.c.bf16 %v1866_v27, %v1866_v27  ;;  %s6130_s18 = smov 56  }
 0xcab   :  { %2319 = vrot.lane.b32.xlu0 %v5442_v46, %s4588_s21  ;;  %2101 = vrot.lane.b32.xlu1 %v5450_v10, %s4585_s19 }
 0xcaf   :  { %2321 = vrot.lane.b32.xlu0 %v5450_v10, %s4588_s21  ;;  %2093 = vrot.lane.b32.xlu1 %v5444_v53, %s4586_s4 }
 0xcb3   :  { %2323 = vrot.lane.b32.xlu0 %v5454_v61, %s4588_s21  ;;  %2095 = vrot.lane.b32.xlu1 %v1868_v4, %s4586_s4 }
 0xcb7   :  { %2539 = vrot.lane.b32.xlu0 %v5442_v46, %s4590_s24  ;;  %2097 = vrot.lane.b32.xlu1 %v1869_v14, %s4586_s4 }
 0xcbb   :  { %2541 = vrot.lane.b32.xlu0 %v5450_v10, %s4590_s24  ;;  %2313 = vrot.lane.b32.xlu1 %v5444_v53, %s4587_s20 }
 0xcbf   :  { %2543 = vrot.lane.b32.xlu0 %v5454_v61, %s4590_s24  ;;  %2315 = vrot.lane.b32.xlu1 %v1868_v4, %s4587_s20 }
 0xcc3   :  { %2535 = vrot.lane.b32.xlu0 %v1868_v4, %s4589_s23  ;;  %2317 = vrot.lane.b32.xlu1 %v1869_v14, %s4587_s20 }
 0xcc7   :  { %2014 = vrot.lane.b32.xlu0 %v5442_v46, %s6129_s5  ;;  %2533 = vrot.lane.b32.xlu1 %v5444_v53, %s4589_s23 }
 0xccb   :  { %2018 = vrot.lane.b32.xlu0 %v5454_v61, %s6129_s5  ;;  %2537 = vrot.lane.b32.xlu1 %v1869_v14, %s4589_s23 }
 0xccf   :  { %2239 = vrot.lane.b32.xlu0 %v5450_v10, %s6130_s18  ;;  %2016 = vrot.lane.b32.xlu1 %v5450_v10, %s6129_s5 }
 0xcd3   :  { %2241 = vrot.lane.b32.xlu0 %v5454_v61, %s6130_s18  ;;  %2237 = vrot.lane.b32.xlu1 %v5442_v46, %s6130_s18  ;;  %s6135_s18 = smov 24  }
 0xd06   :  { %v1877_v24 = vpop.permute.xlu0 %1876 }
 0xd07   :  { %v1892_v30 = vsel %vm270_vm3, %v1877_v24, 0 }
 0xd08   :  { %4017 = vmatpush3.bf16.xpose.msra.mxu0 %v1892_v30 }
 0xd09   :  { %4018 = vmatprep.subr.bf16.mxu0 %v4582_v35 }
 0xd0a   :  { %v2100_v6 = vpop.permute.xlu0 %2099 }
 0xd0b   :  { %v2115_v58 = vsel %vm270_vm3, %v2100_v6, 0 }
 0xd11   :  { %v1879_v1 = vpop.permute.xlu1 %1878 }
 0xd12   :  { %v1895_v2 = vsel %vm270_vm3, %v1879_v1, 0 }
 0xd13   :  { %4019 = vmatpush3.bf16.xpose.msra.mxu0 %v1895_v2  ;;  %v5606_v2 = vld [vmem:[%s6096_s1 + $0x20] sm:$0xf] }
 0xd14   :  { %4020 = vmatprep.subr.bf16.mxu0 %v4582_v35 }
 0xd19   :  { %v1881_v41 = vpop.permute.xlu1 %1880  ;;  %v2104_v8 = vpop.permute.xlu0 %2103 }
 0xd1a   :  { %v1898_v33 = vsel %vm270_vm3, %v1881_v41, 0  ;;  %v2121_v16 = vsel %vm270_vm3, %v2104_v8, 0 }
 0xd1b   :  { %4021 = vmatpush3.bf16.xpose.msra.mxu0 %v1898_v33 }
 0xd1c   :  { %4052 = vmatprep.subr.bf16.mxu0 %v4582_v35 }
 0xd1d   :  { %v2102_v9 = vpop.permute.xlu1 %2101  ;;  %v2320_v39 = vpop.permute.xlu0 %2319 }
 0xd1e   :  { %v2118_v26 = vsel %vm270_vm3, %v2102_v9, 0  ;;  %v2335_v7 = vsel %vm270_vm3, %v2320_v39, 0 }
 0xd21   :  { %v2094_v11 = vpop.permute.xlu1 %2093  ;;  %v2322_v40 = vpop.permute.xlu0 %2321 }
 0xd22   :  { %4023 = vmatmul.mubr.msk.bf16.vlgmr.msra.gmra.mrb[84].mxu0 %vm270_vm3, %v5444_v53  ;;  %v2338_v34 = vsel %vm270_vm3, %v2322_v40, 0  ;;  %v5566_v53 = vld [vmem:[%s6096_s1] sm:$0xff]  ;;  %s6131_s1 = smov 48  }
 0xd23   :  { %4053 = vmatpush3.bf16.xpose.msra.mxu0 %v2115_v58  ;;  %4026 = vmatprep.mubr.msk.bf16.mxu0 %vm4583_vm2, %v4582_v35 }
 0xd24   :  { %4054 = vmatprep.subr.bf16.mxu0 %v4582_v35 }
 0xd25   :  { %v2096_v47 = vpop.permute.xlu1 %2095  ;;  %v2324_v42 = vpop.permute.xlu0 %2323 }
 0xd26   :  { %v2341_v45 = vsel %vm270_vm3, %v2324_v42, 0 }
 0xd29   :  { %v2098_v15 = vpop.permute.xlu1 %2097  ;;  %v2540_v29 = vpop.permute.xlu0 %2539 }
 0xd2a   :  { %4027 = vmatmul.mubr.msk.bf16.gmra.mrb[88].mxu0 %vm270_vm3, %v1868_v4  ;;  %v2555_v43 = vsel %vm270_vm3, %v2540_v29, 0 }
 0xd2b   :  { %4055 = vmatpush3.bf16.xpose.msra.mxu0 %v2118_v26  ;;  %4030 = vmatprep.mubr.msk.bf16.mxu0 %vm4583_vm2, %v4582_v35 }
 0xd2c   :  { %4056 = vmatprep.subr.bf16.mxu0 %v4582_v35 }
 0xd2d   :  { %v2314_v62 = vpop.permute.xlu1 %2313  ;;  %v2542_v31 = vpop.permute.xlu0 %2541 }
 0xd2e   :  { %v2558_v44 = vsel %vm270_vm3, %v2542_v31, 0 }
 0xd31   :  { %v2316_v17 = vpop.permute.xlu1 %2315  ;;  %v2544_v36 = vpop.permute.xlu0 %2543 }
 0xd32   :  { %4031 = vmatmul.mubr.msk.bf16.gmra.mrb[92].mxu0 %vm270_vm3, %v1869_v14  ;;  %v2561_v49 = vsel %vm270_vm3, %v2544_v36, 0 }
 0xd33   :  { %4057 = vmatpush3.bf16.xpose.msra.mxu0 %v2121_v16  ;;  %4058 = vmatprep.mubr.msk.bf16.mxu0 %vm4583_vm2, %v4582_v35 }
 0xd34   :  { %4088 = vmatprep.subr.bf16.mxu0 %v4582_v35 }
 0xd35   :  { %v2318_v20 = vpop.permute.xlu1 %2317  ;;  %v2536_v52 = vpop.permute.xlu0 %2535 }
 0xd39   :  { %v2534_v50 = vpop.permute.xlu1 %2533  ;;  %v2015_v63 = vpop.permute.xlu0 %2014 }
 0xd3a   :  { %4035 = vmatpush3.bf16.msra.mxu1 %v2015_v63  ;;  %4059 = vmatmul.mubr.msk.bf16.vlgmr.msra.gmra.mrb[96].mxu0 %vm270_vm3, %v2094_v11 }
 0xd3b   :  { %4089 = vmatpush3.bf16.xpose.msra.mxu0 %v2335_v7  ;;  %4036 = vmatprep.subr.bf16.mxu1 %v4582_v35 }
 0xd3c   :  { %4062 = vmatprep.mubr.msk.bf16.mxu0 %vm4583_vm2, %v4582_v35  ;;  %4090 = vmatprep.subr.bf16.mxu0 %v4582_v35 }
 0xd3d   :  { %v2538_v25 = vpop.permute.xlu1 %2537  ;;  %v2019_v38 = vpop.permute.xlu0 %2018 }
 0xd3e   :  { %v2032_v13 = vsel %vm422_vm4, %v2019_v38, 0 }
 0xd41   :  { %v2017_v12 = vpop.permute.xlu1 %2016 }
 0xd42   :  { %4037 = vmatpush3.bf16.msra.mxu1 %v2017_v12  ;;  %4063 = vmatmul.mubr.msk.bf16.gmra.mrb[100].mxu0 %vm270_vm3, %v2096_v47 }
 0xd43   :  { %4091 = vmatpush3.bf16.xpose.msra.mxu0 %v2338_v34  ;;  %4038 = vmatprep.subr.bf16.mxu1 %v4582_v35 }
 0xd44   :  { %4066 = vmatprep.mubr.msk.bf16.mxu0 %vm4583_vm2, %v4582_v35  ;;  %4092 = vmatprep.subr.bf16.mxu0 %v4582_v35 }
 0xd46   :  { %4039 = vmatpush3.bf16.msra.mxu1 %v2032_v13 }
 0xd47   :  { %4070 = vmatprep.subr.bf16.mxu1 %v4582_v35 }
 0xd4a   :  { %4067 = vmatmul.mubr.msk.bf16.gmra.mrb[104].mxu0 %vm270_vm3, %v2098_v15 }
 0xd4b   :  { %4093 = vmatpush3.bf16.xpose.msra.mxu0 %v2341_v45  ;;  %4094 = vmatprep.mubr.msk.bf16.mxu0 %vm4583_vm2, %v4582_v35 }
 0xd4c   :  { %4124 = vmatprep.subr.bf16.mxu0 %v4582_v35 }
 0xd52   :  { %4095 = vmatmul.mubr.msk.bf16.vlgmr.msra.gmra.mrb[108].mxu0 %vm270_vm3, %v2314_v62 }
 0xd53   :  { %4125 = vmatpush3.bf16.xpose.msra.mxu0 %v2555_v43  ;;  %4098 = vmatprep.mubr.msk.bf16.mxu0 %vm4583_vm2, %v4582_v35 }
 0xd54   :  { %4126 = vmatprep.subr.bf16.mxu0 %v4582_v35 }
 0xd5a   :  { %4099 = vmatmul.mubr.msk.bf16.gmra.mrb[112].mxu0 %vm270_vm3, %v2316_v17 }
 0xd5b   :  { %4127 = vmatpush3.bf16.xpose.msra.mxu0 %v2558_v44  ;;  %4102 = vmatprep.mubr.msk.bf16.mxu0 %vm4583_vm2, %v4582_v35 }
 0xd5c   :  { %4128 = vmatprep.subr.bf16.mxu0 %v4582_v35 }
 0xd62   :  { %4103 = vmatmul.mubr.msk.bf16.gmra.mrb[116].mxu0 %vm270_vm3, %v2318_v20 }
 0xd63   :  { %4129 = vmatpush3.bf16.xpose.msra.mxu0 %v2561_v49  ;;  %4130 = vmatprep.mubr.msk.bf16.mxu0 %vm4583_vm2, %v4582_v35 }
 0xd64   :  { %4160 = vmatprep.subr.bf16.mxu0 %v4582_v35 }
 0xd6a   :  { %4131 = vmatmul.mubr.msk.bf16.vlgmr.msra.gmra.mrb[120].mxu0 %vm270_vm3, %v2534_v50 }
 0xd6b   :  { %4134 = vmatprep.mubr.msk.bf16.mxu0 %vm4583_vm2, %v4582_v35 }
 0xd72   :  { %4135 = vmatmul.mubr.msk.bf16.gmra.mrb[124].mxu0 %vm270_vm3, %v2536_v52 }
 0xd73   :  { %4138 = vmatprep.mubr.msk.bf16.mxu0 %vm4583_vm2, %v4582_v35 }
 0xd7a   :  { %4139 = vmatmul.mubr.msk.bf16.gmra.mrb[128].mxu0 %vm270_vm3, %v2538_v25 }
 0xd7b   :  { %4164 = vmatprep.mubr.msk.bf16.mxu0 %vm4583_vm2, %v4582_v35 }
 0xdf5   :  { %v1934_v48 = vpop.f32.mrb[84].mxu0 }
 0xdf6   :  { %v5569_v5 = vadd.f32 %v5566_v53, %v1934_v48  ;;  %v4024_v22 = vpop.f32.mrb[85].mxu0 }
 0xdf7   :  { %v1937_v23 = vpop.f32.mrb[86].mxu0 }
 0xdf8   :  { %v5577_v0 = vadd.f32 %v5574_v28, %v1937_v23  ;;  %v4025_v51 = vpop.f32.mrb[87].mxu0  ;;  %v1956_v19 = vsel %vm345_vm5, %v5569_v5, -inf }
 0xdf9   :  { %1957 = vmax.xlane.f32.xlu0 %v1956_v19 }
 0xdfa   :  { %v1959_v54 = vsel %vm345_vm5, %v5577_v0, -inf }
 0xdfb   :  { %1960 = vmax.xlane.f32.xlu1 %v1959_v54 }
 0xdfd   :  { %v1942_v4 = vpop.f32.mrb[88].mxu0 }
 0xdfe   :  { %v5589_v18 = vadd.f32 %v5586_v55, %v1942_v4  ;;  %v4028_v56 = vpop.f32.mrb[89].mxu0 }
 0xdff   :  { %v1945_v60 = vpop.f32.mrb[90].mxu0 }
 0xe00   :  { %v5597_v27 = vadd.f32 %v5594_v37, %v1945_v60  ;;  %v4029_v14 = vpop.f32.mrb[91].mxu0  ;;  %v1962_v24 = vsel %vm345_vm5, %v5589_v18, -inf }
 0xe01   :  { %1963 = vmax.xlane.f32.xlu0 %v1962_v24 }
 0xe02   :  { %v1965_v30 = vsel %vm345_vm5, %v5597_v27, -inf }
 0xe05   :  { %1966 = vmax.xlane.f32.xlu0 %v1965_v30  ;;  %v1950_v1 = vpop.f32.mrb[92].mxu0 }
 0xe06   :  { %v5609_v6 = vadd.f32 %v5606_v2, %v1950_v1  ;;  %v4032_v41 = vpop.f32.mrb[93].mxu0 }
 0xe07   :  { %v1953_v8 = vpop.f32.mrb[94].mxu0 }
 0xe08   :  { %v4033_v33 = vpop.f32.mrb[95].mxu0  ;;  %v1968_v9 = vsel %vm358_vm6, %v5609_v6, -inf }
 0xe09   :  { %1969 = vmax.xlane.f32.xlu1 %v1968_v9 }
 0xe0d   :  { %v2157_v39 = vpop.f32.mrb[96].mxu0 }
 0xe0e   :  { %v5614_v11 = vadd.f32 %v5566_v53, %v2157_v39  ;;  %v4060_v40 = vpop.f32.mrb[97].mxu0 }
 0xe0f   :  { %v2160_v58 = vpop.f32.mrb[98].mxu0 }
 0xe10   :  { %v5617_v47 = vadd.f32 %v5574_v28, %v2160_v58  ;;  %v4061_v42 = vpop.f32.mrb[99].mxu0  ;;  %v2179_v15 = vsel %vm345_vm5, %v5614_v11, -inf }
 0xe11   :  { %2180 = vmax.xlane.f32.xlu0 %v2179_v15 }
 0xe12   :  { %v2182_v29 = vsel %vm345_vm5, %v5617_v47, -inf }
 0xe13   :  { %2183 = vmax.xlane.f32.xlu1 %v2182_v29 }
 0xe15   :  { %v2165_v26 = vpop.f32.mrb[100].mxu0 }
 0xe16   :  { %v5624_v62 = vadd.f32 %v5586_v55, %v2165_v26  ;;  %v4064_v31 = vpop.f32.mrb[101].mxu0 }
 0xe17   :  { %v2168_v17 = vpop.f32.mrb[102].mxu0 }
 0xe18   :  { %v5627_v36 = vadd.f32 %v5594_v37, %v2168_v17  ;;  %v4065_v16 = vpop.f32.mrb[103].mxu0  ;;  %v2185_v20 = vsel %vm345_vm5, %v5624_v62, -inf }
 0xe19   :  { %2186 = vmax.xlane.f32.xlu0 %v2185_v20 }
 0xe1a   :  { %v2188_v52 = vsel %vm345_vm5, %v5627_v36, -inf }
 0xe1b   :  { %2189 = vmax.xlane.f32.xlu1 %v2188_v52 }
 0xe1d   :  { %v2173_v50 = vpop.f32.mrb[104].mxu0 }
 0xe1e   :  { %v5634_v63 = vadd.f32 %v5606_v2, %v2173_v50  ;;  %v4068_v7 = vpop.f32.mrb[105].mxu0 }
 0xe1f   :  { %v2176_v25 = vpop.f32.mrb[106].mxu0 }
 0xe20   :  { %v4069_v12 = vpop.f32.mrb[107].mxu0  ;;  %v2191_v34 = vsel %vm358_vm6, %v5634_v63, -inf }
 0xe21   :  { %2192 = vmax.xlane.f32.xlu0 %v2191_v34 }
 0xe25   :  { %v2377_v38 = vpop.f32.mrb[108].mxu0 }
 0xe26   :  { %v5639_v13 = vadd.f32 %v5566_v53, %v2377_v38  ;;  %v4096_v45 = vpop.f32.mrb[109].mxu0 }
 0xe27   :  { %v2380_v43 = vpop.f32.mrb[110].mxu0  ;;  %v5692_v45 = vpop.permute.xlu0 %2239 }
 0xe28   :  { %v5642_v44 = vadd.f32 %v5574_v28, %v2380_v43  ;;  %v4097_v49 = vpop.f32.mrb[111].mxu0  ;;  %v2399_v48 = vsel %vm345_vm5, %v5639_v13, -inf }
 0xe29   :  { %2400 = vmax.xlane.f32.xlu1 %v2399_v48 }
 0xe2a   :  { %v2402_v22 = vsel %vm345_vm5, %v5642_v44, -inf }
 0xe2b   :  { %2403 = vmax.xlane.f32.xlu0 %v2402_v22  ;;  %v5694_v43 = vpop.permute.xlu0 %2241 }
 0xe2d   :  { %v2385_v23 = vpop.f32.mrb[112].mxu0 }
 0xe2e   :  { %v5649_v51 = vadd.f32 %v5586_v55, %v2385_v23  ;;  %v4100_v19 = vpop.f32.mrb[113].mxu0 }
 0xe2f   :  { %v2388_v54 = vpop.f32.mrb[114].mxu0 }
 0xe30   :  { %v5652_v4 = vadd.f32 %v5594_v37, %v2388_v54  ;;  %v4101_v56 = vpop.f32.mrb[115].mxu0  ;;  %v2405_v60 = vsel %vm345_vm5, %v5649_v51, -inf }
 0xe31   :  { %2406 = vmax.xlane.f32.xlu1 %v2405_v60 }
 0xe32   :  { %v2408_v14 = vsel %vm345_vm5, %v5652_v4, -inf }
 0xe33   :  { %2409 = vmax.xlane.f32.xlu0 %v2408_v14 }
 0xe35   :  { %v2393_v24 = vpop.f32.mrb[116].mxu0 }
 0xe36   :  { %v5659_v30 = vadd.f32 %v5606_v2, %v2393_v24  ;;  %v4104_v1 = vpop.f32.mrb[117].mxu0 }
 0xe37   :  { %v2396_v41 = vpop.f32.mrb[118].mxu0 }
 0xe38   :  { %v4105_v8 = vpop.f32.mrb[119].mxu0  ;;  %v2411_v33 = vsel %vm358_vm6, %v5659_v30, -inf }
 0xe39   :  { %2412 = vmax.xlane.f32.xlu1 %v2411_v33 }
 0xe3d   :  { %v2597_v9 = vpop.f32.mrb[120].mxu0 }
 0xe3e   :  { %v5664_v39 = vadd.f32 %v5566_v53, %v2597_v9  ;;  %v4132_v40 = vpop.f32.mrb[121].mxu0 }
 0xe3f   :  { %v2600_v58 = vpop.f32.mrb[122].mxu0 }
 0xe40   :  { %v4133_v42 = vpop.f32.mrb[123].mxu0  ;;  %v2619_v15 = vsel %vm345_vm5, %v5664_v39, -inf  ;;  %v5673_v53 = vadd.f32 %v5574_v28, %v2600_v58 }
 0xe41   :  { %2620 = vmax.xlane.f32.xlu0 %v2619_v15 }
 0xe42   :  { %v2622_v25 = vsel %vm345_vm5, %v5673_v53, -inf }
 0xe45   :  { %v2605_v29 = vpop.f32.mrb[124].mxu0 }
 0xe46   :  { %v4136_v26 = vpop.f32.mrb[125].mxu0  ;;  %v5681_v12 = vadd.f32 %v5586_v55, %v2605_v29  ;;  %v5696_v55 = vpop.permute.xlu1 %2237 }
 0xe47   :  { %v2608_v31 = vpop.f32.mrb[126].mxu0 }
 0xe48   :  { %v4137_v17 = vpop.f32.mrb[127].mxu0  ;;  %v5676_v7 = vadd.f32 %v5594_v37, %v2608_v31  ;;  %v2625_v28 = vsel %vm345_vm5, %v5681_v12, -inf }
 0xe4a   :  { %2459 = vrot.lane.b32.xlu1 %v5450_v10, %s6131_s1  ;;  %v2628_v34 = vsel %vm345_vm5, %v5676_v7, -inf }
 0xe4d   :  { %v2613_v16 = vpop.f32.mrb[128].mxu0 }
 0xe4e   :  { %v4140_v20 = vpop.f32.mrb[129].mxu0  ;;  %v5686_v38 = vadd.f32 %v5606_v2, %v2613_v16 }
 0xe4f   :  { %v2616_v52 = vpop.f32.mrb[130].mxu0 }
 0xe50   :  { %v4141_v50 = vpop.f32.mrb[131].mxu0  ;;  %v2631_v37 = vsel %vm358_vm6, %v5686_v38, -inf }
 0xe57   :  { %2457 = vrot.lane.b32.xlu0 %v5442_v46, %s6131_s1 }
 0xe6e   :  { %2623 = vmax.xlane.f32.xlu1 %v2622_v25 }
 0xe72   :  { %2629 = vmax.xlane.f32.xlu1 %v2628_v34 }
 0xe76   :  { %2626 = vmax.xlane.f32.xlu0 %v2625_v28 }
 0xe7a   :  { %2632 = vmax.xlane.f32.xlu0 %v2631_v37 }
 0xe86   :  { %v1958_v49 = vpop.xlane.xlu0 %1957 }
 0xe87   :  { %v1971_v48 = vsub.f32 %v5569_v5, %v1958_v49 }
 0xe88   :  { %v1961_v22 = vpop.xlane.xlu1 %1960 }
 0xe89   :  { %v1976_v2 = vmul.f32 1.442695, %v1971_v48  ;;  %v1972_v23 = vsub.f32 %v5577_v0, %v1961_v22 }
 0xe8b   :  { %4462 = vpow2.f32 %v1976_v2  ;;  %v1978_v19 = vmul.f32 1.442695, %v1972_v23 }
 0xe8d   :  { %4464 = vpow2.f32 %v1978_v19 }
 0xe8e   :  { %v1964_v54 = vpop.xlane.xlu0 %1963 }
 0xe8f   :  { %v1973_v56 = vsub.f32 %v5589_v18, %v1964_v54 }
 0xe91   :  { %v1980_v60 = vmul.f32 1.442695, %v1973_v56 }
 0xe92   :  { %v1967_v14 = vpop.xlane.xlu0 %1966 }
 0xe93   :  { %4466 = vpow2.f32 %v1980_v60  ;;  %v1974_v24 = vsub.f32 %v5597_v27, %v1967_v14 }
 0xe95   :  { %v5702_v1 = vpop.eup %4462  ;;  %v1982_v41 = vmul.f32 1.442695, %v1974_v24 }
 0xe96   :  { %v1970_v8 = vpop.xlane.xlu1 %1969  ;;  %v1986_v5 = vsel %vm345_vm5, %v5702_v1, 0.0 }
 0xe97   :  { %v5706_v33 = vpop.eup %4464  ;;  %4468 = vpow2.f32 %v1982_v41  ;;  %v1975_v0 = vsub.f32 %v5609_v6, %v1970_v8  ;;  %1987 = vadd.xlane.f32.xlu0 %v1986_v5 }
 0xe98   :  { %v1989_v18 = vsel %vm345_vm5, %v5706_v33, 0.0 }
 0xe99   :  { %v1984_v9 = vmul.f32 1.442695, %v1975_v0  ;;  %1990 = vadd.xlane.f32.xlu1 %v1989_v18 }
 0xe9b   :  { %4470 = vpow2.f32 %v1984_v9 }
 0xe9d   :  { %v5711_v27 = vpop.eup %4466 }
 0xe9e   :  { %v2181_v40 = vpop.xlane.xlu0 %2180  ;;  %v1992_v58 = vsel %vm345_vm5, %v5711_v27, 0.0 }
 0xe9f   :  { %v2194_v42 = vsub.f32 %v5614_v11, %v2181_v40  ;;  %1993 = vadd.xlane.f32.xlu0 %v1992_v58 }
 0xea0   :  { %v2184_v15 = vpop.xlane.xlu1 %2183 }
 0xea1   :  { %v5716_v29 = vpop.eup %4468  ;;  %v2199_v6 = vmul.f32 1.442695, %v2194_v42  ;;  %v2195_v26 = vsub.f32 %v5617_v47, %v2184_v15 }
 0xea2   :  { %v1995_v31 = vsel %vm345_vm5, %v5716_v29, 0.0 }
 0xea3   :  { %4472 = vpow2.f32 %v2199_v6  ;;  %v2201_v17 = vmul.f32 1.442695, %v2195_v26  ;;  %1996 = vadd.xlane.f32.xlu1 %v1995_v31 }
 0xea5   :  { %v5721_v16 = vpop.eup %4470  ;;  %4474 = vpow2.f32 %v2201_v17 }
 0xea6   :  { %v2187_v20 = vpop.xlane.xlu0 %2186  ;;  %v1998_v11 = vsel %vm358_vm6, %v5721_v16, 0.0 }
 0xea7   :  { %v2196_v52 = vsub.f32 %v5624_v62, %v2187_v20  ;;  %1999 = vadd.xlane.f32.xlu1 %v1998_v11 }
 0xea8   :  { %v2190_v50 = vpop.xlane.xlu1 %2189 }
 0xea9   :  { %v2203_v25 = vmul.f32 1.442695, %v2196_v52  ;;  %v2197_v47 = vsub.f32 %v5627_v36, %v2190_v50 }
 0xeab   :  { %4476 = vpow2.f32 %v2203_v25  ;;  %v2205_v34 = vmul.f32 1.442695, %v2197_v47 }
 0xead   :  { %v5727_v28 = vpop.eup %4472  ;;  %4478 = vpow2.f32 %v2205_v34 }
 0xeae   :  { %v2193_v37 = vpop.xlane.xlu0 %2192  ;;  %v2209_v49 = vsel %vm345_vm5, %v5727_v28, 0.0 }
 0xeaf   :  { %v5731_v48 = vpop.eup %4474  ;;  %v2198_v22 = vsub.f32 %v5634_v63, %v2193_v37  ;;  %2210 = vadd.xlane.f32.xlu1 %v2209_v49 }
 0xeb0   :  { %v2212_v62 = vsel %vm345_vm5, %v5731_v48, 0.0 }
 0xeb1   :  { %v2207_v2 = vmul.f32 1.442695, %v2198_v22  ;;  %2213 = vadd.xlane.f32.xlu0 %v2212_v62 }
 0xeb3   :  { %4480 = vpow2.f32 %v2207_v2 }
 0xeb5   :  { %v5736_v36 = vpop.eup %4476 }
 0xeb6   :  { %v2401_v23 = vpop.xlane.xlu1 %2400  ;;  %v2215_v19 = vsel %vm345_vm5, %v5736_v36, 0.0 }
 0xeb7   :  { %v5740_v54 = vpop.eup %4478  ;;  %v2414_v56 = vsub.f32 %v5639_v13, %v2401_v23  ;;  %2216 = vadd.xlane.f32.xlu1 %v2215_v19 }
 0xeb8   :  { %v2218_v63 = vsel %vm345_vm5, %v5740_v54, 0.0  ;;  %v2404_v13 = vpop.xlane.xlu0 %2403 }
 0xeb9   :  { %v2419_v60 = vmul.f32 1.442695, %v2414_v56  ;;  %v2415_v5 = vsub.f32 %v5642_v44, %v2404_v13 }
 0xebb   :  { %4482 = vpow2.f32 %v2419_v60  ;;  %2219 = vadd.xlane.f32.xlu1 %v2218_v63  ;;  %v2421_v9 = vmul.f32 1.442695, %v2415_v5 }
 0xebd   :  { %v5745_v14 = vpop.eup %4480  ;;  %4484 = vpow2.f32 %v2421_v9 }
 0xebe   :  { %v2221_v24 = vsel %vm358_vm6, %v5745_v14, 0.0  ;;  %v2407_v0 = vpop.xlane.xlu1 %2406 }
 0xebf   :  { %2222 = vadd.xlane.f32.xlu1 %v2221_v24  ;;  %v2416_v40 = vsub.f32 %v5649_v51, %v2407_v0 }
 0xec0   :  { %v2410_v18 = vpop.xlane.xlu0 %2409 }
 0xec1   :  { %v2417_v42 = vsub.f32 %v5652_v4, %v2410_v18  ;;  %v2423_v15 = vmul.f32 1.442695, %v2416_v40 }
 0xec3   :  { %4486 = vpow2.f32 %v2423_v15 }
 0xec5   :  { %v5749_v41 = vpop.eup %4482 }
 0xec6   :  { %v2429_v8 = vsel %vm345_vm5, %v5749_v41, 0.0  ;;  %v2413_v26 = vpop.xlane.xlu1 %2412 }
 0xec7   :  { %2430 = vadd.xlane.f32.xlu0 %v2429_v8  ;;  %v2418_v31 = vsub.f32 %v5659_v30, %v2413_v26  ;;  %v5762_v20 = vpop.eup %4484 }
 0xec8   :  { %v2432_v51 = vsel %vm345_vm5, %v5762_v20, 0.0 }
 0xec9   :  { %v2427_v44 = vmul.f32 1.442695, %v2418_v31 }
 0xecd   :  { %v5766_v4 = vpop.eup %4486 }
 0xece   :  { %v2621_v58 = vpop.xlane.xlu0 %2620  ;;  %v2435_v30 = vsel %vm345_vm5, %v5766_v4, 0.0 }
 0xecf   :  { %v2634_v6 = vsub.f32 %v5664_v39, %v2621_v58  ;;  %v5770_v39 = vpop.permute.xlu1 %2459 }
 0xed0   :  { %2677 = vrot.lane.b32.xlu1 %v5442_v46, %s6132_s28  ;;  %v2425_v46 = vmul.f32 1.442695, %v2417_v42 }
 0xed1   :  { %v2639_v17 = vmul.f32 1.442695, %v2634_v6 }
 0xed2   :  { %4488 = vpow2.f32 %v2425_v46  ;;  %v5783_v22 = vpop.permute.xlu0 %2457 }
 0xed3   :  { %4490 = vpow2.f32 %v2639_v17 }
 0xed4   :  { %4492 = vpow2.f32 %v2427_v44 }
 0xedc   :  { %v5768_v11 = vpop.eup %4488 }
 0xedd   :  { %2461 = vrot.lane.b32.xlu0 %v5454_v61, %s6131_s1  ;;  %v5774_v52 = vpop.eup %4490  ;;  %v2438_v25 = vsel %vm345_vm5, %v5768_v11, 0.0 }
 0xede   :  { %v2649_v47 = vsel %vm345_vm5, %v5774_v52, 0.0  ;;  %v5780_v34 = vpop.eup %4492 }
 0xedf   :  { %v2441_v2 = vsel %vm358_vm6, %v5780_v34, 0.0 }
 0xef4   :  { %2433 = vadd.xlane.f32.xlu1 %v2432_v51 }
 0xef8   :  { %2436 = vadd.xlane.f32.xlu1 %v2435_v30 }
 0xefb   :  { %v2624_v50 = vpop.xlane.xlu1 %2623 }
 0xefc   :  { %v2635_v37 = vsub.f32 %v5673_v53, %v2624_v50  ;;  %2439 = vadd.xlane.f32.xlu1 %v2438_v25  ;;  %2650 = vadd.xlane.f32.xlu0 %v2649_v47 }
 0xefe   :  { %v2641_v49 = vmul.f32 1.442695, %v2635_v37 }
 0xeff   :  { %v2630_v62 = vpop.xlane.xlu1 %2629 }
 0xf00   :  { %4494 = vpow2.f32 %v2641_v49  ;;  %v2637_v23 = vsub.f32 %v5676_v7, %v2630_v62  ;;  %2442 = vadd.xlane.f32.xlu1 %v2441_v2 }
 0xf02   :  { %v2645_v19 = vmul.f32 1.442695, %v2637_v23 }
 0xf03   :  { %v2627_v56 = vpop.xlane.xlu0 %2626 }
 0xf04   :  { %4496 = vpow2.f32 %v2645_v19  ;;  %v2636_v60 = vsub.f32 %v5681_v12, %v2627_v56 }
 0xf06   :  { %v2643_v63 = vmul.f32 1.442695, %v2636_v60 }
 0xf07   :  { %v2633_v12 = vpop.xlane.xlu0 %2632 }
 0xf08   :  { %4498 = vpow2.f32 %v2643_v63  ;;  %v2638_v26 = vsub.f32 %v5686_v38, %v2633_v12 }
 0xf0a   :  { %v5789_v53 = vpop.eup %4494 }
 0xf0b   :  { %v2652_v24 = vsel %vm345_vm5, %v5789_v53, 0.0 }
 0xf0c   :  { %2653 = vadd.xlane.f32.xlu1 %v2652_v24 }
 0xf0e   :  { %v5793_v8 = vpop.eup %4496 }
 0xf0f   :  { %v2658_v13 = vsel %vm345_vm5, %v5793_v8, 0.0 }
 0xf10   :  { %2659 = vadd.xlane.f32.xlu0 %v2658_v13 }
 0xf12   :  { %v5797_v7 = vpop.eup %4498 }
 0xf13   :  { %v2655_v5 = vsel %vm345_vm5, %v5797_v7, 0.0 }
 0xf14   :  { %2656 = vadd.xlane.f32.xlu1 %v2655_v5 }
 0xf24   :  { %v1988_v0 = vpop.xlane.xlu0 %1987 }
 0xf25   :  { %4500 = vrcp.f32 %v1988_v0  ;;  %2679 = vrot.lane.b32.xlu1 %v5450_v10, %s6132_s28  ;;  %v2647_v10 = vmul.f32 1.442695, %v2638_v26 }
 0xf26   :  { %v1991_v18 = vpop.xlane.xlu1 %1990  ;;  %2681 = vrot.lane.b32.xlu0 %v5454_v61, %s6132_s28 }
 0xf27   :  { %4502 = vrcp.f32 %v1991_v18 }
 0xf2c   :  { %v1994_v9 = vpop.xlane.xlu0 %1993 }
 0xf2d   :  { %4504 = vrcp.f32 %v1994_v9 }
 0xf2f   :  { %v4501_v40 = vpop.eup %4500 }
 0xf30   :  { %v1997_v58 = vpop.xlane.xlu1 %1996  ;;  %v2006_v15 = vmul.f32 %v4501_v40, %v5702_v1 }
 0xf31   :  { %v4503_v42 = vpop.eup %4502  ;;  %4506 = vrcp.f32 %v1997_v58 }
 0xf32   :  { %v2007_v6 = vmul.f32 %v4503_v42, %v5706_v33 }
 0xf34   :  { %v2011_v46 = vpack.c.bf16 %v2007_v6, %v2006_v15  ;;  %v2000_v31 = vpop.xlane.xlu1 %1999 }
 0xf35   :  { %4508 = vrcp.f32 %v2000_v31 }
 0xf36   :  { %4041 = vmatmul.mubr.msk.bf16.vlgmr.msra.gmra.mrb[72].mxu1 %vm345_vm5, %v2011_v46  ;;  %4510 = vpow2.f32 %v2647_v10 }
 0xf37   :  { %4071 = vmatpush3.bf16.msra.mxu1 %v5696_v55  ;;  %4044 = vmatprep.mubr.msk.bf16.mxu1 %vm4583_vm2, %v4582_v35  ;;  %v4505_v61 = vpop.eup %4504  ;;  %v2255_v55 = vsel %vm422_vm4, %v5694_v43, 0 }
 0xf38   :  { %4072 = vmatprep.subr.bf16.mxu1 %v4582_v35  ;;  %v2008_v38 = vmul.f32 %v4505_v61, %v5711_v27 }
 0xf3b   :  { %v4507_v17 = vpop.eup %4506  ;;  %4073 = vmatpush3.bf16.msra.mxu1 %v5692_v45 }
 0xf3c   :  { %v2211_v1 = vpop.xlane.xlu1 %2210  ;;  %4074 = vmatprep.subr.bf16.mxu1 %v4582_v35  ;;  %v2009_v33 = vmul.f32 %v4507_v17, %v5716_v29 }
 0xf3d   :  { %4512 = vrcp.f32 %v2211_v1 }
 0xf3e   :  { %v2214_v44 = vpop.xlane.xlu0 %2213  ;;  %v2012_v51 = vpack.c.bf16 %v2009_v33, %v2008_v38 }
 0xf3f   :  { %v4509_v30 = vpop.eup %4508  ;;  %4075 = vmatpush3.bf16.msra.mxu1 %v2255_v55  ;;  %4514 = vrcp.f32 %v2214_v44 }
 0xf40   :  { %4045 = vmatmul.mubr.msk.bf16.gmra.mrb[76].mxu1 %vm345_vm5, %v2012_v51  ;;  %4106 = vmatprep.subr.bf16.mxu1 %v4582_v35  ;;  %v2010_v45 = vmul.f32 %v4509_v30, %v5721_v16  ;;  %v5824_v29 = vpop.eup %4510 }
 0xf41   :  { %4048 = vmatprep.mubr.msk.bf16.mxu1 %vm4583_vm2, %v4582_v35  ;;  %v2661_v47 = vsel %vm358_vm6, %v5824_v29, 0.0 }
 0xf42   :  { %v2013_v50 = vpack.c.bf16 %v2010_v45, %v2010_v45 }
 0xf44   :  { %v2217_v27 = vpop.xlane.xlu1 %2216 }
 0xf45   :  { %4516 = vrcp.f32 %v2217_v27 }
 0xf47   :  { %v4513_v43 = vpop.eup %4512 }
 0xf48   :  { %v2220_v25 = vpop.xlane.xlu1 %2219  ;;  %4049 = vmatmul.mubr.msk.bf16.gmra.mrb[80].mxu1 %vm345_vm5, %v2013_v50  ;;  %v2229_v49 = vmul.f32 %v4513_v43, %v5727_v28 }
 0xf49   :  { %v4515_v37 = vpop.eup %4514  ;;  %4518 = vrcp.f32 %v2220_v25  ;;  %2662 = vadd.xlane.f32.xlu1 %v2661_v47  ;;  %4076 = vmatprep.mubr.msk.bf16.mxu1 %vm4583_vm2, %v4582_v35 }
 0xf4a   :  { %v2230_v16 = vmul.f32 %v4515_v37, %v5731_v48 }
 0xf4c   :  { %v2223_v62 = vpop.xlane.xlu1 %2222  ;;  %v2234_v2 = vpack.c.bf16 %v2230_v16, %v2229_v49 }
 0xf4d   :  { %4520 = vrcp.f32 %v2223_v62 }
 0xf4f   :  { %v4517_v23 = vpop.eup %4516 }
 0xf50   :  { %4077 = vmatmul.mubr.msk.bf16.vlgmr.msra.gmra.mrb[84].mxu1 %vm345_vm5, %v2234_v2  ;;  %v2231_v60 = vmul.f32 %v4517_v23, %v5736_v36 }
 0xf51   :  { %4107 = vmatpush3.bf16.msra.mxu1 %v5783_v22  ;;  %4080 = vmatprep.mubr.msk.bf16.mxu1 %vm4583_vm2, %v4582_v35 }
 0xf52   :  { %4108 = vmatprep.subr.bf16.mxu1 %v4582_v35 }
 0xf53   :  { %v4519_v19 = vpop.eup %4518 }
 0xf54   :  { %v2431_v56 = vpop.xlane.xlu0 %2430  ;;  %v2232_v48 = vmul.f32 %v4519_v19, %v5740_v54  ;;  %v2678_v54 = vpop.permute.xlu1 %2677 }
 0xf55   :  { %4109 = vmatpush3.bf16.msra.mxu1 %v5770_v39  ;;  %4522 = vrcp.f32 %v2431_v56 }
 0xf56   :  { %v2235_v28 = vpack.c.bf16 %v2232_v48, %v2231_v60  ;;  %4110 = vmatprep.subr.bf16.mxu1 %v4582_v35 }
 0xf57   :  { %v4521_v63 = vpop.eup %4520 }
 0xf58   :  { %4081 = vmatmul.mubr.msk.bf16.gmra.mrb[88].mxu1 %vm345_vm5, %v2235_v28  ;;  %v2462_v22 = vpop.permute.xlu0 %2461  ;;  %v2233_v13 = vmul.f32 %v4521_v63, %v5745_v14 }
 0xf59   :  { %v2475_v24 = vsel %vm422_vm4, %v2462_v22, 0  ;;  %4084 = vmatprep.mubr.msk.bf16.mxu1 %vm4583_vm2, %v4582_v35 }
 0xf5a   :  { %4111 = vmatpush3.bf16.msra.mxu1 %v2475_v24  ;;  %v2236_v36 = vpack.c.bf16 %v2233_v13, %v2233_v13 }
 0xf5b   :  { %4142 = vmatprep.subr.bf16.mxu1 %v4582_v35 }
 0xf5f   :  { %v4523_v0 = vpop.eup %4522 }
 0xf60   :  { %4085 = vmatmul.mubr.msk.bf16.gmra.mrb[92].mxu1 %vm345_vm5, %v2236_v36  ;;  %v2449_v14 = vmul.f32 %v4523_v0, %v5749_v41 }
 0xf61   :  { %4112 = vmatprep.mubr.msk.bf16.mxu1 %vm4583_vm2, %v4582_v35 }
 0xf81   :  { %v2434_v39 = vpop.xlane.xlu1 %2433 }
 0xf82   :  { %4524 = vrcp.f32 %v2434_v39 }
 0xf85   :  { %v2437_v5 = vpop.xlane.xlu1 %2436 }
 0xf86   :  { %4526 = vrcp.f32 %v2437_v5 }
 0xf89   :  { %v2440_v12 = vpop.xlane.xlu1 %2439 }
 0xf8a   :  { %4528 = vrcp.f32 %v2440_v12 }
 0xf8c   :  { %v4525_v18 = vpop.eup %4524 }
 0xf8d   :  { %v2450_v9 = vmul.f32 %v4525_v18, %v5762_v20  ;;  %v2443_v40 = vpop.xlane.xlu1 %2442  ;;  %v2651_v20 = vpop.xlane.xlu0 %2650 }
 0xf8e   :  { %4530 = vrcp.f32 %v2443_v40 }
 0xf8f   :  { %v2454_v58 = vpack.c.bf16 %v2450_v9, %v2449_v14 }
 0xf90   :  { %v4527_v42 = vpop.eup %4526 }
 0xf91   :  { %4113 = vmatmul.mubr.msk.bf16.vlgmr.msra.gmra.mrb[96].mxu1 %vm345_vm5, %v2454_v58  ;;  %v2451_v6 = vmul.f32 %v4527_v42, %v5766_v4  ;;  %v4328_v42 = vld [vmem:[%s6097_s6 + $0x10] sm:$0xff]  }
 0xf92   :  { %4143 = vmatpush3.bf16.msra.mxu1 %v2678_v54  ;;  %4116 = vmatprep.mubr.msk.bf16.mxu1 %vm4583_vm2, %v4582_v35 }
 0xf93   :  { %4144 = vmatprep.subr.bf16.mxu1 %v4582_v35  ;;  %4161 = vmatpush3.bf16.msra.mxu0 %v4328_v42 }
 0xf94   :  { %v4529_v15 = vpop.eup %4528  ;;  %4162 = vmatprep.subr.bf16.mxu0 %v4582_v35 }
 0xf95   :  { %v2452_v26 = vmul.f32 %v4529_v15, %v5768_v11 }
 0xf97   :  { %v2455_v41 = vpack.c.bf16 %v2452_v26, %v2451_v6 }
 0xf98   :  { %v4531_v46 = vpop.eup %4530 }
 0xf99   :  { %v2654_v31 = vpop.xlane.xlu1 %2653  ;;  %4117 = vmatmul.mubr.msk.bf16.gmra.mrb[100].mxu1 %vm345_vm5, %v2455_v41  ;;  %v2453_v10 = vmul.f32 %v4531_v46, %v5780_v34 }
 0xf9a   :  { %4532 = vrcp.f32 %v2654_v31  ;;  %4120 = vmatprep.mubr.msk.bf16.mxu1 %vm4583_vm2, %v4582_v35 }
 0xf9b   :  { %4534 = vrcp.f32 %v2651_v20  ;;  %v2456_v61 = vpack.c.bf16 %v2453_v10, %v2453_v10 }
 0xf9d   :  { %v2660_v17 = vpop.xlane.xlu0 %2659 }
 0xfa1   :  { %v2657_v1 = vpop.xlane.xlu1 %2656  ;;  %4121 = vmatmul.mubr.msk.bf16.gmra.mrb[104].mxu1 %vm345_vm5, %v2456_v61  ;;  %v2682_v33 = vpop.permute.xlu0 %2681 }
 0xfa2   :  { %4536 = vrcp.f32 %v2657_v1  ;;  %4148 = vmatprep.mubr.msk.bf16.mxu1 %vm4583_vm2, %v4582_v35  ;;  %v2695_v44 = vsel %vm422_vm4, %v2682_v33, 0 }
 0xfa3   :  { %4538 = vrcp.f32 %v2660_v17 }
 0xfa4   :  { %v4533_v4 = vpop.eup %4532 }
 0xfa5   :  { %v2680_v11 = vpop.permute.xlu1 %2679  ;;  %v4535_v38 = vpop.eup %4534  ;;  %v2670_v55 = vmul.f32 %v4533_v4, %v5789_v53  ;;  %v4329_v4 = vld [vmem:[%s6097_s6 + $0x18] sm:$0xff]  }
 0xfa6   :  { %4145 = vmatpush3.bf16.msra.mxu1 %v2680_v11  ;;  %v2669_v34 = vmul.f32 %v4535_v38, %v5774_v52  ;;  %4163 = vmatpush3.bf16.msra.mxu0 %v4329_v4 }
 0xfa7   :  { %4146 = vmatprep.subr.bf16.mxu1 %v4582_v35  ;;  %4192 = vmatprep.subr.bf16.mxu0 %v4582_v35 }
 0xfa8   :  { %v2674_v51 = vpack.c.bf16 %v2670_v55, %v2669_v34 }
 0xfaa   :  { %4147 = vmatpush3.bf16.msra.mxu1 %v2695_v44 }
 0xfab   :  { %4176 = vmatprep.subr.bf16.mxu1 %v4582_v35 }
 0xfac   :  { %v4537_v30 = vpop.eup %4536 }
 0xfad   :  { %4149 = vmatmul.mubr.msk.bf16.vlgmr.msra.gmra.mrb[108].mxu1 %vm345_vm5, %v2674_v51  ;;  %v4539_v45 = vpop.eup %4538  ;;  %v2671_v27 = vmul.f32 %v4537_v30, %v5797_v7 }
 0xfae   :  { %4152 = vmatprep.mubr.msk.bf16.mxu1 %vm4583_vm2, %v4582_v35  ;;  %v2672_v53 = vmul.f32 %v4539_v45, %v5793_v8 }
 0xfb0   :  { %v2675_v50 = vpack.c.bf16 %v2672_v53, %v2671_v27 }
 0xfb5   :  { %4153 = vmatmul.mubr.msk.bf16.gmra.mrb[112].mxu1 %vm345_vm5, %v2675_v50 }
 0xfb6   :  { %4156 = vmatprep.mubr.msk.bf16.mxu1 %vm4583_vm2, %v4582_v35 }
 0xfd6   :  { %v2663_v52 = vpop.xlane.xlu1 %2662 }
 0xfd7   :  { %4540 = vrcp.f32 %v2663_v52 }
 0xfe1   :  { %v4541_v43 = vpop.eup %4540 }
 0xfe2   :  { %v2673_v25 = vmul.f32 %v4541_v43, %v5824_v29 }
 0xfe4   :  { %v2676_v47 = vpack.c.bf16 %v2673_v25, %v2673_v25 }
 0xfe6   :  { %4157 = vmatmul.mubr.msk.bf16.gmra.mrb[116].mxu1 %vm345_vm5, %v2676_v47 }
 0xfe7   :  { %4180 = vmatprep.mubr.msk.bf16.mxu1 %vm4583_vm2, %v4582_v35 }
0x1009   :  { %v5883_v7 = vpop.f32.mrb[72].mxu1 }
0x100a   :  { %v4042_v8 = vpop.f32.mrb[73].mxu1 }
0x100b   :  { %v5885_v37 = vpop.f32.mrb[74].mxu1 }
0x100c   :  { %v4043_v16 = vpop.f32.mrb[75].mxu1 }
0x1013   :  { %v5887_v49 = vpop.f32.mrb[76].mxu1 }
0x1014   :  { %v4046_v62 = vpop.f32.mrb[77].mxu1 }
0x1015   :  { %v5889_v2 = vpop.f32.mrb[78].mxu1 }
0x1016   :  { %v4047_v23 = vpop.f32.mrb[79].mxu1 }
0x101b   :  { %v5891_v19 = vpop.f32.mrb[80].mxu1 }
0x101c   :  { %v4050_v29 = vpop.f32.mrb[81].mxu1 }
0x101d   :  { %v2087_v56 = vpop.f32.mrb[82].mxu1 }
0x101e   :  { %v4051_v60 = vpop.f32.mrb[83].mxu1 }
0x1023   :  { %v2291_v48 = vpop.f32.mrb[84].mxu1 }
0x1024   :  { %v4078_v28 = vpop.f32.mrb[85].mxu1 }
0x1025   :  { %v2294_v63 = vpop.f32.mrb[86].mxu1 }
0x1026   :  { %v4282_v22 = vpack.i.bf16 %v2294_v63, %v2291_v48  ;;  %v4079_v24 = vpop.f32.mrb[87].mxu1 }
0x1028   :  { %4283 = vrot.lane.b32.xlu0 %v4282_v22, %s6133_s30 }
0x102b   :  { %v2299_v13 = vpop.f32.mrb[88].mxu1 }
0x102c   :  { %v4082_v36 = vpop.f32.mrb[89].mxu1 }
0x102d   :  { %v2302_v54 = vpop.f32.mrb[90].mxu1 }
0x102e   :  { %v4297_v39 = vpack.i.bf16 %v2302_v54, %v2299_v13  ;;  %v4083_v5 = vpop.f32.mrb[91].mxu1 }
0x1033   :  { %v2307_v12 = vpop.f32.mrb[92].mxu1 }
0x1034   :  { %v4086_v0 = vpop.f32.mrb[93].mxu1 }
0x1035   :  { %v2310_v18 = vpop.f32.mrb[94].mxu1 }
0x1036   :  { %v4087_v14 = vpop.f32.mrb[95].mxu1 }
0x1064   :  { %v2511_v9 = vpop.f32.mrb[96].mxu1 }
0x1065   :  { %v4114_v40 = vpop.f32.mrb[97].mxu1 }
0x1066   :  { %v2514_v58 = vpop.f32.mrb[98].mxu1 }
0x1067   :  { %v4287_v15 = vpack.i.bf16 %v2514_v58, %v2511_v9  ;;  %v4115_v6 = vpop.f32.mrb[99].mxu1 }
0x1069   :  { %4288 = vrot.lane.b32.xlu0 %v4287_v15, %s6134_s2 }
0x106c   :  { %v2519_v26 = vpop.f32.mrb[100].mxu1 }
0x106d   :  { %4298 = vrot.lane.b32.xlu0 %v4297_v39, %s6133_s30  ;;  %v4118_v41 = vpop.f32.mrb[101].mxu1 }
0x106e   :  { %v2522_v46 = vpop.f32.mrb[102].mxu1 }
0x106f   :  { %v4302_v20 = vpack.i.bf16 %v2522_v46, %v2519_v26  ;;  %v4119_v31 = vpop.f32.mrb[103].mxu1 }
0x1071   :  { %4303 = vrot.lane.b32.xlu0 %v4302_v20, %s6134_s2 }
0x1074   :  { %v2527_v10 = vpop.f32.mrb[104].mxu1 }
0x1075   :  { %v4122_v61 = vpop.f32.mrb[105].mxu1 }
0x1076   :  { %v2530_v17 = vpop.f32.mrb[106].mxu1  ;;  %v3573_v61 = vld [vmem:[%s6098_s7 + $0x1] ss:$0 sm:$0xff] }
0x1077   :  { %v4123_v1 = vpop.f32.mrb[107].mxu1 }
0x1080   :  { %v2731_v11 = vpop.f32.mrb[108].mxu1 }
0x1081   :  { %v4150_v38 = vpop.f32.mrb[109].mxu1 }
0x1082   :  { %v2734_v33 = vpop.f32.mrb[110].mxu1 }
0x1083   :  { %v4292_v55 = vpack.i.bf16 %v2734_v33, %v2731_v11  ;;  %v4151_v34 = vpop.f32.mrb[111].mxu1 }
0x1085   :  { %4293 = vrot.lane.b32.xlu1 %v4292_v55, %s6135_s18 }
0x1088   :  { %v2739_v44 = vpop.f32.mrb[112].mxu1 }
0x1089   :  { %2786 = vrot.lane.b32.xlu1 %v2527_v10, %s6134_s2  ;;  %v4154_v51 = vpop.f32.mrb[113].mxu1 }
0x108a   :  { %v2742_v30 = vpop.f32.mrb[114].mxu1 }
0x108b   :  { %v4307_v45 = vpack.i.bf16 %v2742_v30, %v2739_v44  ;;  %v4155_v27 = vpop.f32.mrb[115].mxu1 }
0x108d   :  { %4308 = vrot.lane.b32.xlu0 %v4307_v45, %s6135_s18 }
0x1091   :  { %2766 = vrot.lane.b32.xlu0 %v2307_v12, %s6133_s30 }
0x109a   :  { %v4284_v25 = vpop.permute.xlu0 %4283 }
0x109b   :  { %v4286_v8 = vunpack.i.h.bf16 %v4284_v25  ;;  %v4285_v16 = vunpack.i.l.bf16 %v4284_v25 }
0x109d   :  { %v2814_v60 = vsel %vm270_vm3, %v5885_v37, %v4286_v8  ;;  %v2813_v48 = vsel %vm270_vm3, %v5883_v7, %v4285_v16 }
0x10b9   :  { %v2747_v53 = vpop.f32.mrb[116].mxu1 }
0x10ba   :  { %2806 = vrot.lane.b32.xlu0 %v2747_v53, %s6135_s18  ;;  %v4158_v50 = vpop.f32.mrb[117].mxu1 }
0x10bb   :  { %v2750_v52 = vpop.f32.mrb[118].mxu1 }
0x10bc   :  { %v4159_v43 = vpop.f32.mrb[119].mxu1 }
0x10db   :  { %v4289_v47 = vpop.permute.xlu0 %4288 }
0x10dc   :  { %v4291_v23 = vunpack.i.h.bf16 %v4289_v47  ;;  %v4290_v29 = vunpack.i.l.bf16 %v4289_v47 }
0x10de   :  { %v2819_v22 = vsel %vm1210_vm7, %v2814_v60, %v4291_v23  ;;  %v2818_v24 = vsel %vm1210_vm7, %v2813_v48, %v4290_v29 }
0x10df   :  { %v4299_v62 = vpop.permute.xlu0 %4298 }
0x10e0   :  { %v4301_v5 = vunpack.i.h.bf16 %v4299_v62  ;;  %v4300_v12 = vunpack.i.l.bf16 %v4299_v62 }
0x10e2   :  { %v2816_v37 = vsel %vm270_vm3, %v5889_v2, %v4301_v5  ;;  %v2815_v14 = vsel %vm270_vm3, %v5887_v49, %v4300_v12 }
0x10e3   :  { %v4304_v13 = vpop.permute.xlu0 %4303 }
0x10e4   :  { %v4306_v0 = vunpack.i.h.bf16 %v4304_v13  ;;  %v4305_v18 = vunpack.i.l.bf16 %v4304_v13 }
0x10e6   :  { %v2821_v58 = vsel %vm1210_vm7, %v2816_v37, %v4306_v0  ;;  %v2820_v42 = vsel %vm1210_vm7, %v2815_v14, %v4305_v18  ;;  %v4330_v14 = vld [vmem:[%s6099_s10 + $0x10] sm:$0xff]  }
0x10e7   :  { %4177 = vmatpush3.bf16.msra.mxu1 %v4330_v14 }
0x10e8   :  { %4178 = vmatprep.subr.bf16.mxu1 %v4582_v35 }
0x10f7   :  { %v4294_v56 = vpop.permute.xlu1 %4293 }
0x10f8   :  { %v4296_v28 = vunpack.i.h.bf16 %v4294_v56  ;;  %v4295_v63 = vunpack.i.l.bf16 %v4294_v56 }
0x10fa   :  { %v2824_v36 = vsel %vm1216_vm8, %v2819_v22, %v4296_v28  ;;  %v2823_v54 = vsel %vm1216_vm8, %v2818_v24, %v4295_v63 }
0x10fb   :  { %v2828_v39 = vpack.c.bf16 %v2824_v36, %v2823_v54  ;;  %v2787_v41 = vpop.permute.xlu1 %2786 }
0x10fd   :  { %4165 = vmatmul.mubr.msk.bf16.vlgmr.msra.gmra.mrb[132].mxu0 %vm69_vm0, %v2828_v39 }
0x10fe   :  { %4168 = vmatprep.mubr.msk.bf16.mxu0 %vm4583_vm2, %v4582_v35 }
0x10ff   :  { %v4309_v7 = vpop.permute.xlu0 %4308 }
0x1100   :  { %v4311_v9 = vunpack.i.h.bf16 %v4309_v7  ;;  %v4310_v40 = vunpack.i.l.bf16 %v4309_v7 }
0x1102   :  { %v2826_v15 = vsel %vm1216_vm8, %v2821_v58, %v4311_v9  ;;  %v2825_v6 = vsel %vm1216_vm8, %v2820_v42, %v4310_v40  ;;  %v4331_v9 = vld [vmem:[%s6099_s10 + $0x18] sm:$0xff]  }
0x1103   :  { %v2829_v26 = vpack.c.bf16 %v2826_v15, %v2825_v6  ;;  %v2767_v2 = vpop.permute.xlu0 %2766  ;;  %4179 = vmatpush3.bf16.msra.mxu1 %v4331_v9 }
0x1104   :  { %v2817_v49 = vsel %vm270_vm3, %v5891_v19, %v2767_v2  ;;  %4220 = vmatprep.subr.bf16.mxu1 %v4582_v35 }
0x1105   :  { %4169 = vmatmul.mubr.msk.bf16.gmra.mrb[136].mxu0 %vm69_vm0, %v2829_v26  ;;  %v2822_v46 = vsel %vm1210_vm7, %v2817_v49, %v2787_v41 }
0x1106   :  { %4172 = vmatprep.mubr.msk.bf16.mxu0 %vm4583_vm2, %v4582_v35 }
0x112c   :  { %v2807_v20 = vpop.permute.xlu0 %2806 }
0x112d   :  { %v2827_v31 = vsel %vm1216_vm8, %v2822_v46, %v2807_v20 }
0x112e   :  { %v2830_v10 = vpack.c.bf16 %v2827_v31, %v2827_v31 }
0x1130   :  { %4173 = vmatmul.mubr.msk.bf16.gmra.mrb[140].mxu0 %vm69_vm0, %v2830_v10 }
0x1131   :  { %4208 = vmatprep.mubr.msk.bf16.mxu0 %vm4583_vm2, %v4582_v35 }
0x11d0   :  { %v2899_v17 = vpop.f32.mrb[132].mxu0 }
0x11d1   :  { %v2900_v1 = vadd.f32 %v3573_v61, %v2899_v17  ;;  %v4166_v4 = vpop.f32.mrb[133].mxu0 }
0x11d2   :  { %v2902_v19 = vpop.f32.mrb[134].mxu0 }
0x11d3   :  { %v5943_v11 = vadd.f32 %v2900_v1, %v5382_v59  ;;  %v2903_v38 = vadd.f32 %v3573_v61, %v2902_v19  ;;  %v4167_v33 = vpop.f32.mrb[135].mxu0 }
0x11d5   :  { %v5946_v55 = vadd.f32 %v2903_v38, %v5385_v3  ;;  %v2930_v34 = vsel %vm69_vm0, %v5943_v11, 0.0  ;;  %v3581_v38 = vld [vmem:[%s6100_s8 + $0x1] ss:$0 sm:$0xff] }
0x11d6   :  { %2931 = vadd.xlane.f32.xlu1 %v2930_v34 }
0x11d7   :  { %v2933_v44 = vsel %vm69_vm0, %v5946_v55, 0.0 }
0x11d8   :  { %v2907_v51 = vpop.f32.mrb[136].mxu0  ;;  %2934 = vadd.xlane.f32.xlu0 %v2933_v44 }
0x11d9   :  { %v2908_v30 = vadd.f32 %v3573_v61, %v2907_v51  ;;  %v4170_v45 = vpop.f32.mrb[137].mxu0 }
0x11da   :  { %v2910_v27 = vpop.f32.mrb[138].mxu0 }
0x11db   :  { %v5953_v59 = vadd.f32 %v2908_v30, %v5392_v57  ;;  %v2911_v53 = vadd.f32 %v3573_v61, %v2910_v27  ;;  %v4171_v50 = vpop.f32.mrb[139].mxu0  ;;  %v3582_v30 = vld [vmem:[%s6101_s9 + $0x1] ss:$0 sm:$0xff] }
0x11dd   :  { %v5956_v3 = vadd.f32 %v2911_v53, %v5395_v32  ;;  %v2936_v52 = vsel %vm69_vm0, %v5953_v59, 0.0 }
0x11de   :  { %2937 = vadd.xlane.f32.xlu0 %v2936_v52 }
0x11df   :  { %v2939_v43 = vsel %vm69_vm0, %v5956_v3, 0.0 }
0x11e0   :  { %2940 = vadd.xlane.f32.xlu1 %v2939_v43 }
0x1203   :  { %v2915_v25 = vpop.f32.mrb[140].mxu0 }
0x1204   :  { %v2916_v47 = vadd.f32 %v3573_v61, %v2915_v25  ;;  %v4174_v8 = vpop.f32.mrb[141].mxu0 }
0x1205   :  { %v2918_v16 = vpop.f32.mrb[142].mxu0 }
0x1206   :  { %v5963_v57 = vadd.f32 %v2916_v47, %v5402_v21  ;;  %v4175_v62 = vpop.f32.mrb[143].mxu0 }
0x1208   :  { %v2942_v32 = vsel %vm82_vm1, %v5963_v57, 0.0 }
0x1209   :  { %2943 = vadd.xlane.f32.xlu0 %v2942_v32 }
0x1263   :  { %v2932_v23 = vpop.xlane.xlu1 %2931 }
0x1264   :  { %v2945_v29 = vmul.f32 0.03125, %v2932_v23 }
0x1265   :  { %v2935_v56 = vpop.xlane.xlu0 %2934 }
0x1266   :  { %v2950_v60 = vsub.f32 %v5943_v11, %v2945_v29  ;;  %v2946_v48 = vmul.f32 0.03125, %v2935_v56 }
0x1268   :  { %v2951_v28 = vsub.f32 %v5946_v55, %v2946_v48  ;;  %v2955_v63 = vmul.f32 %v2950_v60, %v2950_v60 }
0x126a   :  { %v2960_v22 = vsel %vm69_vm0, %v2955_v63, 0.0  ;;  %v2956_v24 = vmul.f32 %v2951_v28, %v2951_v28 }
0x126b   :  { %2961 = vadd.xlane.f32.xlu1 %v2960_v22  ;;  %v2938_v21 = vpop.xlane.xlu0 %2937 }
0x126c   :  { %v2947_v13 = vmul.f32 0.03125, %v2938_v21  ;;  %v2963_v36 = vsel %vm69_vm0, %v2956_v24, 0.0  ;;  %v4332_v21 = vld [vmem:[%s6102_s12 + $0x40] sm:$0xff]  }
0x126d   :  { %v2941_v54 = vpop.xlane.xlu1 %2940  ;;  %2964 = vadd.xlane.f32.xlu0 %v2963_v36  ;;  %4193 = vmatpush3.bf16.msra.mxu0 %v4332_v21  ;;  %v4334_v36 = vld [vmem:[%s6102_s12 + $0x50] sm:$0xff]  }
0x126e   :  { %v2952_v39 = vsub.f32 %v5953_v59, %v2947_v13  ;;  %v2948_v5 = vmul.f32 0.03125, %v2941_v54  ;;  %4194 = vmatprep.subr.bf16.mxu0 %v4582_v35  ;;  %v4333_v13 = vld [vmem:[%s6102_s12 + $0x48] sm:$0xff]   ;;  %v4335_v54 = vld [vmem:[%s6102_s12 + $0x58] sm:$0xff]  }
0x1270   :  { %v2953_v12 = vsub.f32 %v5956_v3, %v2948_v5  ;;  %v2957_v0 = vmul.f32 %v2952_v39, %v2952_v39  ;;  %v4337_v5 = vld [vmem:[%s6102_s12 + $0x68] sm:$0xff]  }
0x1271   :  { %4195 = vmatpush3.bf16.msra.mxu0 %v4333_v13 }
0x1272   :  { %v2966_v18 = vsel %vm69_vm0, %v2957_v0, 0.0  ;;  %v2958_v7 = vmul.f32 %v2953_v12, %v2953_v12  ;;  %4196 = vmatprep.subr.bf16.mxu0 %v4582_v35  ;;  %v4339_v0 = vld [vmem:[%s6102_s12 + $0x78] sm:$0xff]  }
0x1273   :  { %2967 = vadd.xlane.f32.xlu1 %v2966_v18  ;;  %v3588_v18 = vld [vmem:[%s6103_s11 + $0x1] ss:$0 sm:$0xff] }
0x1274   :  { %v2969_v37 = vsel %vm69_vm0, %v2958_v7, 0.0 }
0x1275   :  { %2970 = vadd.xlane.f32.xlu0 %v2969_v37  ;;  %4197 = vmatpush3.bf16.msra.mxu0 %v4334_v36 }
0x1276   :  { %4198 = vmatprep.subr.bf16.mxu0 %v4582_v35 }
0x1279   :  { %4199 = vmatpush3.bf16.msra.mxu0 %v4335_v54 }
0x127a   :  { %4200 = vmatprep.subr.bf16.mxu0 %v4582_v35 }
0x1296   :  { %v2944_v40 = vpop.xlane.xlu0 %2943 }
0x1297   :  { %v2949_v58 = vmul.f32 0.03125, %v2944_v40 }
0x1299   :  { %v2954_v42 = vsub.f32 %v5963_v57, %v2949_v58 }
0x129b   :  { %v2959_v15 = vmul.f32 %v2954_v42, %v2954_v42 }
0x129d   :  { %v2972_v6 = vsel %vm82_vm1, %v2959_v15, 0.0 }
0x129e   :  { %2973 = vadd.xlane.f32.xlu1 %v2972_v6 }
0x12f8   :  { %v2962_v26 = vpop.xlane.xlu1 %2961 }
0x12f9   :  { %v2975_v2 = vmul.f32 0.03125, %v2962_v26 }
0x12fa   :  { %v2965_v49 = vpop.xlane.xlu0 %2964 }
0x12fb   :  { %v2980_v41 = vadd.f32 1e-05, %v2975_v2  ;;  %v2976_v46 = vmul.f32 0.03125, %v2965_v49 }
0x12fd   :  { %4542 = vrsqrt.f32 %v2980_v41  ;;  %v2981_v20 = vadd.f32 1e-05, %v2976_v46 }
0x12ff   :  { %4544 = vrsqrt.f32 %v2981_v20 }
0x1300   :  { %v2968_v31 = vpop.xlane.xlu1 %2967 }
0x1301   :  { %v2977_v10 = vmul.f32 0.03125, %v2968_v31 }
0x1302   :  { %v2971_v61 = vpop.xlane.xlu0 %2970 }
0x1303   :  { %v2982_v17 = vadd.f32 1e-05, %v2977_v10  ;;  %v2978_v1 = vmul.f32 0.03125, %v2971_v61 }
0x1305   :  { %4546 = vrsqrt.f32 %v2982_v17  ;;  %v2983_v4 = vadd.f32 1e-05, %v2978_v1 }
0x1307   :  { %v4543_v19 = vpop.eup %4542  ;;  %4548 = vrsqrt.f32 %v2983_v4 }
0x1308   :  { %v2990_v33 = vmul.f32 %v4543_v19, %v2950_v60 }
0x1309   :  { %v4545_v34 = vpop.eup %4544 }
0x130a   :  { %v3001_v44 = vmul.f32 %v3581_v38, %v2990_v33  ;;  %v2991_v51 = vmul.f32 %v4545_v34, %v2951_v28 }
0x130c   :  { %v3002_v45 = vmul.f32 %v3581_v38, %v2991_v51  ;;  %v3012_v27 = vadd.f32 %v3582_v30, %v3001_v44 }
0x130e   :  { %v3013_v53 = vadd.f32 %v3582_v30, %v3002_v45 }
0x130f   :  { %v4547_v50 = vpop.eup %4546 }
0x1310   :  { %v2992_v52 = vmul.f32 %v4547_v50, %v2952_v39  ;;  %v3017_v43 = vpack.c.bf16 %v3013_v53, %v3012_v27  ;;  %v4336_v39 = vld [vmem:[%s6102_s12 + $0x60] sm:$0xff]  }
0x1311   :  { %v4549_v25 = vpop.eup %4548  ;;  %4201 = vmatpush3.bf16.msra.mxu0 %v4336_v39 }
0x1312   :  { %v2993_v47 = vmul.f32 %v4549_v25, %v2953_v12  ;;  %4181 = vmatmul.mubr.msk.bf16.vlgmr.msra.gmra.mrb[120].mxu1 %vm69_vm0, %v3017_v43  ;;  %v3003_v8 = vmul.f32 %v3581_v38, %v2992_v52  ;;  %4202 = vmatprep.subr.bf16.mxu0 %v4582_v35  ;;  %v4338_v12 = vld [vmem:[%s6102_s12 + $0x70] sm:$0xff]  }
0x1313   :  { %4184 = vmatprep.mubr.msk.bf16.mxu1 %vm4583_vm2, %v4582_v35 }
0x1314   :  { %v3004_v16 = vmul.f32 %v3581_v38, %v2993_v47  ;;  %v3014_v62 = vadd.f32 %v3582_v30, %v3003_v8 }
0x1315   :  { %4203 = vmatpush3.bf16.msra.mxu0 %v4337_v5 }
0x1316   :  { %v3015_v32 = vadd.f32 %v3582_v30, %v3004_v16  ;;  %4204 = vmatprep.subr.bf16.mxu0 %v4582_v35 }
0x1318   :  { %v3018_v23 = vpack.c.bf16 %v3015_v32, %v3014_v62 }
0x1319   :  { %4205 = vmatpush3.bf16.msra.mxu0 %v4338_v12 }
0x131a   :  { %4185 = vmatmul.mubr.msk.bf16.gmra.mrb[124].mxu1 %vm69_vm0, %v3018_v23  ;;  %4206 = vmatprep.subr.bf16.mxu0 %v4582_v35 }
0x131b   :  { %4188 = vmatprep.mubr.msk.bf16.mxu1 %vm4583_vm2, %v4582_v35 }
0x131d   :  { %4207 = vmatpush3.bf16.msra.mxu0 %v4339_v0 }
0x132b   :  { %v2974_v29 = vpop.xlane.xlu1 %2973 }
0x132c   :  { %v2979_v56 = vmul.f32 0.03125, %v2974_v29 }
0x132e   :  { %v2984_v60 = vadd.f32 1e-05, %v2979_v56 }
0x1330   :  { %4550 = vrsqrt.f32 %v2984_v60 }
0x133a   :  { %v4551_v48 = vpop.eup %4550 }
0x133b   :  { %v2994_v28 = vmul.f32 %v4551_v48, %v2954_v42 }
0x133d   :  { %v3005_v63 = vmul.f32 %v3581_v38, %v2994_v28 }
0x133f   :  { %v3016_v22 = vadd.f32 %v3582_v30, %v3005_v63 }
0x1341   :  { %v3019_v24 = vpack.c.bf16 %v3016_v22, %v3016_v22 }
0x1343   :  { %4189 = vmatmul.mubr.msk.bf16.gmra.mrb[128].mxu1 %vm69_vm0, %v3019_v24 }
0x1344   :  { %4224 = vmatprep.mubr.msk.bf16.mxu1 %vm4583_vm2, %v4582_v35 }
0x13e5   :  { %v3088_v7 = vpop.f32.mrb[120].mxu1 }
0x13e6   :  { %v3089_v37 = vadd.f32 %v3588_v18, %v3088_v7  ;;  %v4182_v14 = vpop.f32.mrb[121].mxu1 }
0x13e7   :  { %v3091_v9 = vpop.f32.mrb[122].mxu1 }
0x13e8   :  { %v3115_v40 = vmul.f32 0.044715, %v3089_v37  ;;  %v3092_v58 = vadd.f32 %v3588_v18, %v3091_v9  ;;  %v4183_v42 = vpop.f32.mrb[123].mxu1  ;;  %v3110_v47 = vmul.f32 0.5, %v3089_v37 }
0x13ea   :  { %v3120_v15 = vmul.f32 %v3115_v40, %v3089_v37  ;;  %v3116_v6 = vmul.f32 0.044715, %v3092_v58  ;;  %v3111_v8 = vmul.f32 0.5, %v3092_v58 }
0x13ec   :  { %v3125_v26 = vmul.f32 %v3120_v15, %v3089_v37  ;;  %v3121_v2 = vmul.f32 %v3116_v6, %v3092_v58  ;;  %v3611_v6 = vld [vmem:[%s6104_s13 + $0x1] ss:$0 sm:$0xff] }
0x13ed   :  { %v3096_v49 = vpop.f32.mrb[124].mxu1 }
0x13ee   :  { %v3130_v41 = vadd.f32 %v3125_v26, %v3089_v37  ;;  %v3126_v46 = vmul.f32 %v3121_v2, %v3092_v58  ;;  %v3097_v20 = vadd.f32 %v3588_v18, %v3096_v49  ;;  %v4186_v31 = vpop.f32.mrb[125].mxu1 }
0x13ef   :  { %v3099_v10 = vpop.f32.mrb[126].mxu1 }
0x13f0   :  { %v3135_v61 = vmul.f32 0.7978845, %v3130_v41  ;;  %v3131_v17 = vadd.f32 %v3126_v46, %v3092_v58  ;;  %v3117_v1 = vmul.f32 0.044715, %v3097_v20  ;;  %v3100_v4 = vadd.f32 %v3588_v18, %v3099_v10  ;;  %v4187_v19 = vpop.f32.mrb[127].mxu1 }
0x13f1   :  { %v3112_v48 = vmul.f32 0.5, %v3097_v20 }
0x13f2   :  { %4552 = vtanh.f32 %v3135_v61  ;;  %v3136_v38 = vmul.f32 0.7978845, %v3131_v17  ;;  %v3122_v33 = vmul.f32 %v3117_v1, %v3097_v20  ;;  %v3118_v34 = vmul.f32 0.044715, %v3100_v4 }
0x13f3   :  { %v3113_v28 = vmul.f32 0.5, %v3100_v4 }
0x13f4   :  { %4554 = vtanh.f32 %v3136_v38  ;;  %v3127_v44 = vmul.f32 %v3122_v33, %v3097_v20  ;;  %v3123_v51 = vmul.f32 %v3118_v34, %v3100_v4 }
0x13f6   :  { %v3128_v30 = vmul.f32 %v3123_v51, %v3100_v4  ;;  %v3132_v45 = vadd.f32 %v3127_v44, %v3097_v20 }
0x13f8   :  { %v3133_v27 = vadd.f32 %v3128_v30, %v3100_v4  ;;  %v3137_v53 = vmul.f32 0.7978845, %v3132_v45 }
0x13fa   :  { %v3138_v50 = vmul.f32 0.7978845, %v3133_v27  ;;  %4556 = vtanh.f32 %v3137_v53 }
0x13fc   :  { %v4553_v52 = vpop.eup %4552  ;;  %4558 = vtanh.f32 %v3138_v50 }
0x13fd   :  { %v3145_v43 = vadd.f32 1.0, %v4553_v52 }
0x13fe   :  { %v4555_v25 = vpop.eup %4554 }
0x13ff   :  { %v3146_v16 = vadd.f32 1.0, %v4555_v25  ;;  %v3150_v62 = vmul.f32 %v3145_v43, %v3110_v47 }
0x1401   :  { %v3151_v32 = vmul.f32 %v3146_v16, %v3111_v8 }
0x1403   :  { %v3155_v23 = vpack.c.bf16 %v3151_v32, %v3150_v62 }
0x1404   :  { %v4557_v29 = vpop.eup %4556 }
0x1405   :  { %4209 = vmatmul.mubr.bf16.vlgmr.msra.gmra.mrb[144].mxu0 %v3155_v23  ;;  %v3147_v56 = vadd.f32 1.0, %v4557_v29 }
0x1406   :  { %v4559_v60 = vpop.eup %4558  ;;  %4212 = vmatprep.mubr.msk.bf16.mxu0 %vm4583_vm2, %v4582_v35 }
0x1407   :  { %v3148_v63 = vadd.f32 1.0, %v4559_v60  ;;  %v3152_v22 = vmul.f32 %v3147_v56, %v3112_v48 }
0x1409   :  { %v3153_v24 = vmul.f32 %v3148_v63, %v3113_v28 }
0x140b   :  { %v3156_v21 = vpack.c.bf16 %v3153_v24, %v3152_v22 }
0x140d   :  { %4213 = vmatmul.mubr.bf16.gmra.mrb[148].mxu0 %v3156_v21 }
0x140e   :  { %4216 = vmatprep.mubr.msk.bf16.mxu0 %vm4583_vm2, %v4582_v35 }
0x1416   :  { %v3104_v13 = vpop.f32.mrb[128].mxu1 }
0x1417   :  { %v3105_v36 = vadd.f32 %v3588_v18, %v3104_v13  ;;  %v4190_v54 = vpop.f32.mrb[129].mxu1  ;;  %v4340_v13 = vld [vmem:[%s6105_s16] sm:$0xff]  }
0x1418   :  { %v3107_v39 = vpop.f32.mrb[130].mxu1  ;;  %4221 = vmatpush3.bf16.msra.mxu1 %v4340_v13 }
0x1419   :  { %v3119_v5 = vmul.f32 0.044715, %v3105_v36  ;;  %v4191_v12 = vpop.f32.mrb[131].mxu1  ;;  %v3114_v40 = vmul.f32 0.5, %v3105_v36  ;;  %4222 = vmatprep.subr.bf16.mxu1 %v4582_v35 }
0x141b   :  { %v3124_v0 = vmul.f32 %v3119_v5, %v3105_v36 }
0x141d   :  { %v3129_v7 = vmul.f32 %v3124_v0, %v3105_v36 }
0x141f   :  { %v3134_v37 = vadd.f32 %v3129_v7, %v3105_v36  ;;  %v4341_v36 = vld [vmem:[%s6105_s16 + $0x8] sm:$0xff]  }
0x1420   :  { %4223 = vmatpush3.bf16.msra.mxu1 %v4341_v36 }
0x1421   :  { %v3139_v14 = vmul.f32 0.7978845, %v3134_v37 }
0x1423   :  { %4560 = vtanh.f32 %v3139_v14 }
0x142d   :  { %v4561_v9 = vpop.eup %4560 }
0x142e   :  { %v3149_v58 = vadd.f32 1.0, %v4561_v9 }
0x1430   :  { %v3154_v42 = vmul.f32 %v3149_v58, %v3114_v40 }
0x1432   :  { %v3157_v15 = vpack.c.bf16 %v3154_v42, %v3154_v42 }
0x1434   :  { %4217 = vmatmul.mubr.bf16.gmra.mrb[152].mxu0 %v3157_v15 }
0x14d8   :  { %v3265_v18 = vpop.f32.mrb[144].mxu0 }
0x14d9   :  { %v3266_v26 = vadd.f32 %v3611_v6, %v3265_v18  ;;  %v4210_v2 = vpop.f32.mrb[145].mxu0 }
0x14da   :  { %v3268_v49 = vpop.f32.mrb[146].mxu0 }
0x14db   :  { %v3287_v41 = vadd.f32 %v3266_v26, %v5943_v11  ;;  %v3269_v46 = vadd.f32 %v3611_v6, %v3268_v49  ;;  %v4211_v20 = vpop.f32.mrb[147].mxu0 }
0x14dd   :  { %v3288_v31 = vadd.f32 %v3269_v46, %v5946_v55  ;;  %v3294_v10 = vsel %vm69_vm0, %v3287_v41, 0.0 }
0x14de   :  { %3295 = vadd.xlane.f32.xlu0 %v3294_v10 }
0x14df   :  { %v3297_v61 = vsel %vm69_vm0, %v3288_v31, 0.0 }
0x14e0   :  { %3298 = vadd.xlane.f32.xlu1 %v3297_v61  ;;  %v3273_v17 = vpop.f32.mrb[148].mxu0  ;;  %v3621_v61 = vld [vmem:[%s6107_s15] ss:$0 sm:$0xff] }
0x14e1   :  { %v3274_v1 = vadd.f32 %v3611_v6, %v3273_v17  ;;  %v4214_v4 = vpop.f32.mrb[149].mxu0 }
0x14e2   :  { %v3276_v19 = vpop.f32.mrb[150].mxu0 }
0x14e3   :  { %v3289_v38 = vadd.f32 %v3274_v1, %v5953_v59  ;;  %v3277_v33 = vadd.f32 %v3611_v6, %v3276_v19  ;;  %v4215_v34 = vpop.f32.mrb[151].mxu0 }
0x14e5   :  { %v3290_v11 = vadd.f32 %v3277_v33, %v5956_v3  ;;  %v3300_v44 = vsel %vm69_vm0, %v3289_v38, 0.0 }
0x14e6   :  { %3301 = vadd.xlane.f32.xlu0 %v3300_v44 }
0x14e7   :  { %v3303_v55 = vsel %vm69_vm0, %v3290_v11, 0.0 }
0x14e8   :  { %3304 = vadd.xlane.f32.xlu1 %v3303_v55 }
0x1507   :  { %v3281_v51 = vpop.f32.mrb[152].mxu0 }
0x1508   :  { %v3282_v30 = vadd.f32 %v3611_v6, %v3281_v51  ;;  %v4218_v45 = vpop.f32.mrb[153].mxu0 }
0x1509   :  { %v3284_v27 = vpop.f32.mrb[154].mxu0 }
0x150a   :  { %v3291_v53 = vadd.f32 %v3282_v30, %v5963_v57  ;;  %v4219_v50 = vpop.f32.mrb[155].mxu0 }
0x150c   :  { %v3306_v52 = vsel %vm82_vm1, %v3291_v53, 0.0 }
0x150d   :  { %3307 = vadd.xlane.f32.xlu0 %v3306_v52 }
0x156b   :  { %v3296_v59 = vpop.xlane.xlu0 %3295 }
0x156c   :  { %v3309_v43 = vmul.f32 0.03125, %v3296_v59 }
0x156d   :  { %v3299_v25 = vpop.xlane.xlu1 %3298 }
0x156e   :  { %v3314_v3 = vsub.f32 %v3287_v41, %v3309_v43  ;;  %v3310_v47 = vmul.f32 0.03125, %v3299_v25  ;;  %v3620_v41 = vld [vmem:[%s6106_s14] ss:$0 sm:$0xff] }
0x1570   :  { %v3315_v8 = vsub.f32 %v3288_v31, %v3310_v47  ;;  %v3319_v16 = vmul.f32 %v3314_v3, %v3314_v3 }
0x1572   :  { %v3324_v62 = vsel %vm69_vm0, %v3319_v16, 0.0  ;;  %v3320_v32 = vmul.f32 %v3315_v8, %v3315_v8 }
0x1573   :  { %v3302_v23 = vpop.xlane.xlu0 %3301  ;;  %3325 = vadd.xlane.f32.xlu1 %v3324_v62 }
0x1574   :  { %v3311_v29 = vmul.f32 0.03125, %v3302_v23  ;;  %v3327_v56 = vsel %vm69_vm0, %v3320_v32, 0.0 }
0x1575   :  { %v3305_v57 = vpop.xlane.xlu1 %3304  ;;  %3328 = vadd.xlane.f32.xlu0 %v3327_v56 }
0x1576   :  { %v3316_v60 = vsub.f32 %v3289_v38, %v3311_v29  ;;  %v3312_v48 = vmul.f32 0.03125, %v3305_v57 }
0x1578   :  { %v3317_v28 = vsub.f32 %v3290_v11, %v3312_v48  ;;  %v3321_v63 = vmul.f32 %v3316_v60, %v3316_v60 }
0x157a   :  { %v3330_v22 = vsel %vm69_vm0, %v3321_v63, 0.0  ;;  %v3322_v24 = vmul.f32 %v3317_v28, %v3317_v28 }
0x157b   :  { %3331 = vadd.xlane.f32.xlu1 %v3330_v22 }
0x157c   :  { %v3333_v21 = vsel %vm69_vm0, %v3322_v24, 0.0 }
0x157d   :  { %3334 = vadd.xlane.f32.xlu0 %v3333_v21 }
0x159a   :  { %v3308_v54 = vpop.xlane.xlu0 %3307 }
0x159b   :  { %v3313_v39 = vmul.f32 0.03125, %v3308_v54 }
0x159d   :  { %v3318_v5 = vsub.f32 %v3291_v53, %v3313_v39 }
0x159f   :  { %v3323_v12 = vmul.f32 %v3318_v5, %v3318_v5 }
0x15a1   :  { %v3336_v0 = vsel %vm82_vm1, %v3323_v12, 0.0 }
0x15a2   :  { %3337 = vadd.xlane.f32.xlu1 %v3336_v0 }
0x1600   :  { %v3326_v7 = vpop.xlane.xlu1 %3325 }
0x1601   :  { %v3339_v37 = vmul.f32 0.03125, %v3326_v7 }
0x1602   :  { %v3329_v14 = vpop.xlane.xlu0 %3328 }
0x1603   :  { %v3344_v9 = vadd.f32 1e-05, %v3339_v37  ;;  %v3340_v40 = vmul.f32 0.03125, %v3329_v14 }
0x1605   :  { %4562 = vrsqrt.f32 %v3344_v9  ;;  %v3345_v58 = vadd.f32 1e-05, %v3340_v40 }
0x1607   :  { %4564 = vrsqrt.f32 %v3345_v58 }
0x1608   :  { %v3332_v42 = vpop.xlane.xlu1 %3331 }
0x1609   :  { %v3341_v15 = vmul.f32 0.03125, %v3332_v42 }
0x160a   :  { %v3335_v6 = vpop.xlane.xlu0 %3334 }
0x160b   :  { %v3346_v18 = vadd.f32 1e-05, %v3341_v15  ;;  %v3342_v26 = vmul.f32 0.03125, %v3335_v6 }
0x160d   :  { %4566 = vrsqrt.f32 %v3346_v18  ;;  %v3347_v2 = vadd.f32 1e-05, %v3342_v26 }
0x160f   :  { %v4563_v49 = vpop.eup %4562  ;;  %4568 = vrsqrt.f32 %v3347_v2 }
0x1610   :  { %v3354_v46 = vmul.f32 %v4563_v49, %v3314_v3 }
0x1611   :  { %v4565_v20 = vpop.eup %4564 }
0x1612   :  { %v3365_v31 = vmul.f32 %v3620_v41, %v3354_v46  ;;  %v3355_v10 = vmul.f32 %v4565_v20, %v3315_v8 }
0x1614   :  { %v3366_v17 = vmul.f32 %v3620_v41, %v3355_v10  ;;  %v3376_v1 = vadd.f32 %v3621_v61, %v3365_v31 }
0x1616   :  { %v3377_v4 = vadd.f32 %v3621_v61, %v3366_v17 }
0x1617   :  { %v4567_v19 = vpop.eup %4566 }
0x1618   :  { %v3356_v38 = vmul.f32 %v4567_v19, %v3316_v60  ;;  %v3381_v33 = vpack.c.bf16 %v3377_v4, %v3376_v1 }
0x1619   :  { %v4569_v34 = vpop.eup %4568 }
0x161a   :  { %v3357_v11 = vmul.f32 %v4569_v34, %v3317_v28  ;;  %4225 = vmatmul.mubr.msk.bf16.vlgmr.msra.gmra.mrb[132].mxu1 %vm69_vm0, %v3381_v33  ;;  %v3367_v44 = vmul.f32 %v3620_v41, %v3356_v38 }
0x161b   :  { %4228 = vmatprep.mubr.msk.bf16.mxu1 %vm4583_vm2, %v4582_v35 }
0x161c   :  { %v3368_v55 = vmul.f32 %v3620_v41, %v3357_v11  ;;  %v3378_v51 = vadd.f32 %v3621_v61, %v3367_v44 }
0x161e   :  { %v3379_v30 = vadd.f32 %v3621_v61, %v3368_v55 }
0x1620   :  { %v3382_v45 = vpack.c.bf16 %v3379_v30, %v3378_v51 }
0x1622   :  { %4229 = vmatmul.mubr.msk.bf16.gmra.mrb[136].mxu1 %vm69_vm0, %v3382_v45 }
0x1623   :  { %4232 = vmatprep.mubr.msk.bf16.mxu1 %vm4583_vm2, %v4582_v35 }
0x162f   :  { %v3338_v27 = vpop.xlane.xlu1 %3337 }
0x1630   :  { %v3343_v53 = vmul.f32 0.03125, %v3338_v27 }
0x1632   :  { %v3348_v50 = vadd.f32 1e-05, %v3343_v53 }
0x1634   :  { %4570 = vrsqrt.f32 %v3348_v50 }
0x163e   :  { %v4571_v52 = vpop.eup %4570 }
0x163f   :  { %v3358_v59 = vmul.f32 %v4571_v52, %v3318_v5 }
0x1641   :  { %v3369_v43 = vmul.f32 %v3620_v41, %v3358_v59 }
0x1643   :  { %v3380_v25 = vadd.f32 %v3621_v61, %v3369_v43 }
0x1645   :  { %v3383_v3 = vpack.c.bf16 %v3380_v25, %v3380_v25 }
0x1647   :  { %4233 = vmatmul.mubr.msk.bf16.gmra.mrb[140].mxu1 %vm69_vm0, %v3383_v3 }
0x16ed   :  { %v3443_v47 = vpop.f32.mrb[132].mxu1 }
0x16ee   :  { %3465 = vst [vmem:[%s6108_s17] sm:$0xff] %v3443_v47  ;;  %v4226_v8 = vpop.f32.mrb[133].mxu1 }
0x16ef   :  { %v3446_v16 = vpop.f32.mrb[134].mxu1 }
0x16f0   :  { %3466 = vst [vmem:[%s6108_s17 + $0x8] sm:$0xff] %v3446_v16  ;;  %v4227_v35 = vpop.f32.mrb[135].mxu1 }
0x16f5   :  { %v3451_v62 = vpop.f32.mrb[136].mxu1 }
0x16f6   :  { %3467 = vst [vmem:[%s6108_s17 + $0x10] sm:$0xff] %v3451_v62  ;;  %v4230_v32 = vpop.f32.mrb[137].mxu1 }
0x16f7   :  { %v3454_v23 = vpop.f32.mrb[138].mxu1 }
0x16f8   :  { %3468 = vst [vmem:[%s6108_s17 + $0x18] sm:$0xff] %v3454_v23  ;;  %v4231_v29 = vpop.f32.mrb[139].mxu1 }
0x171a   :  { %v3459_v56 = vpop.f32.mrb[140].mxu1 }
0x171b   :  { %3469 = vst [vmem:[%s6108_s17 + $0x20] sm:$0xf] %v3459_v56  ;;  %v4234_v57 = vpop.f32.mrb[141].mxu1 }
0x171c   :  { %v3462_v60 = vpop.f32.mrb[142].mxu1 }
0x171d   :  { %v4235_v48 = vpop.f32.mrb[143].mxu1 }

</bundles_post_ra>
